<compile_context>
chip_gen: v7x
topology: tpu7x:2x2x1
jax: 0.10.0
libtpu: 0.0.40
codegen_flags: <defaults>
</compile_context>

<pallas_src>
import functools

import jax
import jax.numpy as jnp
from jax import lax
from jax.experimental import pallas as pl
from jax.experimental.pallas import tpu as pltpu


# ----------------------------------------------------------------------------
# small helpers
# ----------------------------------------------------------------------------

def _round_up(x, m):
    return ((x + m - 1) // m) * m


def _pick_tile(dim, candidates):
    """Largest candidate that divides dim (dim itself as fallback)."""
    for c in candidates:
        if dim >= c and dim % c == 0:
            return c
    return dim


def _pick_m_tile(mp):
    """M tile: prefer >=2 blocks when M allows (feeds both v7x TensorCores)."""
    cands = (256, 128, 64, 32, 16)
    if mp >= 256:
        for c in cands:
            if mp % c == 0 and mp // c >= 2:
                return c
    for c in cands:
        if mp % c == 0:
            return c
    return mp


# ----------------------------------------------------------------------------
# Pallas kernels
# ----------------------------------------------------------------------------

def _matmul_bias_kernel(a_ref, w_ref, b_ref, o_ref, acc_ref, *, relu):
    """Tiled  out = maybe_relu(A @ W + bias).

    Grid (M//tm, N//tn, K//tk); K is the sequential reduction axis accumulated
    in a f32 VMEM scratch.  Bias (BN beta, zero in padded cols) is folded into
    the accumulator init.  A, W are bf16 (MXU-native)."""
    k = pl.program_id(2)

    @pl.when(k == 0)
    def _():
        acc_ref[...] = jnp.broadcast_to(b_ref[...], acc_ref.shape)

    acc_ref[...] += jnp.dot(a_ref[...], w_ref[...],
                            preferred_element_type=jnp.float32)

    @pl.when(k == pl.num_programs(2) - 1)
    def _():
        out = acc_ref[...]
        if relu:
            out = jnp.maximum(out, 0.0)
        o_ref[...] = out.astype(o_ref.dtype)


def matmul_bias(a, w_packed, bias_packed, *, relu, out_dtype):
    """a: (M, K). w_packed: (Kp, Np) bf16 zero-padded, BN-scale folded.
    bias_packed: (1, Np) f32 (zero in padded cols).  Returns (M, Np) out_dtype
    -- the padded channel dim is kept (no slice)."""
    M, K = a.shape
    Kp, Np = w_packed.shape
    Mp = _round_up(M, 16)                       # bf16 packs 16 rows / vreg
    tm = _pick_m_tile(Mp)
    tn = _pick_tile(Np, (256, 128))
    tk = _pick_tile(Kp, (512, 384, 256, 128))

    if a.dtype != jnp.bfloat16:
        a = a.astype(jnp.bfloat16)
    if Mp != M or Kp != K:
        a = jnp.pad(a, ((0, Mp - M), (0, Kp - K)))

    kern = functools.partial(_matmul_bias_kernel, relu=relu)
    out = pl.pallas_call(
        kern,
        out_shape=jax.ShapeDtypeStruct((Mp, Np), out_dtype),
        grid_spec=pltpu.PrefetchScalarGridSpec(
            num_scalar_prefetch=0,
            grid=(Mp // tm, Np // tn, Kp // tk),
            in_specs=[
                pl.BlockSpec((tm, tk), lambda i, j, k: (i, k)),
                pl.BlockSpec((tk, tn), lambda i, j, k: (k, j)),
                pl.BlockSpec((1, tn), lambda i, j, k: (0, j)),
            ],
            out_specs=pl.BlockSpec((tm, tn), lambda i, j, k: (i, j)),
            scratch_shapes=[pltpu.VMEM((tm, tn), jnp.float32)],
        ),
        compiler_params=pltpu.CompilerParams(
            dimension_semantics=("parallel", "parallel", "arbitrary"),
            vmem_limit_bytes=48 * 1024 * 1024,   # headroom below v7x 64 MiB
        ),
    )(a, w_packed, bias_packed)
    if Mp != M:
        out = out[:M]
    return out


def _conv3_combine_kernel(a_ref, w_ref, b_ref, id_ref, o_ref, acc_ref,
                          *, d, ci, co):
    """Fused conv3 (1x1 matmul, BN folded) + dual-path combine + ReLU.

    Grid (M//tm, K//tk); accumulator holds the conv3 output y (width Wp, valid
    cols [0, cy)).  Epilogue (concat-free, lane-dense):
        out[:, :d]    = relu(id[:, :d] + y[:, :d])
        out[:, d:ci]  = relu(id[:, d:ci])
        out[:, ci:co] = relu(y[:, d:cy])    (via XLU lane-roll + selects)
        out[:, co:]   = 0
    """
    k = pl.program_id(1)

    @pl.when(k == 0)
    def _():
        acc_ref[...] = jnp.broadcast_to(b_ref[...], acc_ref.shape)

    acc_ref[...] += jnp.dot(a_ref[...], w_ref[...],
                            preferred_element_type=jnp.float32)

    @pl.when(k == pl.num_programs(1) - 1)
    def _():
        y = acc_ref[...]
        idv = id_ref[...].astype(jnp.float32)
        shift = ci - d
        y_shift = y if shift == 0 else pltpu.roll(y, shift=shift, axis=1)
        col = lax.broadcasted_iota(jnp.int32, y.shape, 1)
        combined = jnp.where(col < d, idv + y,
                   jnp.where(col < ci, idv,
                   jnp.where(col < co, y_shift, 0.0)))
        o_ref[...] = jnp.maximum(combined, 0.0).astype(o_ref.dtype)


def conv3_combine(out2, identity, wpack, d, ci, co):
    """out2: conv2 output (B,H,W,Cp2) bf16.  identity: (B,H,W,Ip) bf16.
    wpack: conv3 weights packed to (Kp=Cp2, Wp=round_up(co,128)).
    Returns (B,H,W,Wp) bf16."""
    B, H, W, Cp2 = out2.shape
    Ip = identity.shape[-1]
    Kp, Wp = wpack['w'].shape
    M = B * H * W
    Mp = _round_up(M, 16)

    a = out2.reshape(M, Cp2)
    idm = identity.reshape(M, Ip)
    if Ip != Wp:
        idm = jnp.pad(idm, ((0, 0), (0, Wp - Ip)))
    if Mp != M:
        a = jnp.pad(a, ((0, Mp - M), (0, 0)))
        idm = jnp.pad(idm, ((0, Mp - M), (0, 0)))

    tm = _pick_m_tile(Mp)
    tk = _pick_tile(Kp, (512, 384, 256, 128))

    kern = functools.partial(_conv3_combine_kernel, d=d, ci=ci, co=co)
    out = pl.pallas_call(
        kern,
        out_shape=jax.ShapeDtypeStruct((Mp, Wp), jnp.bfloat16),
        grid_spec=pltpu.PrefetchScalarGridSpec(
            num_scalar_prefetch=0,
            grid=(Mp // tm, Kp // tk),
            in_specs=[
                pl.BlockSpec((tm, tk), lambda i, k: (i, k)),
                pl.BlockSpec((tk, Wp), lambda i, k: (k, 0)),
                pl.BlockSpec((1, Wp), lambda i, k: (0, 0)),
                pl.BlockSpec((tm, Wp), lambda i, k: (i, 0)),
            ],
            out_specs=pl.BlockSpec((tm, Wp), lambda i, k: (i, 0)),
            scratch_shapes=[pltpu.VMEM((tm, Wp), jnp.float32)],
        ),
        compiler_params=pltpu.CompilerParams(
            dimension_semantics=("parallel", "arbitrary"),
            vmem_limit_bytes=48 * 1024 * 1024,
        ),
    )(a, wpack['w'], wpack['b'], idm)
    if Mp != M:
        out = out[:M]
    return out.reshape(B, H, W, Wp)


# ----------------------------------------------------------------------------
# Plain-JAX glue: im2col (3x3 only), conv wrapper, maxpool
# ----------------------------------------------------------------------------

def im2col(x, kh, kw, stride, padding):
    B, H, W, C = x.shape
    Ho = (H + 2 * padding - kh) // stride + 1
    Wo = (W + 2 * padding - kw) // stride + 1
    xp = jnp.pad(x, ((0, 0), (padding, padding), (padding, padding), (0, 0)))
    cols = []
    for i in range(kh):
        for j in range(kw):
            cols.append(lax.slice(
                xp, (0, i, j, 0),
                (B, i + (Ho - 1) * stride + 1, j + (Wo - 1) * stride + 1, C),
                (1, stride, stride, 1)))
    patches = jnp.concatenate(cols, axis=-1)          # (B, Ho, Wo, kh*kw*C)
    return patches.reshape(B * Ho * Wo, kh * kw * C), Ho, Wo


def conv_bn(x, wpack, cfg, relu=True):
    """conv (Pallas tiled matmul) with BN folded and optional fused ReLU.
    1x1 convs skip im2col.  Output keeps the padded channel width, bf16."""
    B = x.shape[0]
    kh, kw, stride, padding = cfg['kh'], cfg['kw'], cfg['stride'], cfg['padding']
    if kh == 1 and kw == 1 and padding == 0:
        xs = x if stride == 1 else x[:, ::stride, ::stride, :]
        _, Ho, Wo, Cp = xs.shape
        a = xs.reshape(B * Ho * Wo, Cp)
    else:
        a, Ho, Wo = im2col(x, kh, kw, stride, padding)
    out = matmul_bias(a, wpack['w'], wpack['b'], relu=relu,
                      out_dtype=jnp.bfloat16)
    return out.reshape(B, Ho, Wo, out.shape[-1])


def maxpool_3x3_s2(x):
    """3x3/s2/p1 max-pool as a fused jnp.maximum tree over 9 strided slices
    (single XLA pass, no 9x HBM expansion)."""
    B, H, W, C = x.shape
    Ho = (H + 2 - 3) // 2 + 1
    Wo = (W + 2 - 3) // 2 + 1
    xp = jnp.pad(x, ((0, 0), (1, 1), (1, 1), (0, 0)),
                 constant_values=-jnp.inf)
    out = None
    for i in range(3):
        for j in range(3):
            tap = lax.slice(
                xp, (0, i, j, 0),
                (B, i + (Ho - 1) * 2 + 1, j + (Wo - 1) * 2 + 1, C),
                (1, 2, 2, 1))
            out = tap if out is None else jnp.maximum(out, tap)
    return out


# ----------------------------------------------------------------------------
# Deterministic parameter construction (eval-mode BN folded, weights packed
# lane-dense in bf16 with zero rows for padded input channels)
# ----------------------------------------------------------------------------

def fold_bn(gamma, beta, mean, var, eps=1e-5):
    scale = gamma / jnp.sqrt(var + eps)
    return scale, beta - mean * scale


class ParamGen:
    def __init__(self, key):
        self.key = key

    def _next(self):
        self.key, k = jax.random.split(self.key)
        return k

    def conv(self, o, c, kh, kw):
        fan_out = o * kh * kw
        std = (2.0 / fan_out) ** 0.5
        return std * jax.random.normal(self._next(), (o, c, kh, kw), jnp.float32)

    def bn(self, c):
        g = 1.0 + 0.1 * jax.random.normal(self._next(), (c,), jnp.float32)
        b = 0.1 * jax.random.normal(self._next(), (c,), jnp.float32)
        m = 0.1 * jax.random.normal(self._next(), (c,), jnp.float32)
        v = 0.9 + 0.1 * jnp.abs(jax.random.normal(self._next(), (c,), jnp.float32))
        return fold_bn(g, b, m, v)

    def linear(self, in_f, out_f):
        w = jax.random.normal(self._next(), (out_f, in_f), jnp.float32) * (1.0 / in_f) ** 0.5
        b = 0.01 * jax.random.normal(self._next(), (out_f,), jnp.float32)
        return w, b


def pack_conv(w, scale, bias, c_in_pad, n_pad=None):
    """w: (O, C, kh, kw) torch layout.  Fold BN scale into the weights, insert
    zero rows for padded input channels (per tap), reshape to im2col layout
    (kh*kw*c_in_pad, O), pad K/N to multiples of 128, cast to bf16."""
    O, C, kh, kw = w.shape
    wm = jnp.transpose(w, (2, 3, 1, 0)) * scale[None, None, None, :]   # (kh,kw,C,O)
    wm = jnp.pad(wm, ((0, 0), (0, 0), (0, c_in_pad - C), (0, 0)))
    K = kh * kw * c_in_pad
    wm = wm.reshape(K, O)
    Kp = _round_up(K, 128)
    Np = n_pad if n_pad is not None else _round_up(O, 128)
    wm = jnp.pad(wm, ((0, Kp - K), (0, Np - O))).astype(jnp.bfloat16)
    b = jnp.pad(bias, (0, Np - O)).reshape(1, Np).astype(jnp.float32)
    return {'w': wm, 'b': b}


def _make_conv(pg, c_in, c_out, kh, kw, stride, padding, c_in_pad, n_pad=None):
    w = pg.conv(c_out, c_in, kh, kw)
    scale, bias = pg.bn(c_out)
    cfg = {'kh': kh, 'kw': kw, 'stride': stride, 'padding': padding,
           'c_out': c_out}
    return pack_conv(w, scale, bias, c_in_pad, n_pad), cfg


def make_dpn_params(key, num_init_features, planes, layers, out_planes,
                    dense_depth, num_classes, small=True,
                    base_width=64, groups=1):
    """Returns (weights, config): weights is an array-only pytree (jit arg),
    config is static Python structure (closed over)."""
    pg = ParamGen(key)
    weights = {'blocks': []}
    config = {'blocks': [], 'num_classes': num_classes}

    ks = 3 if small else 7
    pad = 1 if small else 3
    weights['stem'], config['stem'] = _make_conv(
        pg, 3, num_init_features, ks, ks, 2, pad, c_in_pad=3)

    inplanes = num_init_features
    in_pad = _round_up(num_init_features, 128)
    for li in range(4):
        layer_stride = 1 if li == 0 else 2
        for bi in range(layers[li]):
            s = layer_stride if bi == 0 else 1
            width = int(planes[li] * (base_width / 64.0)) * groups
            width_pad = _round_up(width, 128)
            op, dd = out_planes[li], dense_depth[li]
            has_ds = (bi == 0)
            ci = (op + dd) if has_ds else inplanes       # identity channels
            co = ci + dd                                  # combine output chans
            co_pad = _round_up(co, 128)

            bw, bc = {}, {'d': op, 'ci': ci, 'co': co}
            bw['conv1'], bc['conv1'] = _make_conv(pg, inplanes, width, 1, 1, 1, 0,
                                                  c_in_pad=in_pad)
            bw['conv2'], bc['conv2'] = _make_conv(pg, width, width, 3, 3, s, 1,
                                                  c_in_pad=width_pad)
            # conv3 is packed to the combine output width so the fused kernel's
            # accumulator doubles as the combine buffer.
            bw['conv3'], bc['conv3'] = _make_conv(pg, width, op + dd, 1, 1, 1, 0,
                                                  c_in_pad=width_pad, n_pad=co_pad)
            if has_ds:
                bw['ds'], bc['ds'] = _make_conv(pg, inplanes, op + dd, 1, 1, s, 0,
                                                c_in_pad=in_pad)
            else:
                bw['ds'], bc['ds'] = None, None
            weights['blocks'].append(bw)
            config['blocks'].append(bc)
            inplanes = co              # == op + (2 + bi) * dd
            in_pad = co_pad

    fc_in = out_planes[3] + (layers[3] + 1) * dense_depth[3]
    assert fc_in == inplanes
    fw, fb = pg.linear(fc_in, num_classes)
    Kp = in_pad
    Np = _round_up(num_classes, 128)
    weights['fc'] = {
        'w': jnp.pad(fw.T, ((0, Kp - fc_in), (0, Np - num_classes))).astype(jnp.bfloat16),
        'b': jnp.pad(fb, (0, Np - num_classes)).reshape(1, Np).astype(jnp.float32),
    }
    return weights, config


# ----------------------------------------------------------------------------
# Forward pass
# ----------------------------------------------------------------------------

def bottleneck_forward(x, bw, bc):
    out = conv_bn(x, bw['conv1'], bc['conv1'], relu=True)
    out = conv_bn(out, bw['conv2'], bc['conv2'], relu=True)
    if bc['ds'] is not None:
        identity = conv_bn(x, bw['ds'], bc['ds'], relu=False)
    else:
        identity = x
    # Fused: conv3 matmul + BN bias + dual-path combine + ReLU in one call.
    return conv3_combine(out, identity, bw['conv3'], bc['d'], bc['ci'], bc['co'])


def dpn_forward(weights, x_nchw, config):
    x = jnp.transpose(x_nchw, (0, 2, 3, 1))            # NCHW -> NHWC
    x = conv_bn(x, weights['stem'], config['stem'], relu=True)
    x = maxpool_3x3_s2(x)
    for bw, bc in zip(weights['blocks'], config['blocks']):
        x = bottleneck_forward(x, bw, bc)
    B, H, W, Cp = x.shape
    pooled = jnp.mean(x.reshape(B, H * W, Cp).astype(jnp.float32), axis=1)
    logits = matmul_bias(pooled, weights['fc']['w'], weights['fc']['b'],
                         relu=False, out_dtype=jnp.float32)
    return logits[:, :config['num_classes']]


# ----------------------------------------------------------------------------
# Main
# ----------------------------------------------------------------------------

if __name__ == "__main__":
    key = jax.random.PRNGKey(0)
    k_x, k_p = jax.random.split(key)

    # Small synthetic DPN config (CIFAR-style, small=True stem).
    num_init_features = 16
    planes = [8, 16, 16, 16]
    layers = [1, 2, 1, 1]
    out_planes = [16, 32, 32, 32]
    dense_depth = [4, 4, 4, 8]
    num_classes = 10

    weights, config = make_dpn_params(k_p, num_init_features, planes, layers,
                                      out_planes, dense_depth, num_classes,
                                      small=True)

    x = jax.random.normal(k_x, (2, 3, 32, 32), jnp.float32)   # NCHW input

    # Static config is closed over (not traced).
    fwd = jax.jit(functools.partial(dpn_forward, config=config))
    logits = jax.block_until_ready(fwd(weights, x))

    assert logits.shape == (2, num_classes), logits.shape
    assert bool(jnp.all(jnp.isfinite(logits)))
    print("KERNEL_OK")
</pallas_src>

<mosaic_0001>
module attributes {stable_mosaic.version = 11 : i64} {
  func.func @_matmul_bias_kernel(%arg0: i32, %arg1: i32, %arg2: i32, %arg3: memref<256x128xbf16, #tpu.memory_space<vmem>>, %arg4: memref<128x128xbf16, #tpu.memory_space<vmem>>, %arg5: memref<1x128xf32, #tpu.memory_space<vmem>>, %arg6: memref<256x128xbf16, #tpu.memory_space<vmem>>, %arg7: memref<256x128xf32, #tpu.memory_space<vmem>>) attributes {dimension_semantics = [#tpu.dimension_semantics<parallel>, #tpu.dimension_semantics<parallel>, #tpu.dimension_semantics<arbitrary>], iteration_bounds = array<i64: 2, 1, 1>, scalar_prefetch = 0 : i64, scratch_operands = 1 : i64, tpu.core_type = #tpu.core_type<tc>, window_params = [{transform_indices = @transform_0, window_bounds = array<i64: 256, 128>}, {transform_indices = @transform_1, window_bounds = array<i64: 128, 128>}, {transform_indices = @transform_2, window_bounds = array<i64: 1, 128>}, {transform_indices = @transform_3, window_bounds = array<i64: 256, 128>}]} {
    %c0_i32 = arith.constant 0 : i32
    %0 = arith.cmpi eq, %arg2, %c0_i32 : i32
    %1 = arith.extui %0 : i1 to i32
    %c0_i32_0 = arith.constant 0 : i32
    %2 = arith.cmpi ne, %1, %c0_i32_0 : i32
    scf.if %2 {
      %c0_10 = arith.constant 0 : index
      %c0_11 = arith.constant 0 : index
      %12 = vector.load %arg5[%c0_10, %c0_11] : memref<1x128xf32, #tpu.memory_space<vmem>>, vector<1x128xf32>
      %13 = vector.shape_cast %12 : vector<1x128xf32> to vector<1x128xf32>
      %14 = vector.broadcast %13 : vector<1x128xf32> to vector<256x128xf32>
      %c0_12 = arith.constant 0 : index
      %c0_13 = arith.constant 0 : index
      %15 = vector.load %arg7[%c0_12, %c0_13] : memref<256x128xf32, #tpu.memory_space<vmem>>, vector<256x128xf32>
      tpu.vector_store %arg7[%c0_12, %c0_13], %14 {strides = array<i32>} : memref<256x128xf32, #tpu.memory_space<vmem>>, vector<256x128xf32>,
    } else {
    }
    %c0 = arith.constant 0 : index
    %c0_1 = arith.constant 0 : index
    %3 = vector.load %arg7[%c0, %c0_1] : memref<256x128xf32, #tpu.memory_space<vmem>>, vector<256x128xf32>
    %c0_2 = arith.constant 0 : index
    %c0_3 = arith.constant 0 : index
    %4 = vector.load %arg3[%c0_2, %c0_3] : memref<256x128xbf16, #tpu.memory_space<vmem>>, vector<256x128xbf16>
    %c0_4 = arith.constant 0 : index
    %c0_5 = arith.constant 0 : index
    %5 = vector.load %arg4[%c0_4, %c0_5] : memref<128x128xbf16, #tpu.memory_space<vmem>>, vector<128x128xbf16>
    %cst = arith.constant dense<0.000000e+00> : vector<256x128xf32>
    %6 = tpu.matmul %4, %5, %cst {dimension_numbers = #tpu.dot_dimension_numbers<[1], [0], [0], [1], [0, 0, 1, 1], [], []>} : vector<256x128xbf16>, vector<128x128xbf16>, vector<256x128xf32> -> vector<256x128xf32>
    %7 = arith.addf %3, %6 : vector<256x128xf32>
    %c0_6 = arith.constant 0 : index
    %c0_7 = arith.constant 0 : index
    %8 = vector.load %arg7[%c0_6, %c0_7] : memref<256x128xf32, #tpu.memory_space<vmem>>, vector<256x128xf32>
    tpu.vector_store %arg7[%c0_6, %c0_7], %7 {strides = array<i32>} : memref<256x128xf32, #tpu.memory_space<vmem>>, vector<256x128xf32>,
    %c0_i32_8 = arith.constant 0 : i32
    %9 = arith.cmpi eq, %arg2, %c0_i32_8 : i32
    %10 = arith.extui %9 : i1 to i32
    %c0_i32_9 = arith.constant 0 : i32
    %11 = arith.cmpi ne, %10, %c0_i32_9 : i32
    scf.if %11 {
      %c0_10 = arith.constant 0 : index
      %c0_11 = arith.constant 0 : index
      %12 = vector.load %arg7[%c0_10, %c0_11] : memref<256x128xf32, #tpu.memory_space<vmem>>, vector<256x128xf32>
      %cst_12 = arith.constant 0.000000e+00 : f32
      %13 = vector.broadcast %cst_12 : f32 to vector<256x128xf32>
      %14 = arith.maximumf %12, %13 : vector<256x128xf32>
      %15 = arith.truncf %14 : vector<256x128xf32> to vector<256x128xbf16>
      %c0_13 = arith.constant 0 : index
      %c0_14 = arith.constant 0 : index
      %16 = vector.load %arg6[%c0_13, %c0_14] : memref<256x128xbf16, #tpu.memory_space<vmem>>, vector<256x128xbf16>
      tpu.vector_store %arg6[%c0_13, %c0_14], %15 {strides = array<i32>} : memref<256x128xbf16, #tpu.memory_space<vmem>>, vector<256x128xbf16>,
    } else {
    }
    return
  }
  func.func @transform_0(%arg0: i32, %arg1: i32, %arg2: i32) -> (i32, i32) {
    %c0_i32 = arith.constant 0 : i32
    return %arg0, %arg2 : i32, i32
  }
  func.func @transform_1(%arg0: i32, %arg1: i32, %arg2: i32) -> (i32, i32) {
    %c0_i32 = arith.constant 0 : i32
    return %arg2, %arg1 : i32, i32
  }
  func.func @transform_2(%arg0: i32, %arg1: i32, %arg2: i32) -> (i32, i32) {
    %c0_i32 = arith.constant 0 : i32
    %c0_i32_0 = arith.constant 0 : i32
    return %c0_i32, %arg1 : i32, i32
  }
  func.func @transform_3(%arg0: i32, %arg1: i32, %arg2: i32) -> (i32, i32) {
    %c0_i32 = arith.constant 0 : i32
    return %arg0, %arg1 : i32, i32
  }
}

module attributes {stable_mosaic.version = 11 : i64} {
  func.func @_matmul_bias_kernel(%arg0: i32, %arg1: i32, %arg2: i32, %arg3: memref<128x128xbf16, #tpu.memory_space<vmem>>, %arg4: memref<128x128xbf16, #tpu.memory_space<vmem>>, %arg5: memref<1x128xf32, #tpu.memory_space<vmem>>, %arg6: memref<128x128xbf16, #tpu.memory_space<vmem>>, %arg7: memref<128x128xf32, #tpu.memory_space<vmem>>) attributes {dimension_semantics = [#tpu.dimension_semantics<parallel>, #tpu.dimension_semantics<parallel>, #tpu.dimension_semantics<arbitrary>], iteration_bounds = array<i64: 1, 1, 1>, scalar_prefetch = 0 : i64, scratch_operands = 1 : i64, tpu.core_type = #tpu.core_type<tc>, window_params = [{transform_indices = @transform_0, window_bounds = array<i64: 128, 128>}, {transform_indices = @transform_1, window_bounds = array<i64: 128, 128>}, {transform_indices = @transform_2, window_bounds = array<i64: 1, 128>}, {transform_indices = @transform_3, window_bounds = array<i64: 128, 128>}]} {
    %c0_i32 = arith.constant 0 : i32
    %0 = arith.cmpi eq, %arg2, %c0_i32 : i32
    %1 = arith.extui %0 : i1 to i32
    %c0_i32_0 = arith.constant 0 : i32
    %2 = arith.cmpi ne, %1, %c0_i32_0 : i32
    scf.if %2 {
      %c0_10 = arith.constant 0 : index
      %c0_11 = arith.constant 0 : index
      %12 = vector.load %arg5[%c0_10, %c0_11] : memref<1x128xf32, #tpu.memory_space<vmem>>, vector<1x128xf32>
      %13 = vector.shape_cast %12 : vector<1x128xf32> to vector<1x128xf32>
      %14 = vector.broadcast %13 : vector<1x128xf32> to vector<128x128xf32>
      %c0_12 = arith.constant 0 : index
      %c0_13 = arith.constant 0 : index
      %15 = vector.load %arg7[%c0_12, %c0_13] : memref<128x128xf32, #tpu.memory_space<vmem>>, vector<128x128xf32>
      tpu.vector_store %arg7[%c0_12, %c0_13], %14 {strides = array<i32>} : memref<128x128xf32, #tpu.memory_space<vmem>>, vector<128x128xf32>,
    } else {
    }
    %c0 = arith.constant 0 : index
    %c0_1 = arith.constant 0 : index
    %3 = vector.load %arg7[%c0, %c0_1] : memref<128x128xf32, #tpu.memory_space<vmem>>, vector<128x128xf32>
    %c0_2 = arith.constant 0 : index
    %c0_3 = arith.constant 0 : index
    %4 = vector.load %arg3[%c0_2, %c0_3] : memref<128x128xbf16, #tpu.memory_space<vmem>>, vector<128x128xbf16>
    %c0_4 = arith.constant 0 : index
    %c0_5 = arith.constant 0 : index
    %5 = vector.load %arg4[%c0_4, %c0_5] : memref<128x128xbf16, #tpu.memory_space<vmem>>, vector<128x128xbf16>
    %cst = arith.constant dense<0.000000e+00> : vector<128x128xf32>
    %6 = tpu.matmul %4, %5, %cst {dimension_numbers = #tpu.dot_dimension_numbers<[1], [0], [0], [1], [0, 0, 1, 1], [], []>} : vector<128x128xbf16>, vector<128x128xbf16>, vector<128x128xf32> -> vector<128x128xf32>
    %7 = arith.addf %3, %6 : vector<128x128xf32>
    %c0_6 = arith.constant 0 : index
    %c0_7 = arith.constant 0 : index
    %8 = vector.load %arg7[%c0_6, %c0_7] : memref<128x128xf32, #tpu.memory_space<vmem>>, vector<128x128xf32>
    tpu.vector_store %arg7[%c0_6, %c0_7], %7 {strides = array<i32>} : memref<128x128xf32, #tpu.memory_space<vmem>>, vector<128x128xf32>,
    %c0_i32_8 = arith.constant 0 : i32
    %9 = arith.cmpi eq, %arg2, %c0_i32_8 : i32
    %10 = arith.extui %9 : i1 to i32
    %c0_i32_9 = arith.constant 0 : i32
    %11 = arith.cmpi ne, %10, %c0_i32_9 : i32
    scf.if %11 {
      %c0_10 = arith.constant 0 : index
      %c0_11 = arith.constant 0 : index
      %12 = vector.load %arg7[%c0_10, %c0_11] : memref<128x128xf32, #tpu.memory_space<vmem>>, vector<128x128xf32>
      %cst_12 = arith.constant 0.000000e+00 : f32
      %13 = vector.broadcast %cst_12 : f32 to vector<128x128xf32>
      %14 = arith.maximumf %12, %13 : vector<128x128xf32>
      %15 = arith.truncf %14 : vector<128x128xf32> to vector<128x128xbf16>
      %c0_13 = arith.constant 0 : index
      %c0_14 = arith.constant 0 : index
      %16 = vector.load %arg6[%c0_13, %c0_14] : memref<128x128xbf16, #tpu.memory_space<vmem>>, vector<128x128xbf16>
      tpu.vector_store %arg6[%c0_13, %c0_14], %15 {strides = array<i32>} : memref<128x128xbf16, #tpu.memory_space<vmem>>, vector<128x128xbf16>,
    } else {
    }
    return
  }
  func.func @transform_0(%arg0: i32, %arg1: i32, %arg2: i32) -> (i32, i32) {
    %c0_i32 = arith.constant 0 : i32
    return %arg0, %arg2 : i32, i32
  }
  func.func @transform_1(%arg0: i32, %arg1: i32, %arg2: i32) -> (i32, i32) {
    %c0_i32 = arith.constant 0 : i32
    return %arg2, %arg1 : i32, i32
  }
  func.func @transform_2(%arg0: i32, %arg1: i32, %arg2: i32) -> (i32, i32) {
    %c0_i32 = arith.constant 0 : i32
    %c0_i32_0 = arith.constant 0 : i32
    return %c0_i32, %arg1 : i32, i32
  }
  func.func @transform_3(%arg0: i32, %arg1: i32, %arg2: i32) -> (i32, i32) {
    %c0_i32 = arith.constant 0 : i32
    return %arg0, %arg1 : i32, i32
  }
}

module attributes {stable_mosaic.version = 11 : i64} {
  func.func @_conv3_combine_kernel(%arg0: i32, %arg1: i32, %arg2: memref<128x128xbf16, #tpu.memory_space<vmem>>, %arg3: memref<128x128xbf16, #tpu.memory_space<vmem>>, %arg4: memref<1x128xf32, #tpu.memory_space<vmem>>, %arg5: memref<128x128xbf16, #tpu.memory_space<vmem>>, %arg6: memref<128x128xbf16, #tpu.memory_space<vmem>>, %arg7: memref<128x128xf32, #tpu.memory_space<vmem>>) attributes {dimension_semantics = [#tpu.dimension_semantics<parallel>, #tpu.dimension_semantics<arbitrary>], iteration_bounds = array<i64: 1, 1>, scalar_prefetch = 0 : i64, scratch_operands = 1 : i64, tpu.core_type = #tpu.core_type<tc>, window_params = [{transform_indices = @transform_0, window_bounds = array<i64: 128, 128>}, {transform_indices = @transform_1, window_bounds = array<i64: 128, 128>}, {pipeline_mode = #tpu.pipeline_mode<synchronous>, transform_indices = @transform_2, window_bounds = array<i64: 1, 128>}, {transform_indices = @transform_3, window_bounds = array<i64: 128, 128>}, {transform_indices = @transform_4, window_bounds = array<i64: 128, 128>}]} {
    %c0_i32 = arith.constant 0 : i32
    %0 = arith.cmpi eq, %arg1, %c0_i32 : i32
    %1 = arith.extui %0 : i1 to i32
    %c0_i32_0 = arith.constant 0 : i32
    %2 = arith.cmpi ne, %1, %c0_i32_0 : i32
    scf.if %2 {
      %c0_10 = arith.constant 0 : index
      %c0_11 = arith.constant 0 : index
      %12 = vector.load %arg4[%c0_10, %c0_11] : memref<1x128xf32, #tpu.memory_space<vmem>>, vector<1x128xf32>
      %13 = vector.shape_cast %12 : vector<1x128xf32> to vector<1x128xf32>
      %14 = vector.broadcast %13 : vector<1x128xf32> to vector<128x128xf32>
      %c0_12 = arith.constant 0 : index
      %c0_13 = arith.constant 0 : index
      %15 = vector.load %arg7[%c0_12, %c0_13] : memref<128x128xf32, #tpu.memory_space<vmem>>, vector<128x128xf32>
      tpu.vector_store %arg7[%c0_12, %c0_13], %14 {strides = array<i32>} : memref<128x128xf32, #tpu.memory_space<vmem>>, vector<128x128xf32>,
    } else {
    }
    %c0 = arith.constant 0 : index
    %c0_1 = arith.constant 0 : index
    %3 = vector.load %arg7[%c0, %c0_1] : memref<128x128xf32, #tpu.memory_space<vmem>>, vector<128x128xf32>
    %c0_2 = arith.constant 0 : index
    %c0_3 = arith.constant 0 : index
    %4 = vector.load %arg2[%c0_2, %c0_3] : memref<128x128xbf16, #tpu.memory_space<vmem>>, vector<128x128xbf16>
    %c0_4 = arith.constant 0 : index
    %c0_5 = arith.constant 0 : index
    %5 = vector.load %arg3[%c0_4, %c0_5] : memref<128x128xbf16, #tpu.memory_space<vmem>>, vector<128x128xbf16>
    %cst = arith.constant dense<0.000000e+00> : vector<128x128xf32>
    %6 = tpu.matmul %4, %5, %cst {dimension_numbers = #tpu.dot_dimension_numbers<[1], [0], [0], [1], [0, 0, 1, 1], [], []>} : vector<128x128xbf16>, vector<128x128xbf16>, vector<128x128xf32> -> vector<128x128xf32>
    %7 = arith.addf %3, %6 : vector<128x128xf32>
    %c0_6 = arith.constant 0 : index
    %c0_7 = arith.constant 0 : index
    %8 = vector.load %arg7[%c0_6, %c0_7] : memref<128x128xf32, #tpu.memory_space<vmem>>, vector<128x128xf32>
    tpu.vector_store %arg7[%c0_6, %c0_7], %7 {strides = array<i32>} : memref<128x128xf32, #tpu.memory_space<vmem>>, vector<128x128xf32>,
    %c0_i32_8 = arith.constant 0 : i32
    %9 = arith.cmpi eq, %arg1, %c0_i32_8 : i32
    %10 = arith.extui %9 : i1 to i32
    %c0_i32_9 = arith.constant 0 : i32
    %11 = arith.cmpi ne, %10, %c0_i32_9 : i32
    scf.if %11 {
      %c0_10 = arith.constant 0 : index
      %c0_11 = arith.constant 0 : index
      %12 = vector.load %arg7[%c0_10, %c0_11] : memref<128x128xf32, #tpu.memory_space<vmem>>, vector<128x128xf32>
      %c0_12 = arith.constant 0 : index
      %c0_13 = arith.constant 0 : index
      %13 = vector.load %arg5[%c0_12, %c0_13] : memref<128x128xbf16, #tpu.memory_space<vmem>>, vector<128x128xbf16>
      %14 = arith.extf %13 : vector<128x128xbf16> to vector<128x128xf32>
      %c4_i32 = arith.constant 4 : i32
      %15 = tpu.dynamic_rotate %12 by %c4_i32 dim 1 : vector<128x128xf32>, i32 -> vector<128x128xf32>
      %16 = tpu.iota {dimensions = array<i32: 1>} : vector<128x128xi32>
      %c16_i32 = arith.constant 16 : i32
      %17 = vector.broadcast %c16_i32 : i32 to vector<128x128xi32>
      %18 = arith.cmpi slt, %16, %17 : vector<128x128xi32>
      %19 = arith.addf %14, %12 : vector<128x128xf32>
      %c20_i32 = arith.constant 20 : i32
      %20 = vector.broadcast %c20_i32 : i32 to vector<128x128xi32>
      %21 = arith.cmpi slt, %16, %20 : vector<128x128xi32>
      %c24_i32 = arith.constant 24 : i32
      %22 = vector.broadcast %c24_i32 : i32 to vector<128x128xi32>
      %23 = arith.cmpi slt, %16, %22 : vector<128x128xi32>
      %cst_14 = arith.constant 0.000000e+00 : f32
      %24 = vector.broadcast %cst_14 : f32 to vector<128x128xf32>
      %25 = arith.select %23, %15, %24 : vector<128x128xi1>, vector<128x128xf32>
      %26 = arith.select %21, %14, %25 : vector<128x128xi1>, vector<128x128xf32>
      %27 = arith.select %18, %19, %26 : vector<128x128xi1>, vector<128x128xf32>
      %cst_15 = arith.constant 0.000000e+00 : f32
      %28 = vector.broadcast %cst_15 : f32 to vector<128x128xf32>
      %29 = arith.maximumf %27, %28 : vector<128x128xf32>
      %30 = arith.truncf %29 : vector<128x128xf32> to vector<128x128xbf16>
      %c0_16 = arith.constant 0 : index
      %c0_17 = arith.constant 0 : index
      %31 = vector.load %arg6[%c0_16, %c0_17] : memref<128x128xbf16, #tpu.memory_space<vmem>>, vector<128x128xbf16>
      tpu.vector_store %arg6[%c0_16, %c0_17], %30 {strides = array<i32>} : memref<128x128xbf16, #tpu.memory_space<vmem>>, vector<128x128xbf16>,
    } else {
    }
    return
  }
  func.func @transform_0(%arg0: i32, %arg1: i32) -> (i32, i32) {
    %c0_i32 = arith.constant 0 : i32
    return %arg0, %arg1 : i32, i32
  }
  func.func @transform_1(%arg0: i32, %arg1: i32) -> (i32, i32) {
    %c0_i32 = arith.constant 0 : i32
    %c0_i32_0 = arith.constant 0 : i32
    return %arg1, %c0_i32 : i32, i32
  }
  func.func @transform_2(%arg0: i32, %arg1: i32) -> (i32, i32) {
    %c0_i32 = arith.constant 0 : i32
    %c0_i32_0 = arith.constant 0 : i32
    %c0_i32_1 = arith.constant 0 : i32
    return %c0_i32, %c0_i32_0 : i32, i32
  }
  func.func @transform_3(%arg0: i32, %arg1: i32) -> (i32, i32) {
    %c0_i32 = arith.constant 0 : i32
    %c0_i32_0 = arith.constant 0 : i32
    return %arg0, %c0_i32 : i32, i32
  }
  func.func @transform_4(%arg0: i32, %arg1: i32) -> (i32, i32) {
    %c0_i32 = arith.constant 0 : i32
    %c0_i32_0 = arith.constant 0 : i32
    return %arg0, %c0_i32 : i32, i32
  }
}

module attributes {stable_mosaic.version = 11 : i64} {
  func.func @_matmul_bias_kernel(%arg0: i32, %arg1: i32, %arg2: i32, %arg3: memref<128x384xbf16, #tpu.memory_space<vmem>>, %arg4: memref<384x128xbf16, #tpu.memory_space<vmem>>, %arg5: memref<1x128xf32, #tpu.memory_space<vmem>>, %arg6: memref<128x128xbf16, #tpu.memory_space<vmem>>, %arg7: memref<128x128xf32, #tpu.memory_space<vmem>>) attributes {dimension_semantics = [#tpu.dimension_semantics<parallel>, #tpu.dimension_semantics<parallel>, #tpu.dimension_semantics<arbitrary>], iteration_bounds = array<i64: 1, 1, 3>, scalar_prefetch = 0 : i64, scratch_operands = 1 : i64, tpu.core_type = #tpu.core_type<tc>, window_params = [{transform_indices = @transform_0, window_bounds = array<i64: 128, 384>}, {transform_indices = @transform_1, window_bounds = array<i64: 384, 128>}, {transform_indices = @transform_2, window_bounds = array<i64: 1, 128>}, {transform_indices = @transform_3, window_bounds = array<i64: 128, 128>}]} {
    %c0_i32 = arith.constant 0 : i32
    %0 = arith.cmpi eq, %arg2, %c0_i32 : i32
    %1 = arith.extui %0 : i1 to i32
    %c0_i32_0 = arith.constant 0 : i32
    %2 = arith.cmpi ne, %1, %c0_i32_0 : i32
    scf.if %2 {
      %c0_9 = arith.constant 0 : index
      %c0_10 = arith.constant 0 : index
      %12 = vector.load %arg5[%c0_9, %c0_10] : memref<1x128xf32, #tpu.memory_space<vmem>>, vector<1x128xf32>
      %13 = vector.shape_cast %12 : vector<1x128xf32> to vector<1x128xf32>
      %14 = vector.broadcast %13 : vector<1x128xf32> to vector<128x128xf32>
      %c0_11 = arith.constant 0 : index
      %c0_12 = arith.constant 0 : index
      %15 = vector.load %arg7[%c0_11, %c0_12] : memref<128x128xf32, #tpu.memory_space<vmem>>, vector<128x128xf32>
      tpu.vector_store %arg7[%c0_11, %c0_12], %14 {strides = array<i32>} : memref<128x128xf32, #tpu.memory_space<vmem>>, vector<128x128xf32>,
    } else {
    }
    %c0 = arith.constant 0 : index
    %c0_1 = arith.constant 0 : index
    %3 = vector.load %arg7[%c0, %c0_1] : memref<128x128xf32, #tpu.memory_space<vmem>>, vector<128x128xf32>
    %c0_2 = arith.constant 0 : index
    %c0_3 = arith.constant 0 : index
    %4 = vector.load %arg3[%c0_2, %c0_3] : memref<128x384xbf16, #tpu.memory_space<vmem>>, vector<128x384xbf16>
    %c0_4 = arith.constant 0 : index
    %c0_5 = arith.constant 0 : index
    %5 = vector.load %arg4[%c0_4, %c0_5] : memref<384x128xbf16, #tpu.memory_space<vmem>>, vector<384x128xbf16>
    %cst = arith.constant dense<0.000000e+00> : vector<128x128xf32>
    %6 = tpu.matmul %4, %5, %cst {dimension_numbers = #tpu.dot_dimension_numbers<[1], [0], [0], [1], [0, 0, 1, 1], [], []>} : vector<128x384xbf16>, vector<384x128xbf16>, vector<128x128xf32> -> vector<128x128xf32>
    %7 = arith.addf %3, %6 : vector<128x128xf32>
    %c0_6 = arith.constant 0 : index
    %c0_7 = arith.constant 0 : index
    %8 = vector.load %arg7[%c0_6, %c0_7] : memref<128x128xf32, #tpu.memory_space<vmem>>, vector<128x128xf32>
    tpu.vector_store %arg7[%c0_6, %c0_7], %7 {strides = array<i32>} : memref<128x128xf32, #tpu.memory_space<vmem>>, vector<128x128xf32>,
    %c2_i32 = arith.constant 2 : i32
    %9 = arith.cmpi eq, %arg2, %c2_i32 : i32
    %10 = arith.extui %9 : i1 to i32
    %c0_i32_8 = arith.constant 0 : i32
    %11 = arith.cmpi ne, %10, %c0_i32_8 : i32
    scf.if %11 {
      %c0_9 = arith.constant 0 : index
      %c0_10 = arith.constant 0 : index
      %12 = vector.load %arg7[%c0_9, %c0_10] : memref<128x128xf32, #tpu.memory_space<vmem>>, vector<128x128xf32>
      %cst_11 = arith.constant 0.000000e+00 : f32
      %13 = vector.broadcast %cst_11 : f32 to vector<128x128xf32>
      %14 = arith.maximumf %12, %13 : vector<128x128xf32>
      %15 = arith.truncf %14 : vector<128x128xf32> to vector<128x128xbf16>
      %c0_12 = arith.constant 0 : index
      %c0_13 = arith.constant 0 : index
      %16 = vector.load %arg6[%c0_12, %c0_13] : memref<128x128xbf16, #tpu.memory_space<vmem>>, vector<128x128xbf16>
      tpu.vector_store %arg6[%c0_12, %c0_13], %15 {strides = array<i32>} : memref<128x128xbf16, #tpu.memory_space<vmem>>, vector<128x128xbf16>,
    } else {
    }
    return
  }
  func.func @transform_0(%arg0: i32, %arg1: i32, %arg2: i32) -> (i32, i32) {
    %c0_i32 = arith.constant 0 : i32
    return %arg0, %arg2 : i32, i32
  }
  func.func @transform_1(%arg0: i32, %arg1: i32, %arg2: i32) -> (i32, i32) {
    %c0_i32 = arith.constant 0 : i32
    return %arg2, %arg1 : i32, i32
  }
  func.func @transform_2(%arg0: i32, %arg1: i32, %arg2: i32) -> (i32, i32) {
    %c0_i32 = arith.constant 0 : i32
    %c0_i32_0 = arith.constant 0 : i32
    return %c0_i32, %arg1 : i32, i32
  }
  func.func @transform_3(%arg0: i32, %arg1: i32, %arg2: i32) -> (i32, i32) {
    %c0_i32 = arith.constant 0 : i32
    return %arg0, %arg1 : i32, i32
  }
}

module attributes {stable_mosaic.version = 11 : i64} {
  func.func @_matmul_bias_kernel(%arg0: i32, %arg1: i32, %arg2: i32, %arg3: memref<128x128xbf16, #tpu.memory_space<vmem>>, %arg4: memref<128x128xbf16, #tpu.memory_space<vmem>>, %arg5: memref<1x128xf32, #tpu.memory_space<vmem>>, %arg6: memref<128x128xbf16, #tpu.memory_space<vmem>>, %arg7: memref<128x128xf32, #tpu.memory_space<vmem>>) attributes {dimension_semantics = [#tpu.dimension_semantics<parallel>, #tpu.dimension_semantics<parallel>, #tpu.dimension_semantics<arbitrary>], iteration_bounds = array<i64: 1, 1, 1>, scalar_prefetch = 0 : i64, scratch_operands = 1 : i64, tpu.core_type = #tpu.core_type<tc>, window_params = [{transform_indices = @transform_0, window_bounds = array<i64: 128, 128>}, {transform_indices = @transform_1, window_bounds = array<i64: 128, 128>}, {transform_indices = @transform_2, window_bounds = array<i64: 1, 128>}, {transform_indices = @transform_3, window_bounds = array<i64: 128, 128>}]} {
    %c0_i32 = arith.constant 0 : i32
    %0 = arith.cmpi eq, %arg2, %c0_i32 : i32
    %1 = arith.extui %0 : i1 to i32
    %c0_i32_0 = arith.constant 0 : i32
    %2 = arith.cmpi ne, %1, %c0_i32_0 : i32
    scf.if %2 {
      %c0_10 = arith.constant 0 : index
      %c0_11 = arith.constant 0 : index
      %12 = vector.load %arg5[%c0_10, %c0_11] : memref<1x128xf32, #tpu.memory_space<vmem>>, vector<1x128xf32>
      %13 = vector.shape_cast %12 : vector<1x128xf32> to vector<1x128xf32>
      %14 = vector.broadcast %13 : vector<1x128xf32> to vector<128x128xf32>
      %c0_12 = arith.constant 0 : index
      %c0_13 = arith.constant 0 : index
      %15 = vector.load %arg7[%c0_12, %c0_13] : memref<128x128xf32, #tpu.memory_space<vmem>>, vector<128x128xf32>
      tpu.vector_store %arg7[%c0_12, %c0_13], %14 {strides = array<i32>} : memref<128x128xf32, #tpu.memory_space<vmem>>, vector<128x128xf32>,
    } else {
    }
    %c0 = arith.constant 0 : index
    %c0_1 = arith.constant 0 : index
    %3 = vector.load %arg7[%c0, %c0_1] : memref<128x128xf32, #tpu.memory_space<vmem>>, vector<128x128xf32>
    %c0_2 = arith.constant 0 : index
    %c0_3 = arith.constant 0 : index
    %4 = vector.load %arg3[%c0_2, %c0_3] : memref<128x128xbf16, #tpu.memory_space<vmem>>, vector<128x128xbf16>
    %c0_4 = arith.constant 0 : index
    %c0_5 = arith.constant 0 : index
    %5 = vector.load %arg4[%c0_4, %c0_5] : memref<128x128xbf16, #tpu.memory_space<vmem>>, vector<128x128xbf16>
    %cst = arith.constant dense<0.000000e+00> : vector<128x128xf32>
    %6 = tpu.matmul %4, %5, %cst {dimension_numbers = #tpu.dot_dimension_numbers<[1], [0], [0], [1], [0, 0, 1, 1], [], []>} : vector<128x128xbf16>, vector<128x128xbf16>, vector<128x128xf32> -> vector<128x128xf32>
    %7 = arith.addf %3, %6 : vector<128x128xf32>
    %c0_6 = arith.constant 0 : index
    %c0_7 = arith.constant 0 : index
    %8 = vector.load %arg7[%c0_6, %c0_7] : memref<128x128xf32, #tpu.memory_space<vmem>>, vector<128x128xf32>
    tpu.vector_store %arg7[%c0_6, %c0_7], %7 {strides = array<i32>} : memref<128x128xf32, #tpu.memory_space<vmem>>, vector<128x128xf32>,
    %c0_i32_8 = arith.constant 0 : i32
    %9 = arith.cmpi eq, %arg2, %c0_i32_8 : i32
    %10 = arith.extui %9 : i1 to i32
    %c0_i32_9 = arith.constant 0 : i32
    %11 = arith.cmpi ne, %10, %c0_i32_9 : i32
    scf.if %11 {
      %c0_10 = arith.constant 0 : index
      %c0_11 = arith.constant 0 : index
      %12 = vector.load %arg7[%c0_10, %c0_11] : memref<128x128xf32, #tpu.memory_space<vmem>>, vector<128x128xf32>
      %13 = arith.truncf %12 : vector<128x128xf32> to vector<128x128xbf16>
      %c0_12 = arith.constant 0 : index
      %c0_13 = arith.constant 0 : index
      %14 = vector.load %arg6[%c0_12, %c0_13] : memref<128x128xbf16, #tpu.memory_space<vmem>>, vector<128x128xbf16>
      tpu.vector_store %arg6[%c0_12, %c0_13], %13 {strides = array<i32>} : memref<128x128xbf16, #tpu.memory_space<vmem>>, vector<128x128xbf16>,
    } else {
    }
    return
  }
  func.func @transform_0(%arg0: i32, %arg1: i32, %arg2: i32) -> (i32, i32) {
    %c0_i32 = arith.constant 0 : i32
    return %arg0, %arg2 : i32, i32
  }
  func.func @transform_1(%arg0: i32, %arg1: i32, %arg2: i32) -> (i32, i32) {
    %c0_i32 = arith.constant 0 : i32
    return %arg2, %arg1 : i32, i32
  }
  func.func @transform_2(%arg0: i32, %arg1: i32, %arg2: i32) -> (i32, i32) {
    %c0_i32 = arith.constant 0 : i32
    %c0_i32_0 = arith.constant 0 : i32
    return %c0_i32, %arg1 : i32, i32
  }
  func.func @transform_3(%arg0: i32, %arg1: i32, %arg2: i32) -> (i32, i32) {
    %c0_i32 = arith.constant 0 : i32
    return %arg0, %arg1 : i32, i32
  }
}

module attributes {stable_mosaic.version = 11 : i64} {
  func.func @_matmul_bias_kernel(%arg0: i32, %arg1: i32, %arg2: i32, %arg3: memref<32x128xbf16, #tpu.memory_space<vmem>>, %arg4: memref<128x128xbf16, #tpu.memory_space<vmem>>, %arg5: memref<1x128xf32, #tpu.memory_space<vmem>>, %arg6: memref<32x128xbf16, #tpu.memory_space<vmem>>, %arg7: memref<32x128xf32, #tpu.memory_space<vmem>>) attributes {dimension_semantics = [#tpu.dimension_semantics<parallel>, #tpu.dimension_semantics<parallel>, #tpu.dimension_semantics<arbitrary>], iteration_bounds = array<i64: 1, 1, 1>, scalar_prefetch = 0 : i64, scratch_operands = 1 : i64, tpu.core_type = #tpu.core_type<tc>, window_params = [{transform_indices = @transform_0, window_bounds = array<i64: 32, 128>}, {transform_indices = @transform_1, window_bounds = array<i64: 128, 128>}, {transform_indices = @transform_2, window_bounds = array<i64: 1, 128>}, {transform_indices = @transform_3, window_bounds = array<i64: 32, 128>}]} {
    %c0_i32 = arith.constant 0 : i32
    %0 = arith.cmpi eq, %arg2, %c0_i32 : i32
    %1 = arith.extui %0 : i1 to i32
    %c0_i32_0 = arith.constant 0 : i32
    %2 = arith.cmpi ne, %1, %c0_i32_0 : i32
    scf.if %2 {
      %c0_10 = arith.constant 0 : index
      %c0_11 = arith.constant 0 : index
      %12 = vector.load %arg5[%c0_10, %c0_11] : memref<1x128xf32, #tpu.memory_space<vmem>>, vector<1x128xf32>
      %13 = vector.shape_cast %12 : vector<1x128xf32> to vector<1x128xf32>
      %14 = vector.broadcast %13 : vector<1x128xf32> to vector<32x128xf32>
      %c0_12 = arith.constant 0 : index
      %c0_13 = arith.constant 0 : index
      %15 = vector.load %arg7[%c0_12, %c0_13] : memref<32x128xf32, #tpu.memory_space<vmem>>, vector<32x128xf32>
      tpu.vector_store %arg7[%c0_12, %c0_13], %14 {strides = array<i32>} : memref<32x128xf32, #tpu.memory_space<vmem>>, vector<32x128xf32>,
    } else {
    }
    %c0 = arith.constant 0 : index
    %c0_1 = arith.constant 0 : index
    %3 = vector.load %arg7[%c0, %c0_1] : memref<32x128xf32, #tpu.memory_space<vmem>>, vector<32x128xf32>
    %c0_2 = arith.constant 0 : index
    %c0_3 = arith.constant 0 : index
    %4 = vector.load %arg3[%c0_2, %c0_3] : memref<32x128xbf16, #tpu.memory_space<vmem>>, vector<32x128xbf16>
    %c0_4 = arith.constant 0 : index
    %c0_5 = arith.constant 0 : index
    %5 = vector.load %arg4[%c0_4, %c0_5] : memref<128x128xbf16, #tpu.memory_space<vmem>>, vector<128x128xbf16>
    %cst = arith.constant dense<0.000000e+00> : vector<32x128xf32>
    %6 = tpu.matmul %4, %5, %cst {dimension_numbers = #tpu.dot_dimension_numbers<[1], [0], [0], [1], [0, 0, 1, 1], [], []>} : vector<32x128xbf16>, vector<128x128xbf16>, vector<32x128xf32> -> vector<32x128xf32>
    %7 = arith.addf %3, %6 : vector<32x128xf32>
    %c0_6 = arith.constant 0 : index
    %c0_7 = arith.constant 0 : index
    %8 = vector.load %arg7[%c0_6, %c0_7] : memref<32x128xf32, #tpu.memory_space<vmem>>, vector<32x128xf32>
    tpu.vector_store %arg7[%c0_6, %c0_7], %7 {strides = array<i32>} : memref<32x128xf32, #tpu.memory_space<vmem>>, vector<32x128xf32>,
    %c0_i32_8 = arith.constant 0 : i32
    %9 = arith.cmpi eq, %arg2, %c0_i32_8 : i32
    %10 = arith.extui %9 : i1 to i32
    %c0_i32_9 = arith.constant 0 : i32
    %11 = arith.cmpi ne, %10, %c0_i32_9 : i32
    scf.if %11 {
      %c0_10 = arith.constant 0 : index
      %c0_11 = arith.constant 0 : index
      %12 = vector.load %arg7[%c0_10, %c0_11] : memref<32x128xf32, #tpu.memory_space<vmem>>, vector<32x128xf32>
      %13 = arith.truncf %12 : vector<32x128xf32> to vector<32x128xbf16>
      %c0_12 = arith.constant 0 : index
      %c0_13 = arith.constant 0 : index
      %14 = vector.load %arg6[%c0_12, %c0_13] : memref<32x128xbf16, #tpu.memory_space<vmem>>, vector<32x128xbf16>
      tpu.vector_store %arg6[%c0_12, %c0_13], %13 {strides = array<i32>} : memref<32x128xbf16, #tpu.memory_space<vmem>>, vector<32x128xbf16>,
    } else {
    }
    return
  }
  func.func @transform_0(%arg0: i32, %arg1: i32, %arg2: i32) -> (i32, i32) {
    %c0_i32 = arith.constant 0 : i32
    return %arg0, %arg2 : i32, i32
  }
  func.func @transform_1(%arg0: i32, %arg1: i32, %arg2: i32) -> (i32, i32) {
    %c0_i32 = arith.constant 0 : i32
    return %arg2, %arg1 : i32, i32
  }
  func.func @transform_2(%arg0: i32, %arg1: i32, %arg2: i32) -> (i32, i32) {
    %c0_i32 = arith.constant 0 : i32
    %c0_i32_0 = arith.constant 0 : i32
    return %c0_i32, %arg1 : i32, i32
  }
  func.func @transform_3(%arg0: i32, %arg1: i32, %arg2: i32) -> (i32, i32) {
    %c0_i32 = arith.constant 0 : i32
    return %arg0, %arg1 : i32, i32
  }
}

module attributes {stable_mosaic.version = 11 : i64} {
  func.func @_conv3_combine_kernel(%arg0: i32, %arg1: i32, %arg2: memref<32x128xbf16, #tpu.memory_space<vmem>>, %arg3: memref<128x128xbf16, #tpu.memory_space<vmem>>, %arg4: memref<1x128xf32, #tpu.memory_space<vmem>>, %arg5: memref<32x128xbf16, #tpu.memory_space<vmem>>, %arg6: memref<32x128xbf16, #tpu.memory_space<vmem>>, %arg7: memref<32x128xf32, #tpu.memory_space<vmem>>) attributes {dimension_semantics = [#tpu.dimension_semantics<parallel>, #tpu.dimension_semantics<arbitrary>], iteration_bounds = array<i64: 1, 1>, scalar_prefetch = 0 : i64, scratch_operands = 1 : i64, tpu.core_type = #tpu.core_type<tc>, window_params = [{transform_indices = @transform_0, window_bounds = array<i64: 32, 128>}, {transform_indices = @transform_1, window_bounds = array<i64: 128, 128>}, {pipeline_mode = #tpu.pipeline_mode<synchronous>, transform_indices = @transform_2, window_bounds = array<i64: 1, 128>}, {transform_indices = @transform_3, window_bounds = array<i64: 32, 128>}, {transform_indices = @transform_4, window_bounds = array<i64: 32, 128>}]} {
    %c0_i32 = arith.constant 0 : i32
    %0 = arith.cmpi eq, %arg1, %c0_i32 : i32
    %1 = arith.extui %0 : i1 to i32
    %c0_i32_0 = arith.constant 0 : i32
    %2 = arith.cmpi ne, %1, %c0_i32_0 : i32
    scf.if %2 {
      %c0_10 = arith.constant 0 : index
      %c0_11 = arith.constant 0 : index
      %12 = vector.load %arg4[%c0_10, %c0_11] : memref<1x128xf32, #tpu.memory_space<vmem>>, vector<1x128xf32>
      %13 = vector.shape_cast %12 : vector<1x128xf32> to vector<1x128xf32>
      %14 = vector.broadcast %13 : vector<1x128xf32> to vector<32x128xf32>
      %c0_12 = arith.constant 0 : index
      %c0_13 = arith.constant 0 : index
      %15 = vector.load %arg7[%c0_12, %c0_13] : memref<32x128xf32, #tpu.memory_space<vmem>>, vector<32x128xf32>
      tpu.vector_store %arg7[%c0_12, %c0_13], %14 {strides = array<i32>} : memref<32x128xf32, #tpu.memory_space<vmem>>, vector<32x128xf32>,
    } else {
    }
    %c0 = arith.constant 0 : index
    %c0_1 = arith.constant 0 : index
    %3 = vector.load %arg7[%c0, %c0_1] : memref<32x128xf32, #tpu.memory_space<vmem>>, vector<32x128xf32>
    %c0_2 = arith.constant 0 : index
    %c0_3 = arith.constant 0 : index
    %4 = vector.load %arg2[%c0_2, %c0_3] : memref<32x128xbf16, #tpu.memory_space<vmem>>, vector<32x128xbf16>
    %c0_4 = arith.constant 0 : index
    %c0_5 = arith.constant 0 : index
    %5 = vector.load %arg3[%c0_4, %c0_5] : memref<128x128xbf16, #tpu.memory_space<vmem>>, vector<128x128xbf16>
    %cst = arith.constant dense<0.000000e+00> : vector<32x128xf32>
    %6 = tpu.matmul %4, %5, %cst {dimension_numbers = #tpu.dot_dimension_numbers<[1], [0], [0], [1], [0, 0, 1, 1], [], []>} : vector<32x128xbf16>, vector<128x128xbf16>, vector<32x128xf32> -> vector<32x128xf32>
    %7 = arith.addf %3, %6 : vector<32x128xf32>
    %c0_6 = arith.constant 0 : index
    %c0_7 = arith.constant 0 : index
    %8 = vector.load %arg7[%c0_6, %c0_7] : memref<32x128xf32, #tpu.memory_space<vmem>>, vector<32x128xf32>
    tpu.vector_store %arg7[%c0_6, %c0_7], %7 {strides = array<i32>} : memref<32x128xf32, #tpu.memory_space<vmem>>, vector<32x128xf32>,
    %c0_i32_8 = arith.constant 0 : i32
    %9 = arith.cmpi eq, %arg1, %c0_i32_8 : i32
    %10 = arith.extui %9 : i1 to i32
    %c0_i32_9 = arith.constant 0 : i32
    %11 = arith.cmpi ne, %10, %c0_i32_9 : i32
    scf.if %11 {
      %c0_10 = arith.constant 0 : index
      %c0_11 = arith.constant 0 : index
      %12 = vector.load %arg7[%c0_10, %c0_11] : memref<32x128xf32, #tpu.memory_space<vmem>>, vector<32x128xf32>
      %c0_12 = arith.constant 0 : index
      %c0_13 = arith.constant 0 : index
      %13 = vector.load %arg5[%c0_12, %c0_13] : memref<32x128xbf16, #tpu.memory_space<vmem>>, vector<32x128xbf16>
      %14 = arith.extf %13 : vector<32x128xbf16> to vector<32x128xf32>
      %c4_i32 = arith.constant 4 : i32
      %15 = tpu.dynamic_rotate %12 by %c4_i32 dim 1 : vector<32x128xf32>, i32 -> vector<32x128xf32>
      %16 = tpu.iota {dimensions = array<i32: 1>} : vector<32x128xi32>
      %c32_i32 = arith.constant 32 : i32
      %17 = vector.broadcast %c32_i32 : i32 to vector<32x128xi32>
      %18 = arith.cmpi slt, %16, %17 : vector<32x128xi32>
      %19 = arith.addf %14, %12 : vector<32x128xf32>
      %c36_i32 = arith.constant 36 : i32
      %20 = vector.broadcast %c36_i32 : i32 to vector<32x128xi32>
      %21 = arith.cmpi slt, %16, %20 : vector<32x128xi32>
      %c40_i32 = arith.constant 40 : i32
      %22 = vector.broadcast %c40_i32 : i32 to vector<32x128xi32>
      %23 = arith.cmpi slt, %16, %22 : vector<32x128xi32>
      %cst_14 = arith.constant 0.000000e+00 : f32
      %24 = vector.broadcast %cst_14 : f32 to vector<32x128xf32>
      %25 = arith.select %23, %15, %24 : vector<32x128xi1>, vector<32x128xf32>
      %26 = arith.select %21, %14, %25 : vector<32x128xi1>, vector<32x128xf32>
      %27 = arith.select %18, %19, %26 : vector<32x128xi1>, vector<32x128xf32>
      %cst_15 = arith.constant 0.000000e+00 : f32
      %28 = vector.broadcast %cst_15 : f32 to vector<32x128xf32>
      %29 = arith.maximumf %27, %28 : vector<32x128xf32>
      %30 = arith.truncf %29 : vector<32x128xf32> to vector<32x128xbf16>
      %c0_16 = arith.constant 0 : index
      %c0_17 = arith.constant 0 : index
      %31 = vector.load %arg6[%c0_16, %c0_17] : memref<32x128xbf16, #tpu.memory_space<vmem>>, vector<32x128xbf16>
      tpu.vector_store %arg6[%c0_16, %c0_17], %30 {strides = array<i32>} : memref<32x128xbf16, #tpu.memory_space<vmem>>, vector<32x128xbf16>,
    } else {
    }
    return
  }
  func.func @transform_0(%arg0: i32, %arg1: i32) -> (i32, i32) {
    %c0_i32 = arith.constant 0 : i32
    return %arg0, %arg1 : i32, i32
  }
  func.func @transform_1(%arg0: i32, %arg1: i32) -> (i32, i32) {
    %c0_i32 = arith.constant 0 : i32
    %c0_i32_0 = arith.constant 0 : i32
    return %arg1, %c0_i32 : i32, i32
  }
  func.func @transform_2(%arg0: i32, %arg1: i32) -> (i32, i32) {
    %c0_i32 = arith.constant 0 : i32
    %c0_i32_0 = arith.constant 0 : i32
    %c0_i32_1 = arith.constant 0 : i32
    return %c0_i32, %c0_i32_0 : i32, i32
  }
  func.func @transform_3(%arg0: i32, %arg1: i32) -> (i32, i32) {
    %c0_i32 = arith.constant 0 : i32
    %c0_i32_0 = arith.constant 0 : i32
    return %arg0, %c0_i32 : i32, i32
  }
  func.func @transform_4(%arg0: i32, %arg1: i32) -> (i32, i32) {
    %c0_i32 = arith.constant 0 : i32
    %c0_i32_0 = arith.constant 0 : i32
    return %arg0, %c0_i32 : i32, i32
  }
}

module attributes {stable_mosaic.version = 11 : i64} {
  func.func @_matmul_bias_kernel(%arg0: i32, %arg1: i32, %arg2: i32, %arg3: memref<32x384xbf16, #tpu.memory_space<vmem>>, %arg4: memref<384x128xbf16, #tpu.memory_space<vmem>>, %arg5: memref<1x128xf32, #tpu.memory_space<vmem>>, %arg6: memref<32x128xbf16, #tpu.memory_space<vmem>>, %arg7: memref<32x128xf32, #tpu.memory_space<vmem>>) attributes {dimension_semantics = [#tpu.dimension_semantics<parallel>, #tpu.dimension_semantics<parallel>, #tpu.dimension_semantics<arbitrary>], iteration_bounds = array<i64: 1, 1, 3>, scalar_prefetch = 0 : i64, scratch_operands = 1 : i64, tpu.core_type = #tpu.core_type<tc>, window_params = [{transform_indices = @transform_0, window_bounds = array<i64: 32, 384>}, {transform_indices = @transform_1, window_bounds = array<i64: 384, 128>}, {transform_indices = @transform_2, window_bounds = array<i64: 1, 128>}, {transform_indices = @transform_3, window_bounds = array<i64: 32, 128>}]} {
    %c0_i32 = arith.constant 0 : i32
    %0 = arith.cmpi eq, %arg2, %c0_i32 : i32
    %1 = arith.extui %0 : i1 to i32
    %c0_i32_0 = arith.constant 0 : i32
    %2 = arith.cmpi ne, %1, %c0_i32_0 : i32
    scf.if %2 {
      %c0_9 = arith.constant 0 : index
      %c0_10 = arith.constant 0 : index
      %12 = vector.load %arg5[%c0_9, %c0_10] : memref<1x128xf32, #tpu.memory_space<vmem>>, vector<1x128xf32>
      %13 = vector.shape_cast %12 : vector<1x128xf32> to vector<1x128xf32>
      %14 = vector.broadcast %13 : vector<1x128xf32> to vector<32x128xf32>
      %c0_11 = arith.constant 0 : index
      %c0_12 = arith.constant 0 : index
      %15 = vector.load %arg7[%c0_11, %c0_12] : memref<32x128xf32, #tpu.memory_space<vmem>>, vector<32x128xf32>
      tpu.vector_store %arg7[%c0_11, %c0_12], %14 {strides = array<i32>} : memref<32x128xf32, #tpu.memory_space<vmem>>, vector<32x128xf32>,
    } else {
    }
    %c0 = arith.constant 0 : index
    %c0_1 = arith.constant 0 : index
    %3 = vector.load %arg7[%c0, %c0_1] : memref<32x128xf32, #tpu.memory_space<vmem>>, vector<32x128xf32>
    %c0_2 = arith.constant 0 : index
    %c0_3 = arith.constant 0 : index
    %4 = vector.load %arg3[%c0_2, %c0_3] : memref<32x384xbf16, #tpu.memory_space<vmem>>, vector<32x384xbf16>
    %c0_4 = arith.constant 0 : index
    %c0_5 = arith.constant 0 : index
    %5 = vector.load %arg4[%c0_4, %c0_5] : memref<384x128xbf16, #tpu.memory_space<vmem>>, vector<384x128xbf16>
    %cst = arith.constant dense<0.000000e+00> : vector<32x128xf32>
    %6 = tpu.matmul %4, %5, %cst {dimension_numbers = #tpu.dot_dimension_numbers<[1], [0], [0], [1], [0, 0, 1, 1], [], []>} : vector<32x384xbf16>, vector<384x128xbf16>, vector<32x128xf32> -> vector<32x128xf32>
    %7 = arith.addf %3, %6 : vector<32x128xf32>
    %c0_6 = arith.constant 0 : index
    %c0_7 = arith.constant 0 : index
    %8 = vector.load %arg7[%c0_6, %c0_7] : memref<32x128xf32, #tpu.memory_space<vmem>>, vector<32x128xf32>
    tpu.vector_store %arg7[%c0_6, %c0_7], %7 {strides = array<i32>} : memref<32x128xf32, #tpu.memory_space<vmem>>, vector<32x128xf32>,
    %c2_i32 = arith.constant 2 : i32
    %9 = arith.cmpi eq, %arg2, %c2_i32 : i32
    %10 = arith.extui %9 : i1 to i32
    %c0_i32_8 = arith.constant 0 : i32
    %11 = arith.cmpi ne, %10, %c0_i32_8 : i32
    scf.if %11 {
      %c0_9 = arith.constant 0 : index
      %c0_10 = arith.constant 0 : index
      %12 = vector.load %arg7[%c0_9, %c0_10] : memref<32x128xf32, #tpu.memory_space<vmem>>, vector<32x128xf32>
      %cst_11 = arith.constant 0.000000e+00 : f32
      %13 = vector.broadcast %cst_11 : f32 to vector<32x128xf32>
      %14 = arith.maximumf %12, %13 : vector<32x128xf32>
      %15 = arith.truncf %14 : vector<32x128xf32> to vector<32x128xbf16>
      %c0_12 = arith.constant 0 : index
      %c0_13 = arith.constant 0 : index
      %16 = vector.load %arg6[%c0_12, %c0_13] : memref<32x128xbf16, #tpu.memory_space<vmem>>, vector<32x128xbf16>
      tpu.vector_store %arg6[%c0_12, %c0_13], %15 {strides = array<i32>} : memref<32x128xbf16, #tpu.memory_space<vmem>>, vector<32x128xbf16>,
    } else {
    }
    return
  }
  func.func @transform_0(%arg0: i32, %arg1: i32, %arg2: i32) -> (i32, i32) {
    %c0_i32 = arith.constant 0 : i32
    return %arg0, %arg2 : i32, i32
  }
  func.func @transform_1(%arg0: i32, %arg1: i32, %arg2: i32) -> (i32, i32) {
    %c0_i32 = arith.constant 0 : i32
    return %arg2, %arg1 : i32, i32
  }
  func.func @transform_2(%arg0: i32, %arg1: i32, %arg2: i32) -> (i32, i32) {
    %c0_i32 = arith.constant 0 : i32
    %c0_i32_0 = arith.constant 0 : i32
    return %c0_i32, %arg1 : i32, i32
  }
  func.func @transform_3(%arg0: i32, %arg1: i32, %arg2: i32) -> (i32, i32) {
    %c0_i32 = arith.constant 0 : i32
    return %arg0, %arg1 : i32, i32
  }
}

module attributes {stable_mosaic.version = 11 : i64} {
  func.func @_matmul_bias_kernel(%arg0: i32, %arg1: i32, %arg2: i32, %arg3: memref<32x128xbf16, #tpu.memory_space<vmem>>, %arg4: memref<128x128xbf16, #tpu.memory_space<vmem>>, %arg5: memref<1x128xf32, #tpu.memory_space<vmem>>, %arg6: memref<32x128xbf16, #tpu.memory_space<vmem>>, %arg7: memref<32x128xf32, #tpu.memory_space<vmem>>) attributes {dimension_semantics = [#tpu.dimension_semantics<parallel>, #tpu.dimension_semantics<parallel>, #tpu.dimension_semantics<arbitrary>], iteration_bounds = array<i64: 1, 1, 1>, scalar_prefetch = 0 : i64, scratch_operands = 1 : i64, tpu.core_type = #tpu.core_type<tc>, window_params = [{transform_indices = @transform_0, window_bounds = array<i64: 32, 128>}, {transform_indices = @transform_1, window_bounds = array<i64: 128, 128>}, {transform_indices = @transform_2, window_bounds = array<i64: 1, 128>}, {transform_indices = @transform_3, window_bounds = array<i64: 32, 128>}]} {
    %c0_i32 = arith.constant 0 : i32
    %0 = arith.cmpi eq, %arg2, %c0_i32 : i32
    %1 = arith.extui %0 : i1 to i32
    %c0_i32_0 = arith.constant 0 : i32
    %2 = arith.cmpi ne, %1, %c0_i32_0 : i32
    scf.if %2 {
      %c0_10 = arith.constant 0 : index
      %c0_11 = arith.constant 0 : index
      %12 = vector.load %arg5[%c0_10, %c0_11] : memref<1x128xf32, #tpu.memory_space<vmem>>, vector<1x128xf32>
      %13 = vector.shape_cast %12 : vector<1x128xf32> to vector<1x128xf32>
      %14 = vector.broadcast %13 : vector<1x128xf32> to vector<32x128xf32>
      %c0_12 = arith.constant 0 : index
      %c0_13 = arith.constant 0 : index
      %15 = vector.load %arg7[%c0_12, %c0_13] : memref<32x128xf32, #tpu.memory_space<vmem>>, vector<32x128xf32>
      tpu.vector_store %arg7[%c0_12, %c0_13], %14 {strides = array<i32>} : memref<32x128xf32, #tpu.memory_space<vmem>>, vector<32x128xf32>,
    } else {
    }
    %c0 = arith.constant 0 : index
    %c0_1 = arith.constant 0 : index
    %3 = vector.load %arg7[%c0, %c0_1] : memref<32x128xf32, #tpu.memory_space<vmem>>, vector<32x128xf32>
    %c0_2 = arith.constant 0 : index
    %c0_3 = arith.constant 0 : index
    %4 = vector.load %arg3[%c0_2, %c0_3] : memref<32x128xbf16, #tpu.memory_space<vmem>>, vector<32x128xbf16>
    %c0_4 = arith.constant 0 : index
    %c0_5 = arith.constant 0 : index
    %5 = vector.load %arg4[%c0_4, %c0_5] : memref<128x128xbf16, #tpu.memory_space<vmem>>, vector<128x128xbf16>
    %cst = arith.constant dense<0.000000e+00> : vector<32x128xf32>
    %6 = tpu.matmul %4, %5, %cst {dimension_numbers = #tpu.dot_dimension_numbers<[1], [0], [0], [1], [0, 0, 1, 1], [], []>} : vector<32x128xbf16>, vector<128x128xbf16>, vector<32x128xf32> -> vector<32x128xf32>
    %7 = arith.addf %3, %6 : vector<32x128xf32>
    %c0_6 = arith.constant 0 : index
    %c0_7 = arith.constant 0 : index
    %8 = vector.load %arg7[%c0_6, %c0_7] : memref<32x128xf32, #tpu.memory_space<vmem>>, vector<32x128xf32>
    tpu.vector_store %arg7[%c0_6, %c0_7], %7 {strides = array<i32>} : memref<32x128xf32, #tpu.memory_space<vmem>>, vector<32x128xf32>,
    %c0_i32_8 = arith.constant 0 : i32
    %9 = arith.cmpi eq, %arg2, %c0_i32_8 : i32
    %10 = arith.extui %9 : i1 to i32
    %c0_i32_9 = arith.constant 0 : i32
    %11 = arith.cmpi ne, %10, %c0_i32_9 : i32
    scf.if %11 {
      %c0_10 = arith.constant 0 : index
      %c0_11 = arith.constant 0 : index
      %12 = vector.load %arg7[%c0_10, %c0_11] : memref<32x128xf32, #tpu.memory_space<vmem>>, vector<32x128xf32>
      %cst_12 = arith.constant 0.000000e+00 : f32
      %13 = vector.broadcast %cst_12 : f32 to vector<32x128xf32>
      %14 = arith.maximumf %12, %13 : vector<32x128xf32>
      %15 = arith.truncf %14 : vector<32x128xf32> to vector<32x128xbf16>
      %c0_13 = arith.constant 0 : index
      %c0_14 = arith.constant 0 : index
      %16 = vector.load %arg6[%c0_13, %c0_14] : memref<32x128xbf16, #tpu.memory_space<vmem>>, vector<32x128xbf16>
      tpu.vector_store %arg6[%c0_13, %c0_14], %15 {strides = array<i32>} : memref<32x128xbf16, #tpu.memory_space<vmem>>, vector<32x128xbf16>,
    } else {
    }
    return
  }
  func.func @transform_0(%arg0: i32, %arg1: i32, %arg2: i32) -> (i32, i32) {
    %c0_i32 = arith.constant 0 : i32
    return %arg0, %arg2 : i32, i32
  }
  func.func @transform_1(%arg0: i32, %arg1: i32, %arg2: i32) -> (i32, i32) {
    %c0_i32 = arith.constant 0 : i32
    return %arg2, %arg1 : i32, i32
  }
  func.func @transform_2(%arg0: i32, %arg1: i32, %arg2: i32) -> (i32, i32) {
    %c0_i32 = arith.constant 0 : i32
    %c0_i32_0 = arith.constant 0 : i32
    return %c0_i32, %arg1 : i32, i32
  }
  func.func @transform_3(%arg0: i32, %arg1: i32, %arg2: i32) -> (i32, i32) {
    %c0_i32 = arith.constant 0 : i32
    return %arg0, %arg1 : i32, i32
  }
}

module attributes {stable_mosaic.version = 11 : i64} {
  func.func @_conv3_combine_kernel(%arg0: i32, %arg1: i32, %arg2: memref<32x128xbf16, #tpu.memory_space<vmem>>, %arg3: memref<128x128xbf16, #tpu.memory_space<vmem>>, %arg4: memref<1x128xf32, #tpu.memory_space<vmem>>, %arg5: memref<32x128xbf16, #tpu.memory_space<vmem>>, %arg6: memref<32x128xbf16, #tpu.memory_space<vmem>>, %arg7: memref<32x128xf32, #tpu.memory_space<vmem>>) attributes {dimension_semantics = [#tpu.dimension_semantics<parallel>, #tpu.dimension_semantics<arbitrary>], iteration_bounds = array<i64: 1, 1>, scalar_prefetch = 0 : i64, scratch_operands = 1 : i64, tpu.core_type = #tpu.core_type<tc>, window_params = [{transform_indices = @transform_0, window_bounds = array<i64: 32, 128>}, {transform_indices = @transform_1, window_bounds = array<i64: 128, 128>}, {pipeline_mode = #tpu.pipeline_mode<synchronous>, transform_indices = @transform_2, window_bounds = array<i64: 1, 128>}, {transform_indices = @transform_3, window_bounds = array<i64: 32, 128>}, {transform_indices = @transform_4, window_bounds = array<i64: 32, 128>}]} {
    %c0_i32 = arith.constant 0 : i32
    %0 = arith.cmpi eq, %arg1, %c0_i32 : i32
    %1 = arith.extui %0 : i1 to i32
    %c0_i32_0 = arith.constant 0 : i32
    %2 = arith.cmpi ne, %1, %c0_i32_0 : i32
    scf.if %2 {
      %c0_10 = arith.constant 0 : index
      %c0_11 = arith.constant 0 : index
      %12 = vector.load %arg4[%c0_10, %c0_11] : memref<1x128xf32, #tpu.memory_space<vmem>>, vector<1x128xf32>
      %13 = vector.shape_cast %12 : vector<1x128xf32> to vector<1x128xf32>
      %14 = vector.broadcast %13 : vector<1x128xf32> to vector<32x128xf32>
      %c0_12 = arith.constant 0 : index
      %c0_13 = arith.constant 0 : index
      %15 = vector.load %arg7[%c0_12, %c0_13] : memref<32x128xf32, #tpu.memory_space<vmem>>, vector<32x128xf32>
      tpu.vector_store %arg7[%c0_12, %c0_13], %14 {strides = array<i32>} : memref<32x128xf32, #tpu.memory_space<vmem>>, vector<32x128xf32>,
    } else {
    }
    %c0 = arith.constant 0 : index
    %c0_1 = arith.constant 0 : index
    %3 = vector.load %arg7[%c0, %c0_1] : memref<32x128xf32, #tpu.memory_space<vmem>>, vector<32x128xf32>
    %c0_2 = arith.constant 0 : index
    %c0_3 = arith.constant 0 : index
    %4 = vector.load %arg2[%c0_2, %c0_3] : memref<32x128xbf16, #tpu.memory_space<vmem>>, vector<32x128xbf16>
    %c0_4 = arith.constant 0 : index
    %c0_5 = arith.constant 0 : index
    %5 = vector.load %arg3[%c0_4, %c0_5] : memref<128x128xbf16, #tpu.memory_space<vmem>>, vector<128x128xbf16>
    %cst = arith.constant dense<0.000000e+00> : vector<32x128xf32>
    %6 = tpu.matmul %4, %5, %cst {dimension_numbers = #tpu.dot_dimension_numbers<[1], [0], [0], [1], [0, 0, 1, 1], [], []>} : vector<32x128xbf16>, vector<128x128xbf16>, vector<32x128xf32> -> vector<32x128xf32>
    %7 = arith.addf %3, %6 : vector<32x128xf32>
    %c0_6 = arith.constant 0 : index
    %c0_7 = arith.constant 0 : index
    %8 = vector.load %arg7[%c0_6, %c0_7] : memref<32x128xf32, #tpu.memory_space<vmem>>, vector<32x128xf32>
    tpu.vector_store %arg7[%c0_6, %c0_7], %7 {strides = array<i32>} : memref<32x128xf32, #tpu.memory_space<vmem>>, vector<32x128xf32>,
    %c0_i32_8 = arith.constant 0 : i32
    %9 = arith.cmpi eq, %arg1, %c0_i32_8 : i32
    %10 = arith.extui %9 : i1 to i32
    %c0_i32_9 = arith.constant 0 : i32
    %11 = arith.cmpi ne, %10, %c0_i32_9 : i32
    scf.if %11 {
      %c0_10 = arith.constant 0 : index
      %c0_11 = arith.constant 0 : index
      %12 = vector.load %arg7[%c0_10, %c0_11] : memref<32x128xf32, #tpu.memory_space<vmem>>, vector<32x128xf32>
      %c0_12 = arith.constant 0 : index
      %c0_13 = arith.constant 0 : index
      %13 = vector.load %arg5[%c0_12, %c0_13] : memref<32x128xbf16, #tpu.memory_space<vmem>>, vector<32x128xbf16>
      %14 = arith.extf %13 : vector<32x128xbf16> to vector<32x128xf32>
      %c8_i32 = arith.constant 8 : i32
      %15 = tpu.dynamic_rotate %12 by %c8_i32 dim 1 : vector<32x128xf32>, i32 -> vector<32x128xf32>
      %16 = tpu.iota {dimensions = array<i32: 1>} : vector<32x128xi32>
      %c32_i32 = arith.constant 32 : i32
      %17 = vector.broadcast %c32_i32 : i32 to vector<32x128xi32>
      %18 = arith.cmpi slt, %16, %17 : vector<32x128xi32>
      %19 = arith.addf %14, %12 : vector<32x128xf32>
      %c40_i32 = arith.constant 40 : i32
      %20 = vector.broadcast %c40_i32 : i32 to vector<32x128xi32>
      %21 = arith.cmpi slt, %16, %20 : vector<32x128xi32>
      %c44_i32 = arith.constant 44 : i32
      %22 = vector.broadcast %c44_i32 : i32 to vector<32x128xi32>
      %23 = arith.cmpi slt, %16, %22 : vector<32x128xi32>
      %cst_14 = arith.constant 0.000000e+00 : f32
      %24 = vector.broadcast %cst_14 : f32 to vector<32x128xf32>
      %25 = arith.select %23, %15, %24 : vector<32x128xi1>, vector<32x128xf32>
      %26 = arith.select %21, %14, %25 : vector<32x128xi1>, vector<32x128xf32>
      %27 = arith.select %18, %19, %26 : vector<32x128xi1>, vector<32x128xf32>
      %cst_15 = arith.constant 0.000000e+00 : f32
      %28 = vector.broadcast %cst_15 : f32 to vector<32x128xf32>
      %29 = arith.maximumf %27, %28 : vector<32x128xf32>
      %30 = arith.truncf %29 : vector<32x128xf32> to vector<32x128xbf16>
      %c0_16 = arith.constant 0 : index
      %c0_17 = arith.constant 0 : index
      %31 = vector.load %arg6[%c0_16, %c0_17] : memref<32x128xbf16, #tpu.memory_space<vmem>>, vector<32x128xbf16>
      tpu.vector_store %arg6[%c0_16, %c0_17], %30 {strides = array<i32>} : memref<32x128xbf16, #tpu.memory_space<vmem>>, vector<32x128xbf16>,
    } else {
    }
    return
  }
  func.func @transform_0(%arg0: i32, %arg1: i32) -> (i32, i32) {
    %c0_i32 = arith.constant 0 : i32
    return %arg0, %arg1 : i32, i32
  }
  func.func @transform_1(%arg0: i32, %arg1: i32) -> (i32, i32) {
    %c0_i32 = arith.constant 0 : i32
    %c0_i32_0 = arith.constant 0 : i32
    return %arg1, %c0_i32 : i32, i32
  }
  func.func @transform_2(%arg0: i32, %arg1: i32) -> (i32, i32) {
    %c0_i32 = arith.constant 0 : i32
    %c0_i32_0 = arith.constant 0 : i32
    %c0_i32_1 = arith.constant 0 : i32
    return %c0_i32, %c0_i32_0 : i32, i32
  }
  func.func @transform_3(%arg0: i32, %arg1: i32) -> (i32, i32) {
    %c0_i32 = arith.constant 0 : i32
    %c0_i32_0 = arith.constant 0 : i32
    return %arg0, %c0_i32 : i32, i32
  }
  func.func @transform_4(%arg0: i32, %arg1: i32) -> (i32, i32) {
    %c0_i32 = arith.constant 0 : i32
    %c0_i32_0 = arith.constant 0 : i32
    return %arg0, %c0_i32 : i32, i32
  }
}

module attributes {stable_mosaic.version = 11 : i64} {
  func.func @_matmul_bias_kernel(%arg0: i32, %arg1: i32, %arg2: i32, %arg3: memref<16x384xbf16, #tpu.memory_space<vmem>>, %arg4: memref<384x128xbf16, #tpu.memory_space<vmem>>, %arg5: memref<1x128xf32, #tpu.memory_space<vmem>>, %arg6: memref<16x128xbf16, #tpu.memory_space<vmem>>, %arg7: memref<16x128xf32, #tpu.memory_space<vmem>>) attributes {dimension_semantics = [#tpu.dimension_semantics<parallel>, #tpu.dimension_semantics<parallel>, #tpu.dimension_semantics<arbitrary>], iteration_bounds = array<i64: 1, 1, 3>, scalar_prefetch = 0 : i64, scratch_operands = 1 : i64, tpu.core_type = #tpu.core_type<tc>, window_params = [{transform_indices = @transform_0, window_bounds = array<i64: 16, 384>}, {transform_indices = @transform_1, window_bounds = array<i64: 384, 128>}, {transform_indices = @transform_2, window_bounds = array<i64: 1, 128>}, {transform_indices = @transform_3, window_bounds = array<i64: 16, 128>}]} {
    %c0_i32 = arith.constant 0 : i32
    %0 = arith.cmpi eq, %arg2, %c0_i32 : i32
    %1 = arith.extui %0 : i1 to i32
    %c0_i32_0 = arith.constant 0 : i32
    %2 = arith.cmpi ne, %1, %c0_i32_0 : i32
    scf.if %2 {
      %c0_9 = arith.constant 0 : index
      %c0_10 = arith.constant 0 : index
      %12 = vector.load %arg5[%c0_9, %c0_10] : memref<1x128xf32, #tpu.memory_space<vmem>>, vector<1x128xf32>
      %13 = vector.shape_cast %12 : vector<1x128xf32> to vector<1x128xf32>
      %14 = vector.broadcast %13 : vector<1x128xf32> to vector<16x128xf32>
      %c0_11 = arith.constant 0 : index
      %c0_12 = arith.constant 0 : index
      %15 = vector.load %arg7[%c0_11, %c0_12] : memref<16x128xf32, #tpu.memory_space<vmem>>, vector<16x128xf32>
      tpu.vector_store %arg7[%c0_11, %c0_12], %14 {strides = array<i32>} : memref<16x128xf32, #tpu.memory_space<vmem>>, vector<16x128xf32>,
    } else {
    }
    %c0 = arith.constant 0 : index
    %c0_1 = arith.constant 0 : index
    %3 = vector.load %arg7[%c0, %c0_1] : memref<16x128xf32, #tpu.memory_space<vmem>>, vector<16x128xf32>
    %c0_2 = arith.constant 0 : index
    %c0_3 = arith.constant 0 : index
    %4 = vector.load %arg3[%c0_2, %c0_3] : memref<16x384xbf16, #tpu.memory_space<vmem>>, vector<16x384xbf16>
    %c0_4 = arith.constant 0 : index
    %c0_5 = arith.constant 0 : index
    %5 = vector.load %arg4[%c0_4, %c0_5] : memref<384x128xbf16, #tpu.memory_space<vmem>>, vector<384x128xbf16>
    %cst = arith.constant dense<0.000000e+00> : vector<16x128xf32>
    %6 = tpu.matmul %4, %5, %cst {dimension_numbers = #tpu.dot_dimension_numbers<[1], [0], [0], [1], [0, 0, 1, 1], [], []>} : vector<16x384xbf16>, vector<384x128xbf16>, vector<16x128xf32> -> vector<16x128xf32>
    %7 = arith.addf %3, %6 : vector<16x128xf32>
    %c0_6 = arith.constant 0 : index
    %c0_7 = arith.constant 0 : index
    %8 = vector.load %arg7[%c0_6, %c0_7] : memref<16x128xf32, #tpu.memory_space<vmem>>, vector<16x128xf32>
    tpu.vector_store %arg7[%c0_6, %c0_7], %7 {strides = array<i32>} : memref<16x128xf32, #tpu.memory_space<vmem>>, vector<16x128xf32>,
    %c2_i32 = arith.constant 2 : i32
    %9 = arith.cmpi eq, %arg2, %c2_i32 : i32
    %10 = arith.extui %9 : i1 to i32
    %c0_i32_8 = arith.constant 0 : i32
    %11 = arith.cmpi ne, %10, %c0_i32_8 : i32
    scf.if %11 {
      %c0_9 = arith.constant 0 : index
      %c0_10 = arith.constant 0 : index
      %12 = vector.load %arg7[%c0_9, %c0_10] : memref<16x128xf32, #tpu.memory_space<vmem>>, vector<16x128xf32>
      %cst_11 = arith.constant 0.000000e+00 : f32
      %13 = vector.broadcast %cst_11 : f32 to vector<16x128xf32>
      %14 = arith.maximumf %12, %13 : vector<16x128xf32>
      %15 = arith.truncf %14 : vector<16x128xf32> to vector<16x128xbf16>
      %c0_12 = arith.constant 0 : index
      %c0_13 = arith.constant 0 : index
      %16 = vector.load %arg6[%c0_12, %c0_13] : memref<16x128xbf16, #tpu.memory_space<vmem>>, vector<16x128xbf16>
      tpu.vector_store %arg6[%c0_12, %c0_13], %15 {strides = array<i32>} : memref<16x128xbf16, #tpu.memory_space<vmem>>, vector<16x128xbf16>,
    } else {
    }
    return
  }
  func.func @transform_0(%arg0: i32, %arg1: i32, %arg2: i32) -> (i32, i32) {
    %c0_i32 = arith.constant 0 : i32
    return %arg0, %arg2 : i32, i32
  }
  func.func @transform_1(%arg0: i32, %arg1: i32, %arg2: i32) -> (i32, i32) {
    %c0_i32 = arith.constant 0 : i32
    return %arg2, %arg1 : i32, i32
  }
  func.func @transform_2(%arg0: i32, %arg1: i32, %arg2: i32) -> (i32, i32) {
    %c0_i32 = arith.constant 0 : i32
    %c0_i32_0 = arith.constant 0 : i32
    return %c0_i32, %arg1 : i32, i32
  }
  func.func @transform_3(%arg0: i32, %arg1: i32, %arg2: i32) -> (i32, i32) {
    %c0_i32 = arith.constant 0 : i32
    return %arg0, %arg1 : i32, i32
  }
}

module attributes {stable_mosaic.version = 11 : i64} {
  func.func @_matmul_bias_kernel(%arg0: i32, %arg1: i32, %arg2: i32, %arg3: memref<16x128xbf16, #tpu.memory_space<vmem>>, %arg4: memref<128x128xbf16, #tpu.memory_space<vmem>>, %arg5: memref<1x128xf32, #tpu.memory_space<vmem>>, %arg6: memref<16x128xbf16, #tpu.memory_space<vmem>>, %arg7: memref<16x128xf32, #tpu.memory_space<vmem>>) attributes {dimension_semantics = [#tpu.dimension_semantics<parallel>, #tpu.dimension_semantics<parallel>, #tpu.dimension_semantics<arbitrary>], iteration_bounds = array<i64: 1, 1, 1>, scalar_prefetch = 0 : i64, scratch_operands = 1 : i64, tpu.core_type = #tpu.core_type<tc>, window_params = [{transform_indices = @transform_0, window_bounds = array<i64: 16, 128>}, {transform_indices = @transform_1, window_bounds = array<i64: 128, 128>}, {transform_indices = @transform_2, window_bounds = array<i64: 1, 128>}, {transform_indices = @transform_3, window_bounds = array<i64: 16, 128>}]} {
    %c0_i32 = arith.constant 0 : i32
    %0 = arith.cmpi eq, %arg2, %c0_i32 : i32
    %1 = arith.extui %0 : i1 to i32
    %c0_i32_0 = arith.constant 0 : i32
    %2 = arith.cmpi ne, %1, %c0_i32_0 : i32
    scf.if %2 {
      %c0_10 = arith.constant 0 : index
      %c0_11 = arith.constant 0 : index
      %12 = vector.load %arg5[%c0_10, %c0_11] : memref<1x128xf32, #tpu.memory_space<vmem>>, vector<1x128xf32>
      %13 = vector.shape_cast %12 : vector<1x128xf32> to vector<1x128xf32>
      %14 = vector.broadcast %13 : vector<1x128xf32> to vector<16x128xf32>
      %c0_12 = arith.constant 0 : index
      %c0_13 = arith.constant 0 : index
      %15 = vector.load %arg7[%c0_12, %c0_13] : memref<16x128xf32, #tpu.memory_space<vmem>>, vector<16x128xf32>
      tpu.vector_store %arg7[%c0_12, %c0_13], %14 {strides = array<i32>} : memref<16x128xf32, #tpu.memory_space<vmem>>, vector<16x128xf32>,
    } else {
    }
    %c0 = arith.constant 0 : index
    %c0_1 = arith.constant 0 : index
    %3 = vector.load %arg7[%c0, %c0_1] : memref<16x128xf32, #tpu.memory_space<vmem>>, vector<16x128xf32>
    %c0_2 = arith.constant 0 : index
    %c0_3 = arith.constant 0 : index
    %4 = vector.load %arg3[%c0_2, %c0_3] : memref<16x128xbf16, #tpu.memory_space<vmem>>, vector<16x128xbf16>
    %c0_4 = arith.constant 0 : index
    %c0_5 = arith.constant 0 : index
    %5 = vector.load %arg4[%c0_4, %c0_5] : memref<128x128xbf16, #tpu.memory_space<vmem>>, vector<128x128xbf16>
    %cst = arith.constant dense<0.000000e+00> : vector<16x128xf32>
    %6 = tpu.matmul %4, %5, %cst {dimension_numbers = #tpu.dot_dimension_numbers<[1], [0], [0], [1], [0, 0, 1, 1], [], []>} : vector<16x128xbf16>, vector<128x128xbf16>, vector<16x128xf32> -> vector<16x128xf32>
    %7 = arith.addf %3, %6 : vector<16x128xf32>
    %c0_6 = arith.constant 0 : index
    %c0_7 = arith.constant 0 : index
    %8 = vector.load %arg7[%c0_6, %c0_7] : memref<16x128xf32, #tpu.memory_space<vmem>>, vector<16x128xf32>
    tpu.vector_store %arg7[%c0_6, %c0_7], %7 {strides = array<i32>} : memref<16x128xf32, #tpu.memory_space<vmem>>, vector<16x128xf32>,
    %c0_i32_8 = arith.constant 0 : i32
    %9 = arith.cmpi eq, %arg2, %c0_i32_8 : i32
    %10 = arith.extui %9 : i1 to i32
    %c0_i32_9 = arith.constant 0 : i32
    %11 = arith.cmpi ne, %10, %c0_i32_9 : i32
    scf.if %11 {
      %c0_10 = arith.constant 0 : index
      %c0_11 = arith.constant 0 : index
      %12 = vector.load %arg7[%c0_10, %c0_11] : memref<16x128xf32, #tpu.memory_space<vmem>>, vector<16x128xf32>
      %13 = arith.truncf %12 : vector<16x128xf32> to vector<16x128xbf16>
      %c0_12 = arith.constant 0 : index
      %c0_13 = arith.constant 0 : index
      %14 = vector.load %arg6[%c0_12, %c0_13] : memref<16x128xbf16, #tpu.memory_space<vmem>>, vector<16x128xbf16>
      tpu.vector_store %arg6[%c0_12, %c0_13], %13 {strides = array<i32>} : memref<16x128xbf16, #tpu.memory_space<vmem>>, vector<16x128xbf16>,
    } else {
    }
    return
  }
  func.func @transform_0(%arg0: i32, %arg1: i32, %arg2: i32) -> (i32, i32) {
    %c0_i32 = arith.constant 0 : i32
    return %arg0, %arg2 : i32, i32
  }
  func.func @transform_1(%arg0: i32, %arg1: i32, %arg2: i32) -> (i32, i32) {
    %c0_i32 = arith.constant 0 : i32
    return %arg2, %arg1 : i32, i32
  }
  func.func @transform_2(%arg0: i32, %arg1: i32, %arg2: i32) -> (i32, i32) {
    %c0_i32 = arith.constant 0 : i32
    %c0_i32_0 = arith.constant 0 : i32
    return %c0_i32, %arg1 : i32, i32
  }
  func.func @transform_3(%arg0: i32, %arg1: i32, %arg2: i32) -> (i32, i32) {
    %c0_i32 = arith.constant 0 : i32
    return %arg0, %arg1 : i32, i32
  }
}

module attributes {stable_mosaic.version = 11 : i64} {
  func.func @_conv3_combine_kernel(%arg0: i32, %arg1: i32, %arg2: memref<16x128xbf16, #tpu.memory_space<vmem>>, %arg3: memref<128x128xbf16, #tpu.memory_space<vmem>>, %arg4: memref<1x128xf32, #tpu.memory_space<vmem>>, %arg5: memref<16x128xbf16, #tpu.memory_space<vmem>>, %arg6: memref<16x128xbf16, #tpu.memory_space<vmem>>, %arg7: memref<16x128xf32, #tpu.memory_space<vmem>>) attributes {dimension_semantics = [#tpu.dimension_semantics<parallel>, #tpu.dimension_semantics<arbitrary>], iteration_bounds = array<i64: 1, 1>, scalar_prefetch = 0 : i64, scratch_operands = 1 : i64, tpu.core_type = #tpu.core_type<tc>, window_params = [{transform_indices = @transform_0, window_bounds = array<i64: 16, 128>}, {transform_indices = @transform_1, window_bounds = array<i64: 128, 128>}, {pipeline_mode = #tpu.pipeline_mode<synchronous>, transform_indices = @transform_2, window_bounds = array<i64: 1, 128>}, {transform_indices = @transform_3, window_bounds = array<i64: 16, 128>}, {transform_indices = @transform_4, window_bounds = array<i64: 16, 128>}]} {
    %c0_i32 = arith.constant 0 : i32
    %0 = arith.cmpi eq, %arg1, %c0_i32 : i32
    %1 = arith.extui %0 : i1 to i32
    %c0_i32_0 = arith.constant 0 : i32
    %2 = arith.cmpi ne, %1, %c0_i32_0 : i32
    scf.if %2 {
      %c0_10 = arith.constant 0 : index
      %c0_11 = arith.constant 0 : index
      %12 = vector.load %arg4[%c0_10, %c0_11] : memref<1x128xf32, #tpu.memory_space<vmem>>, vector<1x128xf32>
      %13 = vector.shape_cast %12 : vector<1x128xf32> to vector<1x128xf32>
      %14 = vector.broadcast %13 : vector<1x128xf32> to vector<16x128xf32>
      %c0_12 = arith.constant 0 : index
      %c0_13 = arith.constant 0 : index
      %15 = vector.load %arg7[%c0_12, %c0_13] : memref<16x128xf32, #tpu.memory_space<vmem>>, vector<16x128xf32>
      tpu.vector_store %arg7[%c0_12, %c0_13], %14 {strides = array<i32>} : memref<16x128xf32, #tpu.memory_space<vmem>>, vector<16x128xf32>,
    } else {
    }
    %c0 = arith.constant 0 : index
    %c0_1 = arith.constant 0 : index
    %3 = vector.load %arg7[%c0, %c0_1] : memref<16x128xf32, #tpu.memory_space<vmem>>, vector<16x128xf32>
    %c0_2 = arith.constant 0 : index
    %c0_3 = arith.constant 0 : index
    %4 = vector.load %arg2[%c0_2, %c0_3] : memref<16x128xbf16, #tpu.memory_space<vmem>>, vector<16x128xbf16>
    %c0_4 = arith.constant 0 : index
    %c0_5 = arith.constant 0 : index
    %5 = vector.load %arg3[%c0_4, %c0_5] : memref<128x128xbf16, #tpu.memory_space<vmem>>, vector<128x128xbf16>
    %cst = arith.constant dense<0.000000e+00> : vector<16x128xf32>
    %6 = tpu.matmul %4, %5, %cst {dimension_numbers = #tpu.dot_dimension_numbers<[1], [0], [0], [1], [0, 0, 1, 1], [], []>} : vector<16x128xbf16>, vector<128x128xbf16>, vector<16x128xf32> -> vector<16x128xf32>
    %7 = arith.addf %3, %6 : vector<16x128xf32>
    %c0_6 = arith.constant 0 : index
    %c0_7 = arith.constant 0 : index
    %8 = vector.load %arg7[%c0_6, %c0_7] : memref<16x128xf32, #tpu.memory_space<vmem>>, vector<16x128xf32>
    tpu.vector_store %arg7[%c0_6, %c0_7], %7 {strides = array<i32>} : memref<16x128xf32, #tpu.memory_space<vmem>>, vector<16x128xf32>,
    %c0_i32_8 = arith.constant 0 : i32
    %9 = arith.cmpi eq, %arg1, %c0_i32_8 : i32
    %10 = arith.extui %9 : i1 to i32
    %c0_i32_9 = arith.constant 0 : i32
    %11 = arith.cmpi ne, %10, %c0_i32_9 : i32
    scf.if %11 {
      %c0_10 = arith.constant 0 : index
      %c0_11 = arith.constant 0 : index
      %12 = vector.load %arg7[%c0_10, %c0_11] : memref<16x128xf32, #tpu.memory_space<vmem>>, vector<16x128xf32>
      %c0_12 = arith.constant 0 : index
      %c0_13 = arith.constant 0 : index
      %13 = vector.load %arg5[%c0_12, %c0_13] : memref<16x128xbf16, #tpu.memory_space<vmem>>, vector<16x128xbf16>
      %14 = arith.extf %13 : vector<16x128xbf16> to vector<16x128xf32>
      %c4_i32 = arith.constant 4 : i32
      %15 = tpu.dynamic_rotate %12 by %c4_i32 dim 1 : vector<16x128xf32>, i32 -> vector<16x128xf32>
      %16 = tpu.iota {dimensions = array<i32: 1>} : vector<16x128xi32>
      %c32_i32 = arith.constant 32 : i32
      %17 = vector.broadcast %c32_i32 : i32 to vector<16x128xi32>
      %18 = arith.cmpi slt, %16, %17 : vector<16x128xi32>
      %19 = arith.addf %14, %12 : vector<16x128xf32>
      %c36_i32 = arith.constant 36 : i32
      %20 = vector.broadcast %c36_i32 : i32 to vector<16x128xi32>
      %21 = arith.cmpi slt, %16, %20 : vector<16x128xi32>
      %c40_i32 = arith.constant 40 : i32
      %22 = vector.broadcast %c40_i32 : i32 to vector<16x128xi32>
      %23 = arith.cmpi slt, %16, %22 : vector<16x128xi32>
      %cst_14 = arith.constant 0.000000e+00 : f32
      %24 = vector.broadcast %cst_14 : f32 to vector<16x128xf32>
      %25 = arith.select %23, %15, %24 : vector<16x128xi1>, vector<16x128xf32>
      %26 = arith.select %21, %14, %25 : vector<16x128xi1>, vector<16x128xf32>
      %27 = arith.select %18, %19, %26 : vector<16x128xi1>, vector<16x128xf32>
      %cst_15 = arith.constant 0.000000e+00 : f32
      %28 = vector.broadcast %cst_15 : f32 to vector<16x128xf32>
      %29 = arith.maximumf %27, %28 : vector<16x128xf32>
      %30 = arith.truncf %29 : vector<16x128xf32> to vector<16x128xbf16>
      %c0_16 = arith.constant 0 : index
      %c0_17 = arith.constant 0 : index
      %31 = vector.load %arg6[%c0_16, %c0_17] : memref<16x128xbf16, #tpu.memory_space<vmem>>, vector<16x128xbf16>
      tpu.vector_store %arg6[%c0_16, %c0_17], %30 {strides = array<i32>} : memref<16x128xbf16, #tpu.memory_space<vmem>>, vector<16x128xbf16>,
    } else {
    }
    return
  }
  func.func @transform_0(%arg0: i32, %arg1: i32) -> (i32, i32) {
    %c0_i32 = arith.constant 0 : i32
    return %arg0, %arg1 : i32, i32
  }
  func.func @transform_1(%arg0: i32, %arg1: i32) -> (i32, i32) {
    %c0_i32 = arith.constant 0 : i32
    %c0_i32_0 = arith.constant 0 : i32
    return %arg1, %c0_i32 : i32, i32
  }
  func.func @transform_2(%arg0: i32, %arg1: i32) -> (i32, i32) {
    %c0_i32 = arith.constant 0 : i32
    %c0_i32_0 = arith.constant 0 : i32
    %c0_i32_1 = arith.constant 0 : i32
    return %c0_i32, %c0_i32_0 : i32, i32
  }
  func.func @transform_3(%arg0: i32, %arg1: i32) -> (i32, i32) {
    %c0_i32 = arith.constant 0 : i32
    %c0_i32_0 = arith.constant 0 : i32
    return %arg0, %c0_i32 : i32, i32
  }
  func.func @transform_4(%arg0: i32, %arg1: i32) -> (i32, i32) {
    %c0_i32 = arith.constant 0 : i32
    %c0_i32_0 = arith.constant 0 : i32
    return %arg0, %c0_i32 : i32, i32
  }
}

module attributes {stable_mosaic.version = 11 : i64} {
  func.func @_matmul_bias_kernel(%arg0: i32, %arg1: i32, %arg2: i32, %arg3: memref<16x128xbf16, #tpu.memory_space<vmem>>, %arg4: memref<128x128xbf16, #tpu.memory_space<vmem>>, %arg5: memref<1x128xf32, #tpu.memory_space<vmem>>, %arg6: memref<16x128xbf16, #tpu.memory_space<vmem>>, %arg7: memref<16x128xf32, #tpu.memory_space<vmem>>) attributes {dimension_semantics = [#tpu.dimension_semantics<parallel>, #tpu.dimension_semantics<parallel>, #tpu.dimension_semantics<arbitrary>], iteration_bounds = array<i64: 1, 1, 1>, scalar_prefetch = 0 : i64, scratch_operands = 1 : i64, tpu.core_type = #tpu.core_type<tc>, window_params = [{transform_indices = @transform_0, window_bounds = array<i64: 16, 128>}, {transform_indices = @transform_1, window_bounds = array<i64: 128, 128>}, {transform_indices = @transform_2, window_bounds = array<i64: 1, 128>}, {transform_indices = @transform_3, window_bounds = array<i64: 16, 128>}]} {
    %c0_i32 = arith.constant 0 : i32
    %0 = arith.cmpi eq, %arg2, %c0_i32 : i32
    %1 = arith.extui %0 : i1 to i32
    %c0_i32_0 = arith.constant 0 : i32
    %2 = arith.cmpi ne, %1, %c0_i32_0 : i32
    scf.if %2 {
      %c0_10 = arith.constant 0 : index
      %c0_11 = arith.constant 0 : index
      %12 = vector.load %arg5[%c0_10, %c0_11] : memref<1x128xf32, #tpu.memory_space<vmem>>, vector<1x128xf32>
      %13 = vector.shape_cast %12 : vector<1x128xf32> to vector<1x128xf32>
      %14 = vector.broadcast %13 : vector<1x128xf32> to vector<16x128xf32>
      %c0_12 = arith.constant 0 : index
      %c0_13 = arith.constant 0 : index
      %15 = vector.load %arg7[%c0_12, %c0_13] : memref<16x128xf32, #tpu.memory_space<vmem>>, vector<16x128xf32>
      tpu.vector_store %arg7[%c0_12, %c0_13], %14 {strides = array<i32>} : memref<16x128xf32, #tpu.memory_space<vmem>>, vector<16x128xf32>,
    } else {
    }
    %c0 = arith.constant 0 : index
    %c0_1 = arith.constant 0 : index
    %3 = vector.load %arg7[%c0, %c0_1] : memref<16x128xf32, #tpu.memory_space<vmem>>, vector<16x128xf32>
    %c0_2 = arith.constant 0 : index
    %c0_3 = arith.constant 0 : index
    %4 = vector.load %arg3[%c0_2, %c0_3] : memref<16x128xbf16, #tpu.memory_space<vmem>>, vector<16x128xbf16>
    %c0_4 = arith.constant 0 : index
    %c0_5 = arith.constant 0 : index
    %5 = vector.load %arg4[%c0_4, %c0_5] : memref<128x128xbf16, #tpu.memory_space<vmem>>, vector<128x128xbf16>
    %cst = arith.constant dense<0.000000e+00> : vector<16x128xf32>
    %6 = tpu.matmul %4, %5, %cst {dimension_numbers = #tpu.dot_dimension_numbers<[1], [0], [0], [1], [0, 0, 1, 1], [], []>} : vector<16x128xbf16>, vector<128x128xbf16>, vector<16x128xf32> -> vector<16x128xf32>
    %7 = arith.addf %3, %6 : vector<16x128xf32>
    %c0_6 = arith.constant 0 : index
    %c0_7 = arith.constant 0 : index
    %8 = vector.load %arg7[%c0_6, %c0_7] : memref<16x128xf32, #tpu.memory_space<vmem>>, vector<16x128xf32>
    tpu.vector_store %arg7[%c0_6, %c0_7], %7 {strides = array<i32>} : memref<16x128xf32, #tpu.memory_space<vmem>>, vector<16x128xf32>,
    %c0_i32_8 = arith.constant 0 : i32
    %9 = arith.cmpi eq, %arg2, %c0_i32_8 : i32
    %10 = arith.extui %9 : i1 to i32
    %c0_i32_9 = arith.constant 0 : i32
    %11 = arith.cmpi ne, %10, %c0_i32_9 : i32
    scf.if %11 {
      %c0_10 = arith.constant 0 : index
      %c0_11 = arith.constant 0 : index
      %12 = vector.load %arg7[%c0_10, %c0_11] : memref<16x128xf32, #tpu.memory_space<vmem>>, vector<16x128xf32>
      %cst_12 = arith.constant 0.000000e+00 : f32
      %13 = vector.broadcast %cst_12 : f32 to vector<16x128xf32>
      %14 = arith.maximumf %12, %13 : vector<16x128xf32>
      %15 = arith.truncf %14 : vector<16x128xf32> to vector<16x128xbf16>
      %c0_13 = arith.constant 0 : index
      %c0_14 = arith.constant 0 : index
      %16 = vector.load %arg6[%c0_13, %c0_14] : memref<16x128xbf16, #tpu.memory_space<vmem>>, vector<16x128xbf16>
      tpu.vector_store %arg6[%c0_13, %c0_14], %15 {strides = array<i32>} : memref<16x128xbf16, #tpu.memory_space<vmem>>, vector<16x128xbf16>,
    } else {
    }
    return
  }
  func.func @transform_0(%arg0: i32, %arg1: i32, %arg2: i32) -> (i32, i32) {
    %c0_i32 = arith.constant 0 : i32
    return %arg0, %arg2 : i32, i32
  }
  func.func @transform_1(%arg0: i32, %arg1: i32, %arg2: i32) -> (i32, i32) {
    %c0_i32 = arith.constant 0 : i32
    return %arg2, %arg1 : i32, i32
  }
  func.func @transform_2(%arg0: i32, %arg1: i32, %arg2: i32) -> (i32, i32) {
    %c0_i32 = arith.constant 0 : i32
    %c0_i32_0 = arith.constant 0 : i32
    return %c0_i32, %arg1 : i32, i32
  }
  func.func @transform_3(%arg0: i32, %arg1: i32, %arg2: i32) -> (i32, i32) {
    %c0_i32 = arith.constant 0 : i32
    return %arg0, %arg1 : i32, i32
  }
}

module attributes {stable_mosaic.version = 11 : i64} {
  func.func @_matmul_bias_kernel(%arg0: i32, %arg1: i32, %arg2: i32, %arg3: memref<16x128xbf16, #tpu.memory_space<vmem>>, %arg4: memref<128x128xbf16, #tpu.memory_space<vmem>>, %arg5: memref<1x128xf32, #tpu.memory_space<vmem>>, %arg6: memref<16x128xf32, #tpu.memory_space<vmem>>, %arg7: memref<16x128xf32, #tpu.memory_space<vmem>>) attributes {dimension_semantics = [#tpu.dimension_semantics<parallel>, #tpu.dimension_semantics<parallel>, #tpu.dimension_semantics<arbitrary>], iteration_bounds = array<i64: 1, 1, 1>, scalar_prefetch = 0 : i64, scratch_operands = 1 : i64, tpu.core_type = #tpu.core_type<tc>, window_params = [{transform_indices = @transform_0, window_bounds = array<i64: 16, 128>}, {transform_indices = @transform_1, window_bounds = array<i64: 128, 128>}, {transform_indices = @transform_2, window_bounds = array<i64: 1, 128>}, {transform_indices = @transform_3, window_bounds = array<i64: 16, 128>}]} {
    %c0_i32 = arith.constant 0 : i32
    %0 = arith.cmpi eq, %arg2, %c0_i32 : i32
    %1 = arith.extui %0 : i1 to i32
    %c0_i32_0 = arith.constant 0 : i32
    %2 = arith.cmpi ne, %1, %c0_i32_0 : i32
    scf.if %2 {
      %c0_10 = arith.constant 0 : index
      %c0_11 = arith.constant 0 : index
      %12 = vector.load %arg5[%c0_10, %c0_11] : memref<1x128xf32, #tpu.memory_space<vmem>>, vector<1x128xf32>
      %13 = vector.shape_cast %12 : vector<1x128xf32> to vector<1x128xf32>
      %14 = vector.broadcast %13 : vector<1x128xf32> to vector<16x128xf32>
      %c0_12 = arith.constant 0 : index
      %c0_13 = arith.constant 0 : index
      %15 = vector.load %arg7[%c0_12, %c0_13] : memref<16x128xf32, #tpu.memory_space<vmem>>, vector<16x128xf32>
      tpu.vector_store %arg7[%c0_12, %c0_13], %14 {strides = array<i32>} : memref<16x128xf32, #tpu.memory_space<vmem>>, vector<16x128xf32>,
    } else {
    }
    %c0 = arith.constant 0 : index
    %c0_1 = arith.constant 0 : index
    %3 = vector.load %arg7[%c0, %c0_1] : memref<16x128xf32, #tpu.memory_space<vmem>>, vector<16x128xf32>
    %c0_2 = arith.constant 0 : index
    %c0_3 = arith.constant 0 : index
    %4 = vector.load %arg3[%c0_2, %c0_3] : memref<16x128xbf16, #tpu.memory_space<vmem>>, vector<16x128xbf16>
    %c0_4 = arith.constant 0 : index
    %c0_5 = arith.constant 0 : index
    %5 = vector.load %arg4[%c0_4, %c0_5] : memref<128x128xbf16, #tpu.memory_space<vmem>>, vector<128x128xbf16>
    %cst = arith.constant dense<0.000000e+00> : vector<16x128xf32>
    %6 = tpu.matmul %4, %5, %cst {dimension_numbers = #tpu.dot_dimension_numbers<[1], [0], [0], [1], [0, 0, 1, 1], [], []>} : vector<16x128xbf16>, vector<128x128xbf16>, vector<16x128xf32> -> vector<16x128xf32>
    %7 = arith.addf %3, %6 : vector<16x128xf32>
    %c0_6 = arith.constant 0 : index
    %c0_7 = arith.constant 0 : index
    %8 = vector.load %arg7[%c0_6, %c0_7] : memref<16x128xf32, #tpu.memory_space<vmem>>, vector<16x128xf32>
    tpu.vector_store %arg7[%c0_6, %c0_7], %7 {strides = array<i32>} : memref<16x128xf32, #tpu.memory_space<vmem>>, vector<16x128xf32>,
    %c0_i32_8 = arith.constant 0 : i32
    %9 = arith.cmpi eq, %arg2, %c0_i32_8 : i32
    %10 = arith.extui %9 : i1 to i32
    %c0_i32_9 = arith.constant 0 : i32
    %11 = arith.cmpi ne, %10, %c0_i32_9 : i32
    scf.if %11 {
      %c0_10 = arith.constant 0 : index
      %c0_11 = arith.constant 0 : index
      %12 = vector.load %arg7[%c0_10, %c0_11] : memref<16x128xf32, #tpu.memory_space<vmem>>, vector<16x128xf32>
      %c0_12 = arith.constant 0 : index
      %c0_13 = arith.constant 0 : index
      %13 = vector.load %arg6[%c0_12, %c0_13] : memref<16x128xf32, #tpu.memory_space<vmem>>, vector<16x128xf32>
      tpu.vector_store %arg6[%c0_12, %c0_13], %12 {strides = array<i32>} : memref<16x128xf32, #tpu.memory_space<vmem>>, vector<16x128xf32>,
    } else {
    }
    return
  }
  func.func @transform_0(%arg0: i32, %arg1: i32, %arg2: i32) -> (i32, i32) {
    %c0_i32 = arith.constant 0 : i32
    return %arg0, %arg2 : i32, i32
  }
  func.func @transform_1(%arg0: i32, %arg1: i32, %arg2: i32) -> (i32, i32) {
    %c0_i32 = arith.constant 0 : i32
    return %arg2, %arg1 : i32, i32
  }
  func.func @transform_2(%arg0: i32, %arg1: i32, %arg2: i32) -> (i32, i32) {
    %c0_i32 = arith.constant 0 : i32
    %c0_i32_0 = arith.constant 0 : i32
    return %c0_i32, %arg1 : i32, i32
  }
  func.func @transform_3(%arg0: i32, %arg1: i32, %arg2: i32) -> (i32, i32) {
    %c0_i32 = arith.constant 0 : i32
    return %arg0, %arg1 : i32, i32
  }
}

module attributes {stable_mosaic.version = 11 : i64} {
  func.func @_conv3_combine_kernel(%arg0: i32, %arg1: i32, %arg2: memref<16x128xbf16, #tpu.memory_space<vmem>>, %arg3: memref<128x128xbf16, #tpu.memory_space<vmem>>, %arg4: memref<1x128xf32, #tpu.memory_space<vmem>>, %arg5: memref<16x128xbf16, #tpu.memory_space<vmem>>, %arg6: memref<16x128xbf16, #tpu.memory_space<vmem>>, %arg7: memref<16x128xf32, #tpu.memory_space<vmem>>) attributes {dimension_semantics = [#tpu.dimension_semantics<parallel>, #tpu.dimension_semantics<arbitrary>], iteration_bounds = array<i64: 1, 1>, scalar_prefetch = 0 : i64, scratch_operands = 1 : i64, tpu.core_type = #tpu.core_type<tc>, window_params = [{transform_indices = @transform_0, window_bounds = array<i64: 16, 128>}, {transform_indices = @transform_1, window_bounds = array<i64: 128, 128>}, {pipeline_mode = #tpu.pipeline_mode<synchronous>, transform_indices = @transform_2, window_bounds = array<i64: 1, 128>}, {transform_indices = @transform_3, window_bounds = array<i64: 16, 128>}, {transform_indices = @transform_4, window_bounds = array<i64: 16, 128>}]} {
    %c0_i32 = arith.constant 0 : i32
    %0 = arith.cmpi eq, %arg1, %c0_i32 : i32
    %1 = arith.extui %0 : i1 to i32
    %c0_i32_0 = arith.constant 0 : i32
    %2 = arith.cmpi ne, %1, %c0_i32_0 : i32
    scf.if %2 {
      %c0_10 = arith.constant 0 : index
      %c0_11 = arith.constant 0 : index
      %12 = vector.load %arg4[%c0_10, %c0_11] : memref<1x128xf32, #tpu.memory_space<vmem>>, vector<1x128xf32>
      %13 = vector.shape_cast %12 : vector<1x128xf32> to vector<1x128xf32>
      %14 = vector.broadcast %13 : vector<1x128xf32> to vector<16x128xf32>
      %c0_12 = arith.constant 0 : index
      %c0_13 = arith.constant 0 : index
      %15 = vector.load %arg7[%c0_12, %c0_13] : memref<16x128xf32, #tpu.memory_space<vmem>>, vector<16x128xf32>
      tpu.vector_store %arg7[%c0_12, %c0_13], %14 {strides = array<i32>} : memref<16x128xf32, #tpu.memory_space<vmem>>, vector<16x128xf32>,
    } else {
    }
    %c0 = arith.constant 0 : index
    %c0_1 = arith.constant 0 : index
    %3 = vector.load %arg7[%c0, %c0_1] : memref<16x128xf32, #tpu.memory_space<vmem>>, vector<16x128xf32>
    %c0_2 = arith.constant 0 : index
    %c0_3 = arith.constant 0 : index
    %4 = vector.load %arg2[%c0_2, %c0_3] : memref<16x128xbf16, #tpu.memory_space<vmem>>, vector<16x128xbf16>
    %c0_4 = arith.constant 0 : index
    %c0_5 = arith.constant 0 : index
    %5 = vector.load %arg3[%c0_4, %c0_5] : memref<128x128xbf16, #tpu.memory_space<vmem>>, vector<128x128xbf16>
    %cst = arith.constant dense<0.000000e+00> : vector<16x128xf32>
    %6 = tpu.matmul %4, %5, %cst {dimension_numbers = #tpu.dot_dimension_numbers<[1], [0], [0], [1], [0, 0, 1, 1], [], []>} : vector<16x128xbf16>, vector<128x128xbf16>, vector<16x128xf32> -> vector<16x128xf32>
    %7 = arith.addf %3, %6 : vector<16x128xf32>
    %c0_6 = arith.constant 0 : index
    %c0_7 = arith.constant 0 : index
    %8 = vector.load %arg7[%c0_6, %c0_7] : memref<16x128xf32, #tpu.memory_space<vmem>>, vector<16x128xf32>
    tpu.vector_store %arg7[%c0_6, %c0_7], %7 {strides = array<i32>} : memref<16x128xf32, #tpu.memory_space<vmem>>, vector<16x128xf32>,
    %c0_i32_8 = arith.constant 0 : i32
    %9 = arith.cmpi eq, %arg1, %c0_i32_8 : i32
    %10 = arith.extui %9 : i1 to i32
    %c0_i32_9 = arith.constant 0 : i32
    %11 = arith.cmpi ne, %10, %c0_i32_9 : i32
    scf.if %11 {
      %c0_10 = arith.constant 0 : index
      %c0_11 = arith.constant 0 : index
      %12 = vector.load %arg7[%c0_10, %c0_11] : memref<16x128xf32, #tpu.memory_space<vmem>>, vector<16x128xf32>
      %c0_12 = arith.constant 0 : index
      %c0_13 = arith.constant 0 : index
      %13 = vector.load %arg5[%c0_12, %c0_13] : memref<16x128xbf16, #tpu.memory_space<vmem>>, vector<16x128xbf16>
      %14 = arith.extf %13 : vector<16x128xbf16> to vector<16x128xf32>
      %c8_i32 = arith.constant 8 : i32
      %15 = tpu.dynamic_rotate %12 by %c8_i32 dim 1 : vector<16x128xf32>, i32 -> vector<16x128xf32>
      %16 = tpu.iota {dimensions = array<i32: 1>} : vector<16x128xi32>
      %c32_i32 = arith.constant 32 : i32
      %17 = vector.broadcast %c32_i32 : i32 to vector<16x128xi32>
      %18 = arith.cmpi slt, %16, %17 : vector<16x128xi32>
      %19 = arith.addf %14, %12 : vector<16x128xf32>
      %c40_i32 = arith.constant 40 : i32
      %20 = vector.broadcast %c40_i32 : i32 to vector<16x128xi32>
      %21 = arith.cmpi slt, %16, %20 : vector<16x128xi32>
      %c48_i32 = arith.constant 48 : i32
      %22 = vector.broadcast %c48_i32 : i32 to vector<16x128xi32>
      %23 = arith.cmpi slt, %16, %22 : vector<16x128xi32>
      %cst_14 = arith.constant 0.000000e+00 : f32
      %24 = vector.broadcast %cst_14 : f32 to vector<16x128xf32>
      %25 = arith.select %23, %15, %24 : vector<16x128xi1>, vector<16x128xf32>
      %26 = arith.select %21, %14, %25 : vector<16x128xi1>, vector<16x128xf32>
      %27 = arith.select %18, %19, %26 : vector<16x128xi1>, vector<16x128xf32>
      %cst_15 = arith.constant 0.000000e+00 : f32
      %28 = vector.broadcast %cst_15 : f32 to vector<16x128xf32>
      %29 = arith.maximumf %27, %28 : vector<16x128xf32>
      %30 = arith.truncf %29 : vector<16x128xf32> to vector<16x128xbf16>
      %c0_16 = arith.constant 0 : index
      %c0_17 = arith.constant 0 : index
      %31 = vector.load %arg6[%c0_16, %c0_17] : memref<16x128xbf16, #tpu.memory_space<vmem>>, vector<16x128xbf16>
      tpu.vector_store %arg6[%c0_16, %c0_17], %30 {strides = array<i32>} : memref<16x128xbf16, #tpu.memory_space<vmem>>, vector<16x128xbf16>,
    } else {
    }
    return
  }
  func.func @transform_0(%arg0: i32, %arg1: i32) -> (i32, i32) {
    %c0_i32 = arith.constant 0 : i32
    return %arg0, %arg1 : i32, i32
  }
  func.func @transform_1(%arg0: i32, %arg1: i32) -> (i32, i32) {
    %c0_i32 = arith.constant 0 : i32
    %c0_i32_0 = arith.constant 0 : i32
    return %arg1, %c0_i32 : i32, i32
  }
  func.func @transform_2(%arg0: i32, %arg1: i32) -> (i32, i32) {
    %c0_i32 = arith.constant 0 : i32
    %c0_i32_0 = arith.constant 0 : i32
    %c0_i32_1 = arith.constant 0 : i32
    return %c0_i32, %c0_i32_0 : i32, i32
  }
  func.func @transform_3(%arg0: i32, %arg1: i32) -> (i32, i32) {
    %c0_i32 = arith.constant 0 : i32
    %c0_i32_0 = arith.constant 0 : i32
    return %arg0, %c0_i32 : i32, i32
  }
  func.func @transform_4(%arg0: i32, %arg1: i32) -> (i32, i32) {
    %c0_i32 = arith.constant 0 : i32
    %c0_i32_0 = arith.constant 0 : i32
    return %arg0, %c0_i32 : i32, i32
  }
}

</mosaic_0001>

<bundles_post_ra>
// kernel: dpn_forward.21
= control target key start
LH: loop header
LB: loop body
LE: loop exit
PB: predicated region body
PF: predicated region fallthrough
CT: control target
= control target key end

     0   :  { %s1467_s12 = smov 0   ;;  %s1469_s13 = smov 0   ;;  %s1604_s0 = inlined_call_operand.vmem [shape: bf16[512,128], index: 0, kind: input, shape index: {}]   ;;  %s1605_s1 = inlined_call_operand.vmem [shape: bf16[128,128], index: 1, kind: input, shape index: {}]   ;;  %s1606_s2 = inlined_call_operand.vmem [shape: f32[1,128], index: 2, kind: input, shape index: {}]   ;;  %s1607_s3 = inlined_call_operand.vmem [shape: bf16[512,128], index: 3, kind: output, shape index: {}]  }
   0x1   :  { %s1471_s14 = smov 0  }
   0x2 LB: > { %s32_s15 = sadd.s32 1, %s1441_s13  ;;  %p1096_p0 = scmp.ge.s32.totalorder %s1445_s14, 1  ;;  %s1445_s14 = sphi %s1471_s14, %s13_s14   ;;  %s1441_s13 = sphi %s1469_s13, %s1609_s13   ;;  %s1437_s12 = sphi %s1467_s12, %s1608_s12  }
   0x3   : > { %p34_p1 = scmp.ge.s32.totalorder %s32_s15, 2  ;;  %p188_p2 = scmp.lt.s32.totalorder %s1445_s14, 3 }
   0x5   : > { %s1611_s15 = smov (%p34_p1, %s32_s15), 0  ;;  %p189_p3 = pnand %p1096_p0, %p188_p2 }
   0x6   : > { %v1399_v0 = vld [vmem:[%s1605_s1] sm:$0xff] (!%p189_p3)   ;;  %s1097_s18 = sshll.u32 (!%p189_p3), %s1437_s12, 5  ;;  %v1400_v1 = vld [vmem:[%s1605_s1 + $0x8] sm:$0xff] (!%p189_p3)   ;;  %v1401_v2 = vld [vmem:[%s1605_s1 + $0x10] sm:$0xff] (!%p189_p3)  }
   0x7   : > { %192 = sbr.rel (%p189_p3) target bundleno = 285 (0x11d), region = 32  ;;  %p230_p4 = scmp.lt.s32.totalorder (!%p189_p3), %s1097_s18, 63  ;;  %1311 = vmatprep.subr.bf16.mxu0 (!%p189_p3), %v1399_v0  ;;  %1359 = vmatprep.subr.bf16.mxu1 (!%p189_p3), %v1399_v0  ;;  %v1402_v3 = vld [vmem:[%s1605_s1 + $0x18] sm:$0xff] (!%p189_p3)   ;;  %v1403_v6 = vld [vmem:[%s1605_s1 + $0x20] sm:$0xff] (!%p189_p3)   ;;  %v1404_v7 = vld [vmem:[%s1605_s1 + $0x28] sm:$0xff] (!%p189_p3)  }
   0x8   : > { %1312 = vmatpush3.bf16.msra.mxu0 (!%p189_p3), %v1399_v0  ;;  %1367 = vmatpush3.bf16.msra.mxu1 (!%p189_p3), %v1399_v0  ;;  %v1405_v8 = vld [vmem:[%s1605_s1 + $0x30] sm:$0xff] (!%p189_p3)   ;;  %v1406_v9 = vld [vmem:[%s1605_s1 + $0x38] sm:$0xff] (!%p189_p3)   ;;  %v1538_v24 = vld [vmem:[%s1606_s2] ss:$0 sm:$0xff] (!%p189_p3) }
   0x9   : > { %1313 = vmatprep.subr.bf16.mxu0 (!%p189_p3), %v1400_v1  ;;  %1360 = vmatprep.subr.bf16.mxu1 (!%p189_p3), %v1400_v1 }
   0xc   : > { %1314 = vmatpush3.bf16.msra.mxu0 (!%p189_p3), %v1400_v1  ;;  %1368 = vmatpush3.bf16.msra.mxu1 (!%p189_p3), %v1400_v1 }
   0xd   : > { %1315 = vmatprep.subr.bf16.mxu0 (!%p189_p3), %v1401_v2  ;;  %1361 = vmatprep.subr.bf16.mxu1 (!%p189_p3), %v1401_v2 }
   0xe   : > { %s1613_s18 = smov (!%p230_p4, %s1097_s18), 63 }
   0xf   : > { %s1098_s23 = sshll.u32 %s1613_s18, 2 }
  0x10   : > { %s1502_s26 = scalar_lea.vmem %s1604_s0, %s1098_s23  ;;  %1316 = vmatpush3.bf16.msra.mxu0 %v1401_v2  ;;  %1369 = vmatpush3.bf16.msra.mxu1 %v1401_v2  ;;  %s1553_s17 = scalar_lea.vmem %s1607_s3, %s1098_s23 }
  0x11   : > { %v1407_v4 = vld [vmem:[%s1502_s26] sm:$0xff]   ;;  %1317 = vmatprep.subr.bf16.mxu0 %v1402_v3  ;;  %1362 = vmatprep.subr.bf16.mxu1 %v1402_v3  ;;  %v1409_v10 = vld [vmem:[%s1502_s26 + $0x8] sm:$0xff]   ;;  %v1411_v12 = vld [vmem:[%s1502_s26 + $0x10] sm:$0xff]  }
  0x12   : > { %v1408_v5 = vld [vmem:[%s1502_s26 + $0x40] sm:$0xff]   ;;  %1327 = vmatprep.mubr.bf16.mxu0 %v1407_v4  ;;  %v1410_v11 = vld [vmem:[%s1502_s26 + $0x48] sm:$0xff]   ;;  %v1412_v13 = vld [vmem:[%s1502_s26 + $0x50] sm:$0xff]  }
  0x13   : > { %1343 = vmatprep.mubr.bf16.mxu1 %v1408_v5  ;;  %v1413_v14 = vld [vmem:[%s1502_s26 + $0x18] sm:$0xff]   ;;  %v1415_v16 = vld [vmem:[%s1502_s26 + $0x20] sm:$0xff]   ;;  %v1417_v18 = vld [vmem:[%s1502_s26 + $0x28] sm:$0xff]  }
  0x14   : > { %1318 = vmatpush3.bf16.msra.mxu0 %v1402_v3  ;;  %1370 = vmatpush3.bf16.msra.mxu1 %v1402_v3  ;;  %v1414_v15 = vld [vmem:[%s1502_s26 + $0x58] sm:$0xff]   ;;  %v1416_v17 = vld [vmem:[%s1502_s26 + $0x60] sm:$0xff]   ;;  %v1418_v19 = vld [vmem:[%s1502_s26 + $0x68] sm:$0xff]  }
  0x15   : > { %1319 = vmatprep.subr.bf16.mxu0 %v1403_v6  ;;  %1363 = vmatprep.subr.bf16.mxu1 %v1403_v6  ;;  %v1419_v20 = vld [vmem:[%s1502_s26 + $0x30] sm:$0xff]   ;;  %v1421_v22 = vld [vmem:[%s1502_s26 + $0x38] sm:$0xff]  }
  0x16   : > { %v1420_v21 = vld [vmem:[%s1502_s26 + $0x70] sm:$0xff]   ;;  %v1422_v23 = vld [vmem:[%s1502_s26 + $0x78] sm:$0xff]  }
  0x18   : > { %1320 = vmatpush3.bf16.msra.mxu0 %v1403_v6  ;;  %1371 = vmatpush3.bf16.msra.mxu1 %v1403_v6 }
  0x19   : > { %1321 = vmatprep.subr.bf16.mxu0 %v1404_v7  ;;  %1364 = vmatprep.subr.bf16.mxu1 %v1404_v7 }
  0x1c   : > { %1322 = vmatpush3.bf16.msra.mxu0 %v1404_v7  ;;  %1372 = vmatpush3.bf16.msra.mxu1 %v1404_v7 }
  0x1d   : > { %1323 = vmatprep.subr.bf16.mxu0 %v1405_v8  ;;  %1365 = vmatprep.subr.bf16.mxu1 %v1405_v8 }
  0x20   : > { %1324 = vmatpush3.bf16.msra.mxu0 %v1405_v8  ;;  %1373 = vmatpush3.bf16.msra.mxu1 %v1405_v8 }
  0x21   : > { %1325 = vmatprep.subr.bf16.mxu0 %v1406_v9  ;;  %1366 = vmatprep.subr.bf16.mxu1 %v1406_v9 }
  0x24   : > { %1326 = vmatpush3.bf16.msra.mxu0 %v1406_v9  ;;  %1374 = vmatpush3.bf16.msra.mxu1 %v1406_v9 }
  0x27   : > { %1328 = vmatmul.mubr.bf16.vlgmr.msra.gmra.mrb[0].mxu0 %v1409_v10  ;;  %1344 = vmatmul.mubr.bf16.vlgmr.msra.gmra.mrb[0].mxu1 %v1410_v11 }
  0x28   : > { %1331 = vmatprep.mubr.bf16.mxu0 %v1411_v12  ;;  %1347 = vmatprep.mubr.bf16.mxu1 %v1412_v13 }
  0x2f   : > { %1332 = vmatmul.mubr.bf16.gmra.mrb[4].mxu0 %v1413_v14  ;;  %1348 = vmatmul.mubr.bf16.gmra.mrb[4].mxu1 %v1414_v15 }
  0x30   : > { %1335 = vmatprep.mubr.bf16.mxu0 %v1415_v16  ;;  %1351 = vmatprep.mubr.bf16.mxu1 %v1416_v17 }
  0x37   : > { %1336 = vmatmul.mubr.bf16.gmra.mrb[8].mxu0 %v1417_v18  ;;  %1352 = vmatmul.mubr.bf16.gmra.mrb[8].mxu1 %v1418_v19 }
  0x38   : > { %1339 = vmatprep.mubr.bf16.mxu0 %v1419_v20  ;;  %1355 = vmatprep.mubr.bf16.mxu1 %v1420_v21 }
  0x3f   : > { %1340 = vmatmul.mubr.bf16.gmra.mrb[12].mxu0 %v1421_v22  ;;  %1356 = vmatmul.mubr.bf16.gmra.mrb[12].mxu1 %v1422_v23 }
  0xfa   : > { %v1329_v25 = vpop.f32.mrb[0].mxu0  ;;  %v1345_v26 = vpop.f32.mrb[0].mxu1 }
  0xfb   : > { %v690_v27 = vadd.f32 %v1329_v25, %v1538_v24  ;;  %v706_v28 = vadd.f32 %v1345_v26, %v1538_v24  ;;  %v561_v29 = vpop.f32.mrb[1].mxu0  ;;  %v625_v30 = vpop.f32.mrb[1].mxu1 }
  0xfc   : > { %v688_v31 = vadd.f32 %v1538_v24, %v561_v29  ;;  %v704_v32 = vadd.f32 %v1538_v24, %v625_v30  ;;  %v1330_v33 = vpop.f32.mrb[2].mxu0  ;;  %v1346_v34 = vpop.f32.mrb[2].mxu1 }
  0xfd   : > { %v691_v35 = vadd.f32 %v1330_v33, %v1538_v24  ;;  %v707_v36 = vadd.f32 %v1346_v34, %v1538_v24  ;;  %v564_v37 = vpop.f32.mrb[3].mxu0  ;;  %v628_v38 = vpop.f32.mrb[3].mxu1  ;;  %v789_v41 = vmax.f32 %v690_v27, 0.0  ;;  %v805_v42 = vmax.f32 %v706_v28, 0.0 }
  0xfe   : > { %v689_v39 = vadd.f32 %v1538_v24, %v564_v37  ;;  %v705_v40 = vadd.f32 %v1538_v24, %v628_v38  ;;  %v787_v45 = vmax.f32 %v688_v31, 0.0  ;;  %v803_v46 = vmax.f32 %v704_v32, 0.0 }
  0xff   : > { %v790_v43 = vmax.f32 %v691_v35, 0.0  ;;  %v806_v44 = vmax.f32 %v707_v36, 0.0 }
 0x100   : > { %v788_v47 = vmax.f32 %v689_v39, 0.0  ;;  %v804_v48 = vmax.f32 %v705_v40, 0.0 }
 0x101   : > { %v1200_v49 = vpack.c.bf16 %v790_v43, %v789_v41  ;;  %v1240_v50 = vpack.c.bf16 %v806_v44, %v805_v42 }
 0x102   : > { %v1195_v51 = vpack.c.bf16 %v788_v47, %v787_v45  ;;  %v1235_v52 = vpack.c.bf16 %v804_v48, %v803_v46  ;;  %v1333_v53 = vpop.f32.mrb[4].mxu0  ;;  %v1349_v54 = vpop.f32.mrb[4].mxu1 }
 0x103   : > { %1272 = vst [vmem:[%s1553_s17 + $0x8] sm:$0xff] %v1200_v49   ;;  %1280 = vst [vmem:[%s1553_s17 + $0x48] sm:$0xff] %v1240_v50   ;;  %v694_v55 = vadd.f32 %v1333_v53, %v1538_v24  ;;  %v710_v56 = vadd.f32 %v1349_v54, %v1538_v24  ;;  %v577_v57 = vpop.f32.mrb[5].mxu0  ;;  %v641_v58 = vpop.f32.mrb[5].mxu1 }
 0x104   : > { %1196 = vst [vmem:[%s1553_s17] sm:$0xff] %v1195_v51   ;;  %1279 = vst [vmem:[%s1553_s17 + $0x40] sm:$0xff] %v1235_v52   ;;  %v692_v59 = vadd.f32 %v1538_v24, %v577_v57  ;;  %v708_v60 = vadd.f32 %v1538_v24, %v641_v58  ;;  %v1334_v61 = vpop.f32.mrb[6].mxu0  ;;  %v1350_v62 = vpop.f32.mrb[6].mxu1 }
 0x105   : > { %v695_v63 = vadd.f32 %v1334_v61, %v1538_v24  ;;  %v711_v0 = vadd.f32 %v1350_v62, %v1538_v24  ;;  %v580_v1 = vpop.f32.mrb[7].mxu0  ;;  %v644_v2 = vpop.f32.mrb[7].mxu1  ;;  %v793_v5 = vmax.f32 %v694_v55, 0.0  ;;  %v809_v6 = vmax.f32 %v710_v56, 0.0 }
 0x106   : > { %v693_v3 = vadd.f32 %v1538_v24, %v580_v1  ;;  %v709_v4 = vadd.f32 %v1538_v24, %v644_v2  ;;  %v791_v9 = vmax.f32 %v692_v59, 0.0  ;;  %v807_v10 = vmax.f32 %v708_v60, 0.0 }
 0x107   : > { %v794_v7 = vmax.f32 %v695_v63, 0.0  ;;  %v810_v8 = vmax.f32 %v711_v0, 0.0 }
 0x108   : > { %v792_v11 = vmax.f32 %v693_v3, 0.0  ;;  %v808_v12 = vmax.f32 %v709_v4, 0.0 }
 0x109   : > { %v1210_v13 = vpack.c.bf16 %v794_v7, %v793_v5  ;;  %v1250_v14 = vpack.c.bf16 %v810_v8, %v809_v6 }
 0x10a   : > { %v1205_v15 = vpack.c.bf16 %v792_v11, %v791_v9  ;;  %v1245_v16 = vpack.c.bf16 %v808_v12, %v807_v10  ;;  %v1337_v17 = vpop.f32.mrb[8].mxu0  ;;  %v1353_v18 = vpop.f32.mrb[8].mxu1 }
 0x10b   : > { %1274 = vst [vmem:[%s1553_s17 + $0x18] sm:$0xff] %v1210_v13   ;;  %1282 = vst [vmem:[%s1553_s17 + $0x58] sm:$0xff] %v1250_v14   ;;  %v698_v19 = vadd.f32 %v1337_v17, %v1538_v24  ;;  %v714_v20 = vadd.f32 %v1353_v18, %v1538_v24  ;;  %v593_v21 = vpop.f32.mrb[9].mxu0  ;;  %v657_v22 = vpop.f32.mrb[9].mxu1 }
 0x10c   : > { %1273 = vst [vmem:[%s1553_s17 + $0x10] sm:$0xff] %v1205_v15   ;;  %1281 = vst [vmem:[%s1553_s17 + $0x50] sm:$0xff] %v1245_v16   ;;  %v696_v23 = vadd.f32 %v1538_v24, %v593_v21  ;;  %v712_v25 = vadd.f32 %v1538_v24, %v657_v22  ;;  %v1338_v26 = vpop.f32.mrb[10].mxu0  ;;  %v1354_v27 = vpop.f32.mrb[10].mxu1 }
 0x10d   : > { %v699_v28 = vadd.f32 %v1338_v26, %v1538_v24  ;;  %v715_v29 = vadd.f32 %v1354_v27, %v1538_v24  ;;  %v596_v30 = vpop.f32.mrb[11].mxu0  ;;  %v660_v31 = vpop.f32.mrb[11].mxu1  ;;  %v797_v34 = vmax.f32 %v698_v19, 0.0  ;;  %v813_v35 = vmax.f32 %v714_v20, 0.0 }
 0x10e   : > { %v697_v32 = vadd.f32 %v1538_v24, %v596_v30  ;;  %v713_v33 = vadd.f32 %v1538_v24, %v660_v31  ;;  %v795_v38 = vmax.f32 %v696_v23, 0.0  ;;  %v811_v39 = vmax.f32 %v712_v25, 0.0 }
 0x10f   : > { %v798_v36 = vmax.f32 %v699_v28, 0.0  ;;  %v814_v37 = vmax.f32 %v715_v29, 0.0 }
 0x110   : > { %v796_v40 = vmax.f32 %v697_v32, 0.0  ;;  %v812_v41 = vmax.f32 %v713_v33, 0.0 }
 0x111   : > { %v1220_v42 = vpack.c.bf16 %v798_v36, %v797_v34  ;;  %v1260_v43 = vpack.c.bf16 %v814_v37, %v813_v35 }
 0x112   : > { %v1215_v44 = vpack.c.bf16 %v796_v40, %v795_v38  ;;  %v1255_v45 = vpack.c.bf16 %v812_v41, %v811_v39  ;;  %v1341_v46 = vpop.f32.mrb[12].mxu0  ;;  %v1357_v47 = vpop.f32.mrb[12].mxu1 }
 0x113   : > { %1276 = vst [vmem:[%s1553_s17 + $0x28] sm:$0xff] %v1220_v42   ;;  %1284 = vst [vmem:[%s1553_s17 + $0x68] sm:$0xff] %v1260_v43   ;;  %v702_v48 = vadd.f32 %v1341_v46, %v1538_v24  ;;  %v718_v49 = vadd.f32 %v1357_v47, %v1538_v24  ;;  %v609_v50 = vpop.f32.mrb[13].mxu0  ;;  %v673_v51 = vpop.f32.mrb[13].mxu1 }
 0x114   : > { %1275 = vst [vmem:[%s1553_s17 + $0x20] sm:$0xff] %v1215_v44   ;;  %1283 = vst [vmem:[%s1553_s17 + $0x60] sm:$0xff] %v1255_v45   ;;  %v700_v52 = vadd.f32 %v1538_v24, %v609_v50  ;;  %v716_v53 = vadd.f32 %v1538_v24, %v673_v51  ;;  %v1342_v54 = vpop.f32.mrb[14].mxu0  ;;  %v1358_v55 = vpop.f32.mrb[14].mxu1 }
 0x115   : > { %v703_v56 = vadd.f32 %v1342_v54, %v1538_v24  ;;  %v719_v57 = vadd.f32 %v1358_v55, %v1538_v24  ;;  %v612_v58 = vpop.f32.mrb[15].mxu0  ;;  %v676_v59 = vpop.f32.mrb[15].mxu1  ;;  %v801_v62 = vmax.f32 %v702_v48, 0.0  ;;  %v817_v63 = vmax.f32 %v718_v49, 0.0 }
 0x116   : > { %v701_v60 = vadd.f32 %v1538_v24, %v612_v58  ;;  %v717_v61 = vadd.f32 %v1538_v24, %v676_v59  ;;  %v799_v2 = vmax.f32 %v700_v52, 0.0  ;;  %v815_v3 = vmax.f32 %v716_v53, 0.0 }
 0x117   : > { %v802_v0 = vmax.f32 %v703_v56, 0.0  ;;  %v818_v1 = vmax.f32 %v719_v57, 0.0 }
 0x118   : > { %v800_v4 = vmax.f32 %v701_v60, 0.0  ;;  %v816_v5 = vmax.f32 %v717_v61, 0.0 }
 0x119   : > { %v1230_v6 = vpack.c.bf16 %v802_v0, %v801_v62  ;;  %v1270_v7 = vpack.c.bf16 %v818_v1, %v817_v63 }
 0x11a   : > { %v1225_v8 = vpack.c.bf16 %v800_v4, %v799_v2  ;;  %v1265_v9 = vpack.c.bf16 %v816_v5, %v815_v3 }
 0x11b   : > { %1278 = vst [vmem:[%s1553_s17 + $0x38] sm:$0xff] %v1230_v6   ;;  %1286 = vst [vmem:[%s1553_s17 + $0x78] sm:$0xff] %v1270_v7  }
 0x11c   : > { %1277 = vst [vmem:[%s1553_s17 + $0x30] sm:$0xff] %v1225_v8   ;;  %1285 = vst [vmem:[%s1553_s17 + $0x70] sm:$0xff] %v1265_v9  }
 0x11d PF: > { %s13_s14 = sadd.s32 1, %s1445_s14   ;;  %s1608_s12 = smov %s1441_s13 }
 0x11e   : > { %p10_p5 = scmp.ge.s32.totalorder %s13_s14, 4   ;;  %s1609_s13 = smov %s1611_s15 }
 0x120   :  { %12 = sbr.rel (!%p10_p5) target bundleno = 2 (0x2), region = 76 }

// kernel: dpn_forward.22
= control target key start
LH: loop header
LB: loop body
LE: loop exit
PB: predicated region body
PF: predicated region fallthrough
CT: control target
= control target key end

     0   :  { %s705_s1 = inlined_call_operand.vmem [shape: bf16[128,128], index: 1, kind: input, shape index: {}]   ;;  %s706_s0 = inlined_call_operand.vmem [shape: bf16[128,128], index: 0, kind: input, shape index: {}]   ;;  %s707_s2 = inlined_call_operand.vmem [shape: f32[1,128], index: 2, kind: input, shape index: {}]   ;;  %s708_s3 = inlined_call_operand.vmem [shape: bf16[128,128], index: 3, kind: output, shape index: {}]  }
   0x1   :  { %v594_v0 = vld [vmem:[%s705_s1] sm:$0xff]   ;;  %v595_v1 = vld [vmem:[%s705_s1 + $0x8] sm:$0xff]   ;;  %v596_v2 = vld [vmem:[%s705_s1 + $0x10] sm:$0xff]  }
   0x2   :  { %546 = vmatprep.subr.bf16.mxu0 %v594_v0  ;;  %578 = vmatprep.subr.bf16.mxu1 %v594_v0  ;;  %v597_v3 = vld [vmem:[%s705_s1 + $0x18] sm:$0xff]   ;;  %v602_v4 = vld [vmem:[%s706_s0] sm:$0xff]   ;;  %v599_v7 = vld [vmem:[%s705_s1 + $0x28] sm:$0xff]  }
   0x3   :  { %547 = vmatpush3.bf16.msra.mxu0 %v594_v0  ;;  %586 = vmatpush3.bf16.msra.mxu1 %v594_v0  ;;  %v603_v5 = vld [vmem:[%s706_s0 + $0x20] sm:$0xff]   ;;  %v600_v8 = vld [vmem:[%s705_s1 + $0x30] sm:$0xff]   ;;  %v601_v9 = vld [vmem:[%s705_s1 + $0x38] sm:$0xff]  }
   0x4   :  { %548 = vmatprep.subr.bf16.mxu0 %v595_v1  ;;  %579 = vmatprep.subr.bf16.mxu1 %v595_v1  ;;  %v598_v6 = vld [vmem:[%s705_s1 + $0x20] sm:$0xff]   ;;  %v604_v10 = vld [vmem:[%s706_s0 + $0x8] sm:$0xff]   ;;  %v606_v12 = vld [vmem:[%s706_s0 + $0x10] sm:$0xff]  }
   0x5   :  { %562 = vmatprep.mubr.bf16.mxu0 %v602_v4  ;;  %570 = vmatprep.mubr.bf16.mxu1 %v603_v5  ;;  %v605_v11 = vld [vmem:[%s706_s0 + $0x28] sm:$0xff]   ;;  %v607_v13 = vld [vmem:[%s706_s0 + $0x30] sm:$0xff]   ;;  %v608_v14 = vld [vmem:[%s706_s0 + $0x18] sm:$0xff]  }
   0x6   :  { %v609_v15 = vld [vmem:[%s706_s0 + $0x38] sm:$0xff]   ;;  %v434_v16 = vld [vmem:[%s707_s2] ss:$0 sm:$0xff] }
   0x7   :  { %549 = vmatpush3.bf16.msra.mxu0 %v595_v1  ;;  %587 = vmatpush3.bf16.msra.mxu1 %v595_v1 }
   0x8   :  { %550 = vmatprep.subr.bf16.mxu0 %v596_v2  ;;  %580 = vmatprep.subr.bf16.mxu1 %v596_v2 }
   0xb   :  { %551 = vmatpush3.bf16.msra.mxu0 %v596_v2  ;;  %588 = vmatpush3.bf16.msra.mxu1 %v596_v2 }
   0xc   :  { %552 = vmatprep.subr.bf16.mxu0 %v597_v3  ;;  %581 = vmatprep.subr.bf16.mxu1 %v597_v3 }
   0xf   :  { %553 = vmatpush3.bf16.msra.mxu0 %v597_v3  ;;  %589 = vmatpush3.bf16.msra.mxu1 %v597_v3 }
  0x10   :  { %554 = vmatprep.subr.bf16.mxu0 %v598_v6  ;;  %582 = vmatprep.subr.bf16.mxu1 %v598_v6 }
  0x13   :  { %555 = vmatpush3.bf16.msra.mxu0 %v598_v6  ;;  %590 = vmatpush3.bf16.msra.mxu1 %v598_v6 }
  0x14   :  { %556 = vmatprep.subr.bf16.mxu0 %v599_v7  ;;  %583 = vmatprep.subr.bf16.mxu1 %v599_v7 }
  0x17   :  { %557 = vmatpush3.bf16.msra.mxu0 %v599_v7  ;;  %591 = vmatpush3.bf16.msra.mxu1 %v599_v7 }
  0x18   :  { %558 = vmatprep.subr.bf16.mxu0 %v600_v8  ;;  %584 = vmatprep.subr.bf16.mxu1 %v600_v8 }
  0x1b   :  { %559 = vmatpush3.bf16.msra.mxu0 %v600_v8  ;;  %592 = vmatpush3.bf16.msra.mxu1 %v600_v8 }
  0x1c   :  { %560 = vmatprep.subr.bf16.mxu0 %v601_v9  ;;  %585 = vmatprep.subr.bf16.mxu1 %v601_v9 }
  0x1f   :  { %561 = vmatpush3.bf16.msra.mxu0 %v601_v9  ;;  %593 = vmatpush3.bf16.msra.mxu1 %v601_v9 }
  0x22   :  { %563 = vmatmul.mubr.bf16.vlgmr.msra.gmra.mrb[0].mxu0 %v604_v10  ;;  %571 = vmatmul.mubr.bf16.vlgmr.msra.gmra.mrb[0].mxu1 %v605_v11 }
  0x23   :  { %566 = vmatprep.mubr.bf16.mxu0 %v606_v12  ;;  %574 = vmatprep.mubr.bf16.mxu1 %v607_v13 }
  0x2a   :  { %567 = vmatmul.mubr.bf16.gmra.mrb[4].mxu0 %v608_v14  ;;  %575 = vmatmul.mubr.bf16.gmra.mrb[4].mxu1 %v609_v15 }
  0xf5   :  { %v564_v17 = vpop.f32.mrb[0].mxu0  ;;  %v572_v18 = vpop.f32.mrb[0].mxu1 }
  0xf6   :  { %v285_v19 = vadd.f32 %v564_v17, %v434_v16  ;;  %v293_v20 = vadd.f32 %v572_v18, %v434_v16  ;;  %v220_v21 = vpop.f32.mrb[1].mxu0  ;;  %v252_v22 = vpop.f32.mrb[1].mxu1 }
  0xf7   :  { %v283_v23 = vadd.f32 %v434_v16, %v220_v21  ;;  %v291_v24 = vadd.f32 %v434_v16, %v252_v22  ;;  %v565_v25 = vpop.f32.mrb[2].mxu0  ;;  %v573_v26 = vpop.f32.mrb[2].mxu1 }
  0xf8   :  { %v286_v27 = vadd.f32 %v565_v25, %v434_v16  ;;  %v294_v28 = vadd.f32 %v573_v26, %v434_v16  ;;  %v223_v29 = vpop.f32.mrb[3].mxu0  ;;  %v255_v30 = vpop.f32.mrb[3].mxu1  ;;  %v336_v33 = vmax.f32 %v285_v19, 0.0  ;;  %v344_v34 = vmax.f32 %v293_v20, 0.0 }
  0xf9   :  { %v284_v31 = vadd.f32 %v434_v16, %v223_v29  ;;  %v292_v32 = vadd.f32 %v434_v16, %v255_v30  ;;  %v334_v37 = vmax.f32 %v283_v23, 0.0  ;;  %v342_v38 = vmax.f32 %v291_v24, 0.0 }
  0xfa   :  { %v337_v35 = vmax.f32 %v286_v27, 0.0  ;;  %v345_v36 = vmax.f32 %v294_v28, 0.0 }
  0xfb   :  { %v335_v39 = vmax.f32 %v284_v31, 0.0  ;;  %v343_v40 = vmax.f32 %v292_v32, 0.0 }
  0xfc   :  { %v491_v41 = vpack.c.bf16 %v337_v35, %v336_v33  ;;  %v511_v42 = vpack.c.bf16 %v345_v36, %v344_v34 }
  0xfd   :  { %v486_v43 = vpack.c.bf16 %v335_v39, %v334_v37  ;;  %v506_v44 = vpack.c.bf16 %v343_v40, %v342_v38  ;;  %v568_v45 = vpop.f32.mrb[4].mxu0  ;;  %v576_v46 = vpop.f32.mrb[4].mxu1 }
  0xfe   :  { %523 = vst [vmem:[%s708_s3 + $0x8] sm:$0xff] %v491_v41   ;;  %527 = vst [vmem:[%s708_s3 + $0x28] sm:$0xff] %v511_v42   ;;  %v289_v47 = vadd.f32 %v568_v45, %v434_v16  ;;  %v297_v48 = vadd.f32 %v576_v46, %v434_v16  ;;  %v236_v49 = vpop.f32.mrb[5].mxu0  ;;  %v268_v50 = vpop.f32.mrb[5].mxu1 }
  0xff   :  { %487 = vst [vmem:[%s708_s3] sm:$0xff] %v486_v43   ;;  %526 = vst [vmem:[%s708_s3 + $0x20] sm:$0xff] %v506_v44   ;;  %v287_v51 = vadd.f32 %v434_v16, %v236_v49  ;;  %v295_v52 = vadd.f32 %v434_v16, %v268_v50  ;;  %v569_v53 = vpop.f32.mrb[6].mxu0  ;;  %v577_v54 = vpop.f32.mrb[6].mxu1 }
 0x100   :  { %v290_v55 = vadd.f32 %v569_v53, %v434_v16  ;;  %v298_v56 = vadd.f32 %v577_v54, %v434_v16  ;;  %v239_v57 = vpop.f32.mrb[7].mxu0  ;;  %v271_v58 = vpop.f32.mrb[7].mxu1  ;;  %v340_v61 = vmax.f32 %v289_v47, 0.0  ;;  %v348_v62 = vmax.f32 %v297_v48, 0.0 }
 0x101   :  { %v288_v59 = vadd.f32 %v434_v16, %v239_v57  ;;  %v296_v60 = vadd.f32 %v434_v16, %v271_v58  ;;  %v338_v1 = vmax.f32 %v287_v51, 0.0  ;;  %v346_v2 = vmax.f32 %v295_v52, 0.0 }
 0x102   :  { %v341_v63 = vmax.f32 %v290_v55, 0.0  ;;  %v349_v0 = vmax.f32 %v298_v56, 0.0 }
 0x103   :  { %v339_v3 = vmax.f32 %v288_v59, 0.0  ;;  %v347_v4 = vmax.f32 %v296_v60, 0.0 }
 0x104   :  { %v501_v5 = vpack.c.bf16 %v341_v63, %v340_v61  ;;  %v521_v6 = vpack.c.bf16 %v349_v0, %v348_v62 }
 0x105   :  { %v496_v7 = vpack.c.bf16 %v339_v3, %v338_v1  ;;  %v516_v8 = vpack.c.bf16 %v347_v4, %v346_v2 }
 0x106   :  { %525 = vst [vmem:[%s708_s3 + $0x18] sm:$0xff] %v501_v5   ;;  %529 = vst [vmem:[%s708_s3 + $0x38] sm:$0xff] %v521_v6  }
 0x107   :  { %524 = vst [vmem:[%s708_s3 + $0x10] sm:$0xff] %v496_v7   ;;  %528 = vst [vmem:[%s708_s3 + $0x30] sm:$0xff] %v516_v8  }

// kernel: dpn_forward.24
= control target key start
LH: loop header
LB: loop body
LE: loop exit
PB: predicated region body
PF: predicated region fallthrough
CT: control target
= control target key end

     0   :  { %s689_s1 = inlined_call_operand.vmem [shape: bf16[128,128], index: 1, kind: input, shape index: {}]   ;;  %s690_s0 = inlined_call_operand.vmem [shape: bf16[128,128], index: 0, kind: input, shape index: {}]   ;;  %s691_s2 = inlined_call_operand.vmem [shape: f32[1,128], index: 2, kind: input, shape index: {}]   ;;  %s692_s3 = inlined_call_operand.vmem [shape: bf16[128,128], index: 3, kind: output, shape index: {}]  }
   0x1   :  { %v578_v0 = vld [vmem:[%s689_s1] sm:$0xff]   ;;  %v579_v1 = vld [vmem:[%s689_s1 + $0x8] sm:$0xff]   ;;  %v580_v2 = vld [vmem:[%s689_s1 + $0x10] sm:$0xff]  }
   0x2   :  { %530 = vmatprep.subr.bf16.mxu0 %v578_v0  ;;  %562 = vmatprep.subr.bf16.mxu1 %v578_v0  ;;  %v581_v3 = vld [vmem:[%s689_s1 + $0x18] sm:$0xff]   ;;  %v586_v4 = vld [vmem:[%s690_s0] sm:$0xff]   ;;  %v583_v7 = vld [vmem:[%s689_s1 + $0x28] sm:$0xff]  }
   0x3   :  { %531 = vmatpush3.bf16.msra.mxu0 %v578_v0  ;;  %570 = vmatpush3.bf16.msra.mxu1 %v578_v0  ;;  %v587_v5 = vld [vmem:[%s690_s0 + $0x20] sm:$0xff]   ;;  %v584_v8 = vld [vmem:[%s689_s1 + $0x30] sm:$0xff]   ;;  %v585_v9 = vld [vmem:[%s689_s1 + $0x38] sm:$0xff]  }
   0x4   :  { %532 = vmatprep.subr.bf16.mxu0 %v579_v1  ;;  %563 = vmatprep.subr.bf16.mxu1 %v579_v1  ;;  %v582_v6 = vld [vmem:[%s689_s1 + $0x20] sm:$0xff]   ;;  %v588_v10 = vld [vmem:[%s690_s0 + $0x8] sm:$0xff]   ;;  %v590_v12 = vld [vmem:[%s690_s0 + $0x10] sm:$0xff]  }
   0x5   :  { %546 = vmatprep.mubr.bf16.mxu0 %v586_v4  ;;  %554 = vmatprep.mubr.bf16.mxu1 %v587_v5  ;;  %v589_v11 = vld [vmem:[%s690_s0 + $0x28] sm:$0xff]   ;;  %v591_v13 = vld [vmem:[%s690_s0 + $0x30] sm:$0xff]   ;;  %v592_v14 = vld [vmem:[%s690_s0 + $0x18] sm:$0xff]  }
   0x6   :  { %v593_v15 = vld [vmem:[%s690_s0 + $0x38] sm:$0xff]   ;;  %v418_v16 = vld [vmem:[%s691_s2] ss:$0 sm:$0xff] }
   0x7   :  { %533 = vmatpush3.bf16.msra.mxu0 %v579_v1  ;;  %571 = vmatpush3.bf16.msra.mxu1 %v579_v1 }
   0x8   :  { %534 = vmatprep.subr.bf16.mxu0 %v580_v2  ;;  %564 = vmatprep.subr.bf16.mxu1 %v580_v2 }
   0xb   :  { %535 = vmatpush3.bf16.msra.mxu0 %v580_v2  ;;  %572 = vmatpush3.bf16.msra.mxu1 %v580_v2 }
   0xc   :  { %536 = vmatprep.subr.bf16.mxu0 %v581_v3  ;;  %565 = vmatprep.subr.bf16.mxu1 %v581_v3 }
   0xf   :  { %537 = vmatpush3.bf16.msra.mxu0 %v581_v3  ;;  %573 = vmatpush3.bf16.msra.mxu1 %v581_v3 }
  0x10   :  { %538 = vmatprep.subr.bf16.mxu0 %v582_v6  ;;  %566 = vmatprep.subr.bf16.mxu1 %v582_v6 }
  0x13   :  { %539 = vmatpush3.bf16.msra.mxu0 %v582_v6  ;;  %574 = vmatpush3.bf16.msra.mxu1 %v582_v6 }
  0x14   :  { %540 = vmatprep.subr.bf16.mxu0 %v583_v7  ;;  %567 = vmatprep.subr.bf16.mxu1 %v583_v7 }
  0x17   :  { %541 = vmatpush3.bf16.msra.mxu0 %v583_v7  ;;  %575 = vmatpush3.bf16.msra.mxu1 %v583_v7 }
  0x18   :  { %542 = vmatprep.subr.bf16.mxu0 %v584_v8  ;;  %568 = vmatprep.subr.bf16.mxu1 %v584_v8 }
  0x1b   :  { %543 = vmatpush3.bf16.msra.mxu0 %v584_v8  ;;  %576 = vmatpush3.bf16.msra.mxu1 %v584_v8 }
  0x1c   :  { %544 = vmatprep.subr.bf16.mxu0 %v585_v9  ;;  %569 = vmatprep.subr.bf16.mxu1 %v585_v9 }
  0x1f   :  { %545 = vmatpush3.bf16.msra.mxu0 %v585_v9  ;;  %577 = vmatpush3.bf16.msra.mxu1 %v585_v9 }
  0x22   :  { %547 = vmatmul.mubr.bf16.vlgmr.msra.gmra.mrb[0].mxu0 %v588_v10  ;;  %555 = vmatmul.mubr.bf16.vlgmr.msra.gmra.mrb[0].mxu1 %v589_v11 }
  0x23   :  { %550 = vmatprep.mubr.bf16.mxu0 %v590_v12  ;;  %558 = vmatprep.mubr.bf16.mxu1 %v591_v13 }
  0x2a   :  { %551 = vmatmul.mubr.bf16.gmra.mrb[4].mxu0 %v592_v14  ;;  %559 = vmatmul.mubr.bf16.gmra.mrb[4].mxu1 %v593_v15 }
  0xf5   :  { %v548_v17 = vpop.f32.mrb[0].mxu0  ;;  %v556_v18 = vpop.f32.mrb[0].mxu1 }
  0xf6   :  { %v220_v19 = vpop.f32.mrb[1].mxu0  ;;  %v252_v20 = vpop.f32.mrb[1].mxu1  ;;  %v285_v23 = vadd.f32 %v548_v17, %v418_v16  ;;  %v293_v24 = vadd.f32 %v556_v18, %v418_v16 }
  0xf7   :  { %v549_v21 = vpop.f32.mrb[2].mxu0  ;;  %v557_v22 = vpop.f32.mrb[2].mxu1  ;;  %v283_v29 = vadd.f32 %v418_v16, %v220_v19  ;;  %v291_v30 = vadd.f32 %v418_v16, %v252_v20 }
  0xf8   :  { %v286_v25 = vadd.f32 %v549_v21, %v418_v16  ;;  %v294_v26 = vadd.f32 %v557_v22, %v418_v16  ;;  %v223_v27 = vpop.f32.mrb[3].mxu0  ;;  %v255_v28 = vpop.f32.mrb[3].mxu1 }
  0xf9   :  { %v284_v31 = vadd.f32 %v418_v16, %v223_v27  ;;  %v292_v32 = vadd.f32 %v418_v16, %v255_v28 }
  0xfa   :  { %v475_v33 = vpack.c.bf16 %v286_v25, %v285_v23  ;;  %v495_v34 = vpack.c.bf16 %v294_v26, %v293_v24 }
  0xfb   :  { %v470_v35 = vpack.c.bf16 %v284_v31, %v283_v29  ;;  %v490_v36 = vpack.c.bf16 %v292_v32, %v291_v30 }
  0xfc   :  { %507 = vst [vmem:[%s692_s3 + $0x8] sm:$0xff] %v475_v33   ;;  %511 = vst [vmem:[%s692_s3 + $0x28] sm:$0xff] %v495_v34  }
  0xfd   :  { %471 = vst [vmem:[%s692_s3] sm:$0xff] %v470_v35   ;;  %510 = vst [vmem:[%s692_s3 + $0x20] sm:$0xff] %v490_v36   ;;  %v552_v37 = vpop.f32.mrb[4].mxu0  ;;  %v560_v38 = vpop.f32.mrb[4].mxu1 }
  0xfe   :  { %v236_v39 = vpop.f32.mrb[5].mxu0  ;;  %v268_v40 = vpop.f32.mrb[5].mxu1  ;;  %v289_v43 = vadd.f32 %v552_v37, %v418_v16  ;;  %v297_v44 = vadd.f32 %v560_v38, %v418_v16 }
  0xff   :  { %v553_v41 = vpop.f32.mrb[6].mxu0  ;;  %v561_v42 = vpop.f32.mrb[6].mxu1  ;;  %v287_v49 = vadd.f32 %v418_v16, %v236_v39  ;;  %v295_v50 = vadd.f32 %v418_v16, %v268_v40 }
 0x100   :  { %v290_v45 = vadd.f32 %v553_v41, %v418_v16  ;;  %v298_v46 = vadd.f32 %v561_v42, %v418_v16  ;;  %v239_v47 = vpop.f32.mrb[7].mxu0  ;;  %v271_v48 = vpop.f32.mrb[7].mxu1 }
 0x101   :  { %v288_v51 = vadd.f32 %v418_v16, %v239_v47  ;;  %v296_v52 = vadd.f32 %v418_v16, %v271_v48 }
 0x102   :  { %v485_v53 = vpack.c.bf16 %v290_v45, %v289_v43  ;;  %v505_v54 = vpack.c.bf16 %v298_v46, %v297_v44 }
 0x103   :  { %v480_v55 = vpack.c.bf16 %v288_v51, %v287_v49  ;;  %v500_v56 = vpack.c.bf16 %v296_v52, %v295_v50 }
 0x104   :  { %509 = vst [vmem:[%s692_s3 + $0x18] sm:$0xff] %v485_v53   ;;  %513 = vst [vmem:[%s692_s3 + $0x38] sm:$0xff] %v505_v54  }
 0x105   :  { %508 = vst [vmem:[%s692_s3 + $0x10] sm:$0xff] %v480_v55   ;;  %512 = vst [vmem:[%s692_s3 + $0x30] sm:$0xff] %v500_v56  }

// kernel: dpn_forward.25
= control target key start
LH: loop header
LB: loop body
LE: loop exit
PB: predicated region body
PF: predicated region fallthrough
CT: control target
= control target key end

     0   :  { %v401_v57 = vlaneseq  ;;  %s1195_s1 = inlined_call_operand.vmem [shape: bf16[128,128], index: 1, kind: input, shape index: {}]   ;;  %s1196_s0 = inlined_call_operand.vmem [shape: bf16[128,128], index: 0, kind: input, shape index: {}]   ;;  %s1197_s2 = inlined_call_operand.vmem [shape: f32[1,128], index: 2, kind: input, shape index: {}]   ;;  %s1198_s3 = inlined_call_operand.vmem [shape: bf16[128,128], index: 3, kind: input, shape index: {}]   ;;  %s1199_s4 = inlined_call_operand.vmem [shape: bf16[128,128], index: 4, kind: output, shape index: {}]  }
   0x1   :  { %v810_v0 = vld [vmem:[%s1195_s1] sm:$0xff]   ;;  %v811_v1 = vld [vmem:[%s1195_s1 + $0x8] sm:$0xff]   ;;  %v812_v2 = vld [vmem:[%s1195_s1 + $0x10] sm:$0xff]  }
   0x2   :  { %721 = vmatprep.subr.bf16.mxu0 %v810_v0  ;;  %753 = vmatprep.subr.bf16.mxu1 %v810_v0  ;;  %v813_v3 = vld [vmem:[%s1195_s1 + $0x18] sm:$0xff]   ;;  %v818_v4 = vld [vmem:[%s1196_s0] sm:$0xff]   ;;  %v815_v7 = vld [vmem:[%s1195_s1 + $0x28] sm:$0xff]  }
   0x3   :  { %722 = vmatpush3.bf16.msra.mxu0 %v810_v0  ;;  %761 = vmatpush3.bf16.msra.mxu1 %v810_v0  ;;  %v819_v5 = vld [vmem:[%s1196_s0 + $0x20] sm:$0xff]   ;;  %v816_v8 = vld [vmem:[%s1195_s1 + $0x30] sm:$0xff]   ;;  %v817_v9 = vld [vmem:[%s1195_s1 + $0x38] sm:$0xff]  }
   0x4   :  { %723 = vmatprep.subr.bf16.mxu0 %v811_v1  ;;  %754 = vmatprep.subr.bf16.mxu1 %v811_v1  ;;  %v814_v6 = vld [vmem:[%s1195_s1 + $0x20] sm:$0xff]   ;;  %v820_v10 = vld [vmem:[%s1196_s0 + $0x8] sm:$0xff]   ;;  %v822_v12 = vld [vmem:[%s1196_s0 + $0x10] sm:$0xff]  }
   0x5   :  { %737 = vmatprep.mubr.bf16.mxu0 %v818_v4  ;;  %745 = vmatprep.mubr.bf16.mxu1 %v819_v5  ;;  %v821_v11 = vld [vmem:[%s1196_s0 + $0x28] sm:$0xff]   ;;  %v824_v13 = vld [vmem:[%s1196_s0 + $0x30] sm:$0xff]   ;;  %v823_v14 = vld [vmem:[%s1196_s0 + $0x18] sm:$0xff]  }
   0x6   :  { %v825_v15 = vld [vmem:[%s1196_s0 + $0x38] sm:$0xff]   ;;  %v570_v16 = vld [vmem:[%s1197_s2] ss:$0 sm:$0xff]  ;;  %s826_s0 = smov 4   ;;  %v691_v58 = vld [vmem:[%s1198_s3 + $0x8] sm:$0xff]  }
   0x7   :  { %724 = vmatpush3.bf16.msra.mxu0 %v811_v1  ;;  %762 = vmatpush3.bf16.msra.mxu1 %v811_v1  ;;  %v951_v59 = vld [vmem:[%s1198_s3] sm:$0xff]   ;;  %v695_v60 = vld [vmem:[%s1198_s3 + $0x28] sm:$0xff]   ;;  %v964_v62 = vld [vmem:[%s1198_s3 + $0x18] sm:$0xff]   ;;  %v625_v0 = vunpack.c.l.bf16 %v691_v58 }
   0x8   :  { %725 = vmatprep.subr.bf16.mxu0 %v812_v2  ;;  %755 = vmatprep.subr.bf16.mxu1 %v812_v2  ;;  %v959_v61 = vld [vmem:[%s1198_s3 + $0x20] sm:$0xff]   ;;  %v969_v63 = vld [vmem:[%s1198_s3 + $0x10] sm:$0xff]   ;;  %v621_v1 = vunpack.c.l.bf16 %v951_v59  ;;  %v641_v4 = vunpack.c.l.bf16 %v695_v60 }
   0x9   :  { %v637_v5 = vunpack.c.l.bf16 %v959_v61 }
   0xb   :  { %726 = vmatpush3.bf16.msra.mxu0 %v812_v2  ;;  %763 = vmatpush3.bf16.msra.mxu1 %v812_v2  ;;  %v975_v2 = vld [vmem:[%s1198_s3 + $0x38] sm:$0xff]  }
   0xc   :  { %727 = vmatprep.subr.bf16.mxu0 %v813_v3  ;;  %756 = vmatprep.subr.bf16.mxu1 %v813_v3 }
   0xf   :  { %728 = vmatpush3.bf16.msra.mxu0 %v813_v3  ;;  %764 = vmatpush3.bf16.msra.mxu1 %v813_v3  ;;  %v977_v3 = vand.u32 127, %v401_v57 }
  0x10   :  { %729 = vmatprep.subr.bf16.mxu0 %v814_v6  ;;  %757 = vmatprep.subr.bf16.mxu1 %v814_v6 }
  0x11   :  { %vm403_vm0 = vcmp.lt.s32.totalorder %v977_v3, 16  ;;  %vm420_vm1 = vcmp.lt.s32.totalorder %v977_v3, 20  ;;  %vm421_vm2 = vcmp.lt.s32.totalorder %v977_v3, 24 }
  0x13   :  { %730 = vmatpush3.bf16.msra.mxu0 %v814_v6  ;;  %765 = vmatpush3.bf16.msra.mxu1 %v814_v6  ;;  %v626_v6 = vunpack.c.h.bf16 %v691_v58 }
  0x14   :  { %731 = vmatprep.subr.bf16.mxu0 %v815_v7  ;;  %758 = vmatprep.subr.bf16.mxu1 %v815_v7 }
  0x17   :  { %732 = vmatpush3.bf16.msra.mxu0 %v815_v7  ;;  %766 = vmatpush3.bf16.msra.mxu1 %v815_v7  ;;  %v622_v7 = vunpack.c.h.bf16 %v951_v59 }
  0x18   :  { %733 = vmatprep.subr.bf16.mxu0 %v816_v8  ;;  %759 = vmatprep.subr.bf16.mxu1 %v816_v8 }
  0x1b   :  { %734 = vmatpush3.bf16.msra.mxu0 %v816_v8  ;;  %767 = vmatpush3.bf16.msra.mxu1 %v816_v8  ;;  %v984_v8 = vld [vmem:[%s1198_s3 + $0x30] sm:$0xff]  }
  0x1c   :  { %735 = vmatprep.subr.bf16.mxu0 %v817_v9  ;;  %760 = vmatprep.subr.bf16.mxu1 %v817_v9 }
  0x1f   :  { %736 = vmatpush3.bf16.msra.mxu0 %v817_v9  ;;  %768 = vmatpush3.bf16.msra.mxu1 %v817_v9  ;;  %v642_v9 = vunpack.c.h.bf16 %v695_v60 }
  0x22   :  { %738 = vmatmul.mubr.bf16.vlgmr.msra.gmra.mrb[0].mxu0 %v820_v10  ;;  %746 = vmatmul.mubr.bf16.vlgmr.msra.gmra.mrb[0].mxu1 %v821_v11  ;;  %v638_v10 = vunpack.c.h.bf16 %v959_v61  ;;  %v633_v11 = vunpack.c.l.bf16 %v964_v62 }
  0x23   :  { %741 = vmatprep.mubr.bf16.mxu0 %v822_v12  ;;  %749 = vmatprep.mubr.bf16.mxu1 %v824_v13  ;;  %v629_v12 = vunpack.c.l.bf16 %v969_v63  ;;  %v634_v13 = vunpack.c.h.bf16 %v964_v62 }
  0x2a   :  { %742 = vmatmul.mubr.bf16.gmra.mrb[4].mxu0 %v823_v14  ;;  %750 = vmatmul.mubr.bf16.gmra.mrb[4].mxu1 %v825_v15  ;;  %v649_v14 = vunpack.c.l.bf16 %v975_v2  ;;  %v630_v15 = vunpack.c.h.bf16 %v969_v63 }
  0xf5   :  { %v739_v17 = vpop.f32.mrb[0].mxu0  ;;  %v747_v18 = vpop.f32.mrb[0].mxu1 }
  0xf6   :  { %v903_v19 = vadd.f32 %v747_v18, %v570_v16  ;;  %v223_v20 = vpop.f32.mrb[1].mxu0  ;;  %v255_v21 = vpop.f32.mrb[1].mxu1  ;;  %v907_v25 = vadd.f32 %v739_v17, %v570_v16  ;;  %v645_v17 = vunpack.c.l.bf16 %v984_v8  ;;  %v646_v18 = vunpack.c.h.bf16 %v984_v8 }
  0xf7   :  { %v905_v22 = vadd.f32 %v570_v16, %v255_v21  ;;  %v740_v23 = vpop.f32.mrb[2].mxu0  ;;  %v748_v24 = vpop.f32.mrb[2].mxu1  ;;  %v913_v30 = vadd.f32 %v570_v16, %v223_v20 }
  0xf8   :  { %v909_v26 = vadd.f32 %v740_v23, %v570_v16  ;;  %v911_v27 = vadd.f32 %v748_v24, %v570_v16  ;;  %v226_v28 = vpop.f32.mrb[3].mxu0  ;;  %v258_v29 = vpop.f32.mrb[3].mxu1  ;;  %v406_v20 = vadd.f32 %v625_v0, %v907_v25  ;;  %v414_v21 = vadd.f32 %v641_v4, %v903_v19 }
  0xf9   :  { %v915_v31 = vadd.f32 %v570_v16, %v226_v28  ;;  %v917_v32 = vadd.f32 %v570_v16, %v258_v29  ;;  %v404_v23 = vadd.f32 %v621_v1, %v913_v30  ;;  %v1006_v24 = vadd.f32 %v637_v5, %v905_v22 }
  0xfa   :  { %v775_v33 = vpack.i.bf16 %v911_v27, %v903_v19  ;;  %v770_v34 = vpack.i.bf16 %v909_v26, %v907_v25  ;;  %v407_v28 = vadd.f32 %v626_v6, %v909_v26  ;;  %v415_v29 = vadd.f32 %v642_v9, %v911_v27 }
  0xfb   :  { %v780_v35 = vpack.i.bf16 %v915_v31, %v913_v30  ;;  %v785_v36 = vpack.i.bf16 %v917_v32, %v905_v22  ;;  %v405_v25 = vadd.f32 %v622_v7, %v915_v31 }
  0xfc   :  { %776 = vrot.lane.b32.xlu1 %v775_v33, %s826_s0  ;;  %771 = vrot.lane.b32.xlu0 %v770_v34, %s826_s0 }
  0xfd   :  { %v743_v37 = vpop.f32.mrb[4].mxu0  ;;  %v751_v38 = vpop.f32.mrb[4].mxu1 }
  0xfe   :  { %v239_v39 = vpop.f32.mrb[5].mxu0  ;;  %v927_v40 = vadd.f32 %v751_v38, %v570_v16  ;;  %v271_v41 = vpop.f32.mrb[5].mxu1  ;;  %v292_v45 = vadd.f32 %v743_v37, %v570_v16  ;;  %v413_v37 = vadd.f32 %v638_v10, %v917_v32 }
  0xff   :  { %v744_v42 = vpop.f32.mrb[6].mxu0  ;;  %v929_v43 = vadd.f32 %v570_v16, %v271_v41  ;;  %v752_v44 = vpop.f32.mrb[6].mxu1  ;;  %v290_v50 = vadd.f32 %v570_v16, %v239_v39 }
 0x100   :  { %v931_v46 = vadd.f32 %v744_v42, %v570_v16  ;;  %781 = vrot.lane.b32.xlu0 %v780_v35, %s826_s0  ;;  %v242_v47 = vpop.f32.mrb[7].mxu0  ;;  %v933_v48 = vadd.f32 %v752_v44, %v570_v16  ;;  %v274_v49 = vpop.f32.mrb[7].mxu1  ;;  %v1018_v22 = vadd.f32 %v633_v11, %v292_v45  ;;  %v418_v63 = vadd.f32 %v649_v14, %v927_v40 }
 0x101   :  { %v935_v51 = vadd.f32 %v570_v16, %v242_v47  ;;  %v937_v52 = vadd.f32 %v570_v16, %v274_v49  ;;  %v650_v16 = vunpack.c.h.bf16 %v975_v2  ;;  %v1022_v26 = vadd.f32 %v629_v12, %v290_v50 }
 0x102   :  { %v790_v53 = vpack.i.bf16 %v931_v46, %v292_v45  ;;  %v805_v54 = vpack.i.bf16 %v933_v48, %v927_v40  ;;  %v1027_v27 = vadd.f32 %v645_v17, %v929_v43  ;;  %v411_v58 = vadd.f32 %v634_v13, %v931_v46 }
 0x103   :  { %v795_v55 = vpack.i.bf16 %v935_v51, %v290_v50  ;;  %v800_v56 = vpack.i.bf16 %v937_v52, %v929_v43  ;;  %v1059_v60 = vadd.f32 %v650_v16, %v933_v48 }
 0x104   :  { %786 = vrot.lane.b32.xlu0 %v785_v36, %s826_s0  ;;  %791 = vrot.lane.b32.xlu1 %v790_v53, %s826_s0 }
 0x108   :  { %801 = vrot.lane.b32.xlu0 %v800_v56, %s826_s0  ;;  %796 = vrot.lane.b32.xlu1 %v795_v55, %s826_s0 }
 0x10c   :  { %806 = vrot.lane.b32.xlu1 %v805_v54, %s826_s0 }
 0x16e   :  { %v777_v19 = vpop.permute.xlu1 %776  ;;  %v772_v33 = vpop.permute.xlu0 %771 }
 0x16f   :  { %v779_v34 = vunpack.i.h.bf16 %v777_v19  ;;  %v778_v35 = vunpack.i.l.bf16 %v777_v19  ;;  %v774_v30 = vunpack.i.h.bf16 %v772_v33  ;;  %v773_v36 = vunpack.i.l.bf16 %v772_v33 }
 0x171   :  { %v433_v31 = vsel %vm421_vm2, %v779_v34, 0.0  ;;  %v432_v38 = vsel %vm421_vm2, %v778_v35, 0.0  ;;  %v425_v32 = vsel %vm421_vm2, %v774_v30, 0.0  ;;  %v424_v39 = vsel %vm421_vm2, %v773_v36, 0.0 }
 0x172   :  { %v449_v41 = vsel %vm420_vm1, %v642_v9, %v433_v31  ;;  %v448_v42 = vsel %vm420_vm1, %v641_v4, %v432_v38  ;;  %v441_v43 = vsel %vm420_vm1, %v626_v6, %v425_v32  ;;  %v440_v44 = vsel %vm420_vm1, %v625_v0, %v424_v39  ;;  %v782_v45 = vpop.permute.xlu0 %781 }
 0x173   :  { %v464_v47 = vsel %vm403_vm0, %v414_v21, %v448_v42  ;;  %v465_v49 = vsel %vm403_vm0, %v415_v29, %v449_v41  ;;  %v456_v50 = vsel %vm403_vm0, %v406_v20, %v440_v44  ;;  %v457_v53 = vsel %vm403_vm0, %v407_v28, %v441_v43 }
 0x174   :  { %v480_v54 = vmax.f32 %v464_v47, 0.0  ;;  %v481_v55 = vmax.f32 %v465_v49, 0.0  ;;  %v472_v56 = vmax.f32 %v456_v50, 0.0  ;;  %v473_v57 = vmax.f32 %v457_v53, 0.0 }
 0x175   :  { %v784_v0 = vunpack.i.h.bf16 %v782_v45  ;;  %v783_v4 = vunpack.i.l.bf16 %v782_v45  ;;  %v409_v6 = vadd.f32 %v630_v15, %v935_v51  ;;  %v417_v9 = vadd.f32 %v646_v18, %v937_v52 }
 0x176   :  { %v679_v20 = vpack.c.bf16 %v481_v55, %v480_v54  ;;  %v659_v21 = vpack.c.bf16 %v473_v57, %v472_v56  ;;  %v787_v28 = vpop.permute.xlu0 %786  ;;  %v792_v29 = vpop.permute.xlu1 %791 }
 0x177   :  { %v423_v46 = vsel %vm421_vm2, %v784_v0, 0.0  ;;  %v422_v48 = vsel %vm421_vm2, %v783_v4, 0.0  ;;  %v789_v19 = vunpack.i.h.bf16 %v787_v28  ;;  %v788_v33 = vunpack.i.l.bf16 %v787_v28 }
 0x178   :  { %702 = vst [vmem:[%s1199_s4 + $0x28] sm:$0xff] %v679_v20   ;;  %698 = vst [vmem:[%s1199_s4 + $0x8] sm:$0xff] %v659_v21   ;;  %v439_v51 = vsel %vm420_vm1, %v622_v7, %v423_v46  ;;  %v438_v52 = vsel %vm420_vm1, %v621_v1, %v422_v48  ;;  %v794_v34 = vunpack.i.h.bf16 %v792_v29  ;;  %v793_v35 = vunpack.i.l.bf16 %v792_v29 }
 0x179   :  { %v454_v30 = vsel %vm403_vm0, %v404_v23, %v438_v52  ;;  %v455_v36 = vsel %vm403_vm0, %v405_v25, %v439_v51  ;;  %v431_v31 = vsel %vm421_vm2, %v789_v19, 0.0  ;;  %v430_v38 = vsel %vm421_vm2, %v788_v33, 0.0 }
 0x17a   :  { %v470_v7 = vmax.f32 %v454_v30, 0.0  ;;  %v471_v32 = vmax.f32 %v455_v36, 0.0  ;;  %v447_v59 = vsel %vm420_vm1, %v638_v10, %v431_v31  ;;  %v446_v1 = vsel %vm420_vm1, %v637_v5, %v430_v38  ;;  %v802_v23 = vpop.permute.xlu0 %801  ;;  %v797_v25 = vpop.permute.xlu1 %796 }
 0x17b   :  { %v463_v39 = vsel %vm403_vm0, %v413_v37, %v447_v59  ;;  %v462_v41 = vsel %vm403_vm0, %v1006_v24, %v446_v1  ;;  %v429_v42 = vsel %vm421_vm2, %v794_v34, 0.0  ;;  %v428_v10 = vsel %vm421_vm2, %v793_v35, 0.0 }
 0x17c   :  { %v654_v43 = vpack.c.bf16 %v471_v32, %v470_v7  ;;  %v479_v61 = vmax.f32 %v463_v39, 0.0  ;;  %v478_v44 = vmax.f32 %v462_v41, 0.0  ;;  %v445_v5 = vsel %vm420_vm1, %v634_v13, %v429_v42 }
 0x17d   :  { %v444_v37 = vsel %vm420_vm1, %v633_v11, %v428_v10  ;;  %v461_v24 = vsel %vm403_vm0, %v411_v58, %v445_v5  ;;  %v804_v45 = vunpack.i.h.bf16 %v802_v23  ;;  %v803_v47 = vunpack.i.l.bf16 %v802_v23 }
 0x17e   :  { %655 = vst [vmem:[%s1199_s4] sm:$0xff] %v654_v43   ;;  %v674_v49 = vpack.c.bf16 %v479_v61, %v478_v44  ;;  %v460_v50 = vsel %vm403_vm0, %v1018_v22, %v444_v37  ;;  %v477_v13 = vmax.f32 %v461_v24, 0.0  ;;  %v799_v53 = vunpack.i.h.bf16 %v797_v25  ;;  %v807_v62 = vpop.permute.xlu1 %806 }
 0x17f   :  { %v476_v54 = vmax.f32 %v460_v50, 0.0  ;;  %v435_v11 = vsel %vm421_vm2, %v804_v45, 0.0  ;;  %v434_v55 = vsel %vm421_vm2, %v803_v47, 0.0  ;;  %v798_v56 = vunpack.i.l.bf16 %v797_v25 }
 0x180   :  { %701 = vst [vmem:[%s1199_s4 + $0x20] sm:$0xff] %v674_v49   ;;  %v451_v22 = vsel %vm420_vm1, %v646_v18, %v435_v11  ;;  %v450_v57 = vsel %vm420_vm1, %v645_v17, %v434_v55  ;;  %v427_v58 = vsel %vm421_vm2, %v799_v53, 0.0  ;;  %v809_v0 = vunpack.i.h.bf16 %v807_v62 }
 0x181   :  { %v669_v4 = vpack.c.bf16 %v477_v13, %v476_v54  ;;  %v467_v20 = vsel %vm403_vm0, %v417_v9, %v451_v22  ;;  %v466_v21 = vsel %vm403_vm0, %v1027_v27, %v450_v57  ;;  %v443_v8 = vsel %vm420_vm1, %v630_v15, %v427_v58 }
 0x182   :  { %v483_v18 = vmax.f32 %v467_v20, 0.0  ;;  %v482_v28 = vmax.f32 %v466_v21, 0.0  ;;  %v426_v17 = vsel %vm421_vm2, %v798_v56, 0.0  ;;  %v459_v29 = vsel %vm403_vm0, %v409_v6, %v443_v8 }
 0x183   :  { %700 = vst [vmem:[%s1199_s4 + $0x18] sm:$0xff] %v669_v4   ;;  %v442_v27 = vsel %vm420_vm1, %v629_v12, %v426_v17  ;;  %v475_v9 = vmax.f32 %v459_v29, 0.0  ;;  %v437_v15 = vsel %vm421_vm2, %v809_v0, 0.0  ;;  %v808_v46 = vunpack.i.l.bf16 %v807_v62 }
 0x184   :  { %v684_v48 = vpack.c.bf16 %v483_v18, %v482_v28  ;;  %v458_v19 = vsel %vm403_vm0, %v1022_v26, %v442_v27  ;;  %v453_v6 = vsel %vm420_vm1, %v650_v16, %v437_v15 }
 0x185   :  { %v474_v12 = vmax.f32 %v458_v19, 0.0  ;;  %v469_v33 = vsel %vm403_vm0, %v1059_v60, %v453_v6  ;;  %v436_v51 = vsel %vm421_vm2, %v808_v46, 0.0 }
 0x186   :  { %703 = vst [vmem:[%s1199_s4 + $0x30] sm:$0xff] %v684_v48   ;;  %v485_v26 = vmax.f32 %v469_v33, 0.0  ;;  %v452_v16 = vsel %vm420_vm1, %v649_v14, %v436_v51 }
 0x187   :  { %v664_v52 = vpack.c.bf16 %v475_v9, %v474_v12  ;;  %v468_v40 = vsel %vm403_vm0, %v418_v63, %v452_v16 }
 0x188   :  { %v484_v34 = vmax.f32 %v468_v40, 0.0 }
 0x189   :  { %699 = vst [vmem:[%s1199_s4 + $0x10] sm:$0xff] %v664_v52  }
 0x18a   :  { %v689_v60 = vpack.c.bf16 %v485_v26, %v484_v34 }
 0x18c   :  { %704 = vst [vmem:[%s1199_s4 + $0x38] sm:$0xff] %v689_v60  }

// kernel: dpn_forward.23
= control target key start
LH: loop header
LB: loop body
LE: loop exit
PB: predicated region body
PF: predicated region fallthrough
CT: control target
= control target key end

     0   :  { %s1641_s12 = smov 0   ;;  %s1643_s13 = smov 0   ;;  %s1855_s0 = inlined_call_operand.vmem [shape: bf16[128,1152], index: 0, kind: input, shape index: {}]   ;;  %s1856_s1 = inlined_call_operand.vmem [shape: bf16[1152,128], index: 1, kind: input, shape index: {}]   ;;  %s1857_s2 = inlined_call_operand.vmem [shape: f32[1,128], index: 2, kind: input, shape index: {}]   ;;  %s1858_s3 = inlined_call_operand.vmem [shape: bf16[128,128], index: 3, kind: output, shape index: {}]  }
   0x1   :  { %s1645_s14 = smov 0   ;;  %s1647_s15 = smov 0  }
   0x2   :  { %s1649_s16 = smov 0  }
   0x3 LB: > { %s25_s17 = sadd.s32 1, %s1615_s15  ;;  %p48_p1 = scmp.ne.s32.totalorder %s1607_s13, %s1603_s12  ;;  %s1619_s16 = sphi %s1649_s16, %s13_s16   ;;  %s1615_s15 = sphi %s1647_s15, %s1862_s15   ;;  %s1611_s14 = sphi %s1645_s14, %s1861_s14   ;;  %s1607_s13 = sphi %s1643_s13, %s1860_s13   ;;  %s1603_s12 = sphi %s1641_s12, %s1859_s12  }
   0x4   : > { %p26_p0 = scmp.ge.s32.totalorder %s25_s17, 3  ;;  %p49_p2 = scmp.eq.s32.totalorder %s1619_s16, 0 }
   0x5   : > { %s41_s19 = sadd.s32 1, %s1607_s13  ;;  %p1200_p5 = scmp.ge.s32.totalorder %s1619_s16, 3 }
   0x6   : > { %s1864_s17 = smov (%p26_p0, %s25_s17), 0  ;;  %p50_p3 = por %p49_p2, %p48_p1 }
   0x7   : > { %s37_s18 = ssub.s32 %s1615_s15, %s1864_s17  ;;  %162 = sbr.rel (%p1200_p5) target bundleno = 37 (0x25), region = 20 }
   0x8   : > { %p39_p4 = scmp.eq.s32.totalorder %s37_s18, 0 }
   0xa   : > { %s1676_s20 = scalar_select %p39_p4, %s1607_s13, %s41_s19  }
   0xe   : > { %165 = sbr.rel (!%p50_p3) target bundleno = 37 (0x25), region = 24  ;;  %s167_s21 = sand.u32 (%p50_p3), 1, %s1607_s13  }
   0xf   : > { %s1307_s22 = smul.u32 (%p50_p3), 12, %s1615_s15 }
  0x10   : > { %s1483_s23 = smul.u32 (%p50_p3), 192, %s167_s21 }
  0x11   : > { %s1684_s26 = scalar_lea.vmem (%p50_p3), %s1855_s0, %s1307_s22 }
  0x12   : > { %v190_v0 = vld [vmem:[%s1684_s26] sm:$0xff] (%p50_p3)  ;;  %v194_v2 = vld [vmem:[%s1684_s26 + $0x48] sm:$0xff] (%p50_p3)  ;;  %s1689_s27 = scalar_lea.vmem (%p50_p3), [#allocation3], %s1483_s23  ;;  %v198_v4 = vld [vmem:[%s1684_s26 + $0x90] sm:$0xff] (%p50_p3) }
  0x13   : > { %v192_v1 = vld [vmem:[%s1684_s26 + $0x24] sm:$0xff] (%p50_p3)  ;;  %191 = vst [vmem:[%s1689_s27] sm:$0xff] (%p50_p3), %v190_v0  ;;  %195 = vst [vmem:[%s1689_s27 + $0x18] sm:$0xff] (%p50_p3), %v194_v2  ;;  %v196_v3 = vld [vmem:[%s1684_s26 + $0x6c] sm:$0xff] (%p50_p3) }
  0x14   : > { %193 = vst [vmem:[%s1689_s27 + $0xc] sm:$0xff] (%p50_p3), %v192_v1  ;;  %v200_v5 = vld [vmem:[%s1684_s26 + $0xb4] sm:$0xff] (%p50_p3)  ;;  %197 = vst [vmem:[%s1689_s27 + $0x24] sm:$0xff] (%p50_p3), %v196_v3  ;;  %v204_v7 = vld [vmem:[%s1684_s26 + $0xfc] sm:$0xff] (%p50_p3) }
  0x15   : > { %199 = vst [vmem:[%s1689_s27 + $0x30] sm:$0xff] %v198_v4  ;;  %201 = vst [vmem:[%s1689_s27 + $0x3c] sm:$0xff] %v200_v5  ;;  %v202_v6 = vld [vmem:[%s1684_s26 + $0xd8] sm:$0xff]  ;;  %v206_v8 = vld [vmem:[%s1684_s26 + $0x120] sm:$0xff] }
  0x16   : > { %203 = vst [vmem:[%s1689_s27 + $0x48] sm:$0xff] %v202_v6  ;;  %205 = vst [vmem:[%s1689_s27 + $0x54] sm:$0xff] %v204_v7  ;;  %v208_v9 = vld [vmem:[%s1684_s26 + $0x144] sm:$0xff]  ;;  %v212_v11 = vld [vmem:[%s1684_s26 + $0x18c] sm:$0xff] }
  0x17   : > { %207 = vst [vmem:[%s1689_s27 + $0x60] sm:$0xff] %v206_v8  ;;  %v210_v10 = vld [vmem:[%s1684_s26 + $0x168] sm:$0xff]  ;;  %209 = vst [vmem:[%s1689_s27 + $0x6c] sm:$0xff] %v208_v9  ;;  %v214_v12 = vld [vmem:[%s1684_s26 + $0x1b0] sm:$0xff] }
  0x18   : > { %211 = vst [vmem:[%s1689_s27 + $0x78] sm:$0xff] %v210_v10  ;;  %213 = vst [vmem:[%s1689_s27 + $0x84] sm:$0xff] %v212_v11  ;;  %v216_v13 = vld [vmem:[%s1684_s26 + $0x1d4] sm:$0xff]  ;;  %v220_v15 = vld [vmem:[%s1684_s26 + $0x21c] sm:$0xff] }
  0x19   : > { %v218_v14 = vld [vmem:[%s1684_s26 + $0x1f8] sm:$0xff]  ;;  %215 = vst [vmem:[%s1689_s27 + $0x90] sm:$0xff] %v214_v12  ;;  %217 = vst [vmem:[%s1689_s27 + $0x9c] sm:$0xff] %v216_v13  ;;  %v1202_v16 = vld [vmem:[%s1684_s26 + $0x8] sm:$0xf] }
  0x1a   : > { %219 = vst [vmem:[%s1689_s27 + $0xa8] sm:$0xff] %v218_v14  ;;  %v1204_v17 = vld [vmem:[%s1684_s26 + $0x2c] sm:$0xf]  ;;  %221 = vst [vmem:[%s1689_s27 + $0xb4] sm:$0xff] %v220_v15  ;;  %v1206_v18 = vld [vmem:[%s1684_s26 + $0x50] sm:$0xf] }
  0x1b   : > { %1203 = vst [vmem:[%s1689_s27 + $0x8] sm:$0xf] %v1202_v16  ;;  %1205 = vst [vmem:[%s1689_s27 + $0x14] sm:$0xf] %v1204_v17  ;;  %v1208_v19 = vld [vmem:[%s1684_s26 + $0x74] sm:$0xf] }
  0x1c   : > { %v1210_v20 = vld [vmem:[%s1684_s26 + $0x98] sm:$0xf]  ;;  %1207 = vst [vmem:[%s1689_s27 + $0x20] sm:$0xf] %v1206_v18  ;;  %1209 = vst [vmem:[%s1689_s27 + $0x2c] sm:$0xf] %v1208_v19 }
  0x1d   : > { %1211 = vst [vmem:[%s1689_s27 + $0x38] sm:$0xf] %v1210_v20  ;;  %v1212_v21 = vld [vmem:[%s1684_s26 + $0xbc] sm:$0xf]  ;;  %v1214_v22 = vld [vmem:[%s1684_s26 + $0xe0] sm:$0xf] }
  0x1e   : > { %v1216_v23 = vld [vmem:[%s1684_s26 + $0x104] sm:$0xf]  ;;  %1213 = vst [vmem:[%s1689_s27 + $0x44] sm:$0xf] %v1212_v21  ;;  %1215 = vst [vmem:[%s1689_s27 + $0x50] sm:$0xf] %v1214_v22 }
  0x1f   : > { %1217 = vst [vmem:[%s1689_s27 + $0x5c] sm:$0xf] %v1216_v23  ;;  %v1218_v24 = vld [vmem:[%s1684_s26 + $0x128] sm:$0xf]  ;;  %v1220_v25 = vld [vmem:[%s1684_s26 + $0x14c] sm:$0xf] }
  0x20   : > { %v1222_v26 = vld [vmem:[%s1684_s26 + $0x170] sm:$0xf]  ;;  %1219 = vst [vmem:[%s1689_s27 + $0x68] sm:$0xf] %v1218_v24  ;;  %1221 = vst [vmem:[%s1689_s27 + $0x74] sm:$0xf] %v1220_v25 }
  0x21   : > { %1223 = vst [vmem:[%s1689_s27 + $0x80] sm:$0xf] %v1222_v26  ;;  %v1224_v27 = vld [vmem:[%s1684_s26 + $0x194] sm:$0xf]  ;;  %v1226_v28 = vld [vmem:[%s1684_s26 + $0x1b8] sm:$0xf] }
  0x22   : > { %v1228_v29 = vld [vmem:[%s1684_s26 + $0x1dc] sm:$0xf]  ;;  %1225 = vst [vmem:[%s1689_s27 + $0x8c] sm:$0xf] %v1224_v27  ;;  %1227 = vst [vmem:[%s1689_s27 + $0x98] sm:$0xf] %v1226_v28 }
  0x23   : > { %1229 = vst [vmem:[%s1689_s27 + $0xa4] sm:$0xf] %v1228_v29  ;;  %v1230_v30 = vld [vmem:[%s1684_s26 + $0x200] sm:$0xf]  ;;  %v1232_v31 = vld [vmem:[%s1684_s26 + $0x224] sm:$0xf] }
  0x24   : > { %1231 = vst [vmem:[%s1689_s27 + $0xb0] sm:$0xf] %v1230_v30  ;;  %1233 = vst [vmem:[%s1689_s27 + $0xbc] sm:$0xf] %v1232_v31 }
  0x25 PF: > { %p1234_p6 = scmp.ge.s32.totalorder %s1619_s16, 1  ;;  %p277_p7 = scmp.lt.s32.totalorder %s1619_s16, 4 }
  0x27   : > { %p278_p8 = pnand %p1234_p6, %p277_p7 }
  0x28   : > { %s284_s28 = sand.u32 (!%p278_p8), 1, %s1603_s12   ;;  %s323_s29 = smul.u32 (!%p278_p8), 48, %s1611_s14 }
  0x29   : > { %281 = sbr.rel (%p278_p8) target bundleno = 381 (0x17d), region = 54  ;;  %p1236_p10 = scmp.ne.s32.totalorder (!%p278_p8), %s1611_s14, 0 }
  0x2a   : > { %s1484_s30 = smul.u32 (!%p278_p8), 192, %s284_s28  ;;  %p324_p9 = scmp.lt.s32.totalorder (!%p278_p8), %s323_s29, 143 }
  0x2c   : > { %s1761_s8 = scalar_lea.vmem (!%p278_p8), [#allocation3], %s1484_s30 }
  0x30   : > { %s1866_s29 = smov (!%p324_p9, %s323_s29), 143  ;;  %348 = sbr.rel (%p1236_p10) target bundleno = 58 (0x3a), region = 62 }
  0x31   : > { %s1235_s4 = sshll.u32 %s1866_s29, 2  ;;  %v1237_v32 = vld [vmem:[%s1857_s2] ss:$0 sm:$0xff] (!%p1236_p10) }
  0x32   : > { %s1759_s7 = scalar_lea.vmem %s1856_s1, %s1235_s4  ;;  %356 = vst [vmem:[#allocation2] sm:$0xff] (!%p1236_p10), %v1237_v32  ;;  %357 = vst [vmem:[#allocation2 + $0x8] sm:$0xff] (!%p1236_p10), %v1237_v32 }
  0x33   : > { %358 = vst [vmem:[#allocation2 + $0x10] sm:$0xff] (!%p1236_p10), %v1237_v32  ;;  %359 = vst [vmem:[#allocation2 + $0x18] sm:$0xff] (!%p1236_p10), %v1237_v32 }
  0x34   : > { %360 = vst [vmem:[#allocation2 + $0x20] sm:$0xff] (!%p1236_p10), %v1237_v32  ;;  %361 = vst [vmem:[#allocation2 + $0x28] sm:$0xff] (!%p1236_p10), %v1237_v32 }
  0x35   : > { %362 = vst [vmem:[#allocation2 + $0x30] sm:$0xff] (!%p1236_p10), %v1237_v32  ;;  %363 = vst [vmem:[#allocation2 + $0x38] sm:$0xff] (!%p1236_p10), %v1237_v32 }
  0x36   : > { %364 = vst [vmem:[#allocation2 + $0x40] sm:$0xff] (!%p1236_p10), %v1237_v32  ;;  %365 = vst [vmem:[#allocation2 + $0x48] sm:$0xff] (!%p1236_p10), %v1237_v32 }
  0x37   : > { %366 = vst [vmem:[#allocation2 + $0x50] sm:$0xff] %v1237_v32  ;;  %367 = vst [vmem:[#allocation2 + $0x58] sm:$0xff] %v1237_v32 }
  0x38   : > { %368 = vst [vmem:[#allocation2 + $0x60] sm:$0xff] %v1237_v32  ;;  %369 = vst [vmem:[#allocation2 + $0x68] sm:$0xff] %v1237_v32 }
  0x39   : > { %370 = vst [vmem:[#allocation2 + $0x70] sm:$0xff] %v1237_v32  ;;  %371 = vst [vmem:[#allocation2 + $0x78] sm:$0xff] %v1237_v32 }
  0x3a PF: > { %v1525_v33 = vld [vmem:[%s1759_s7 + $0x40] sm:$0xff]   ;;  %v1528_v36 = vld [vmem:[%s1759_s7 + $0x48] sm:$0xff]   ;;  %v1531_v39 = vld [vmem:[%s1759_s7 + $0x50] sm:$0xff]   ;;  %p1286_p11 = scmp.ne.s32.totalorder %s1611_s14, 2 }
  0x3b   : > { %v1526_v34 = vld [vmem:[%s1759_s7] sm:$0xff]   ;;  %1371 = vmatprep.subr.bf16.mxu0 %v1525_v33  ;;  %v1529_v37 = vld [vmem:[%s1759_s7 + $0x8] sm:$0xff]   ;;  %v1532_v40 = vld [vmem:[%s1759_s7 + $0x10] sm:$0xff]  }
  0x3c   : > { %v1527_v35 = vld [vmem:[%s1759_s7 + $0x80] sm:$0xff]   ;;  %1372 = vmatpush3.bf16.msra.mxu0 %v1526_v34  ;;  %v1530_v38 = vld [vmem:[%s1759_s7 + $0x88] sm:$0xff]   ;;  %v1533_v41 = vld [vmem:[%s1759_s7 + $0x90] sm:$0xff]  }
  0x3d   : > { %1451 = vmatprep.subr.bf16.mxu1 %v1527_v35  ;;  %1373 = vmatprep.subr.bf16.mxu0 %v1528_v36  ;;  %v1534_v42 = vld [vmem:[%s1759_s7 + $0x58] sm:$0xff]   ;;  %v1537_v45 = vld [vmem:[%s1759_s7 + $0x60] sm:$0xff]   ;;  %v1540_v48 = vld [vmem:[%s1759_s7 + $0x68] sm:$0xff]  }
  0x3e   : > { %1452 = vmatpush3.bf16.msra.mxu1 %v1527_v35  ;;  %v1535_v43 = vld [vmem:[%s1759_s7 + $0x18] sm:$0xff]   ;;  %v1539_v46 = vld [vmem:[%s1759_s7 + $0xa0] sm:$0xff]   ;;  %v1542_v49 = vld [vmem:[%s1759_s7 + $0xa8] sm:$0xff]  }
  0x3f   : > { %1453 = vmatprep.subr.bf16.mxu1 %v1530_v38  ;;  %v1536_v44 = vld [vmem:[%s1759_s7 + $0x98] sm:$0xff]   ;;  %v1538_v47 = vld [vmem:[%s1759_s7 + $0x20] sm:$0xff]   ;;  %v1541_v50 = vld [vmem:[%s1759_s7 + $0x28] sm:$0xff]  }
  0x40   : > { %1374 = vmatpush3.bf16.msra.mxu0 %v1529_v37  ;;  %v1543_v51 = vld [vmem:[%s1759_s7 + $0x70] sm:$0xff]   ;;  %v1546_v54 = vld [vmem:[%s1759_s7 + $0x78] sm:$0xff]   ;;  %v1549_v59 = vld [vmem:[%s1761_s8] ss:$12 sps:$4 sm:$0xff]  }
  0x41   : > { %1375 = vmatprep.subr.bf16.mxu0 %v1531_v39  ;;  %v1544_v52 = vld [vmem:[%s1759_s7 + $0x30] sm:$0xff]   ;;  %v1548_v55 = vld [vmem:[%s1759_s7 + $0xb8] sm:$0xff]   ;;  %v1553_v61 = vld [vmem:[%s1761_s8 + $0x20] ss:$12 sps:$4 sm:$0xff]  }
  0x42   : > { %1454 = vmatpush3.bf16.msra.mxu1 %v1530_v38  ;;  %v1545_v53 = vld [vmem:[%s1759_s7 + $0xb0] sm:$0xff]   ;;  %v1547_v58 = vld [vmem:[%s1759_s7 + $0x38] sm:$0xff]   ;;  %v1569_v5 = vld [vmem:[%s1761_s8 + $0x80] ss:$12 sps:$4 sm:$0xff]  }
  0x43   : > { %1455 = vmatprep.subr.bf16.mxu1 %v1533_v41  ;;  %v1551_v56 = vld [vmem:[%s1761_s8 + $0x4] ss:$12 sps:$4 sm:$0xff]   ;;  %v1552_v57 = vld [vmem:[%s1761_s8 + $0x8] ss:$12 sps:$4 sm:$0xff]   ;;  %v1562_v4 = vld [vmem:[%s1761_s8 + $0x4c] ss:$12 sps:$4 sm:$0xff]  }
  0x44   : > { %1376 = vmatpush3.bf16.msra.mxu0 %v1532_v40  ;;  %772 = vmatprep.mubr.bf16.mxu0 %v1551_v56  ;;  %v1554_v60 = vld [vmem:[%s1761_s8 + $0x1c] ss:$12 sps:$4 sm:$0xff]   ;;  %v1560_v62 = vld [vmem:[%s1761_s8 + $0x38] ss:$12 sps:$4 sm:$0xff]   ;;  %v1557_v0 = vld [vmem:[%s1761_s8 + $0x34] ss:$12 sps:$4 sm:$0xff]  }
  0x45   : > { %1377 = vmatprep.subr.bf16.mxu0 %v1534_v42  ;;  %1467 = vmatprep.mubr.bf16.mxu1 %v1552_v57  ;;  %v1556_v63 = vld [vmem:[%s1761_s8 + $0x18] ss:$12 sps:$4 sm:$0xff]   ;;  %v1561_v1 = vld [vmem:[%s1761_s8 + $0x50] ss:$12 sps:$4 sm:$0xff]   ;;  %v1568_v2 = vld [vmem:[%s1761_s8 + $0x68] ss:$12 sps:$4 sm:$0xff]  }
  0x46   : > { %1456 = vmatpush3.bf16.msra.mxu1 %v1533_v41  ;;  %v1559_v3 = vld [vmem:[%s1761_s8 + $0x30] ss:$12 sps:$4 sm:$0xff]   ;;  %v1576_v6 = vld [vmem:[%s1761_s8 + $0x98] ss:$12 sps:$4 sm:$0xff]   ;;  %v1564_v7 = vld [vmem:[%s1761_s8 + $0x48] ss:$12 sps:$4 sm:$0xff]  }
  0x47   : > { %1457 = vmatprep.subr.bf16.mxu1 %v1536_v44  ;;  %v1565_v8 = vld [vmem:[%s1761_s8 + $0x64] ss:$12 sps:$4 sm:$0xff]   ;;  %v1567_v10 = vld [vmem:[%s1761_s8 + $0x60] ss:$12 sps:$4 sm:$0xff]   ;;  %v1570_v11 = vld [vmem:[%s1761_s8 + $0x7c] ss:$12 sps:$4 sm:$0xff]  }
  0x48   : > { %1378 = vmatpush3.bf16.msra.mxu0 %v1535_v43  ;;  %v1577_v9 = vld [vmem:[%s1761_s8 + $0xb0] ss:$12 sps:$4 sm:$0xff]   ;;  %v1572_v12 = vld [vmem:[%s1761_s8 + $0x78] ss:$12 sps:$4 sm:$0xff]   ;;  %v1573_v13 = vld [vmem:[%s1761_s8 + $0x94] ss:$12 sps:$4 sm:$0xff]  }
  0x49   : > { %1379 = vmatprep.subr.bf16.mxu0 %v1537_v45  ;;  %v1575_v14 = vld [vmem:[%s1761_s8 + $0x90] ss:$12 sps:$4 sm:$0xff]   ;;  %v1578_v15 = vld [vmem:[%s1761_s8 + $0xac] ss:$12 sps:$4 sm:$0xff]   ;;  %v1580_v16 = vld [vmem:[%s1761_s8 + $0xa8] ss:$12 sps:$4 sm:$0xff]  }
  0x4a   : > { %1458 = vmatpush3.bf16.msra.mxu1 %v1536_v44  ;;  %v372_v23 = vld [vmem:[#allocation2] sm:$0xff]  ;;  %v373_v28 = vld [vmem:[#allocation2 + $0x8] sm:$0xff]  ;;  %v374_v38 = vld [vmem:[#allocation2 + $0x10] sm:$0xff] }
  0x4b   : > { %1459 = vmatprep.subr.bf16.mxu1 %v1539_v46  ;;  %v375_v44 = vld [vmem:[#allocation2 + $0x18] sm:$0xff] }
  0x4c   : > { %1380 = vmatpush3.bf16.msra.mxu0 %v1538_v47 }
  0x4d   : > { %1381 = vmatprep.subr.bf16.mxu0 %v1540_v48 }
  0x4e   : > { %1460 = vmatpush3.bf16.msra.mxu1 %v1539_v46 }
  0x4f   : > { %1461 = vmatprep.subr.bf16.mxu1 %v1542_v49 }
  0x50   : > { %1382 = vmatpush3.bf16.msra.mxu0 %v1541_v50 }
  0x51   : > { %1383 = vmatprep.subr.bf16.mxu0 %v1543_v51 }
  0x52   : > { %1462 = vmatpush3.bf16.msra.mxu1 %v1542_v49 }
  0x53   : > { %1463 = vmatprep.subr.bf16.mxu1 %v1545_v53 }
  0x54   : > { %1384 = vmatpush3.bf16.msra.mxu0 %v1544_v52 }
  0x55   : > { %1385 = vmatprep.subr.bf16.mxu0 %v1546_v54 }
  0x56   : > { %1464 = vmatpush3.bf16.msra.mxu1 %v1545_v53 }
  0x57   : > { %1465 = vmatprep.subr.bf16.mxu1 %v1548_v55 }
  0x58   : > { %1386 = vmatpush3.bf16.msra.mxu0 %v1547_v58 }
  0x5a   : > { %1466 = vmatpush3.bf16.msra.mxu1 %v1548_v55  ;;  %v376_v55 = vld [vmem:[#allocation2 + $0x20] sm:$0xff] }
  0x5b   : > { %773 = vmatmul.mubr.bf16.vlgmr.msra.gmra.mrb[0].mxu0 %v1549_v59 }
  0x5c   : > { %780 = vmatprep.mubr.bf16.mxu0 %v1554_v60  ;;  %v377_v60 = vld [vmem:[#allocation2 + $0x28] sm:$0xff] }
  0x5d   : > { %1468 = vmatmul.mubr.bf16.vlgmr.msra.gmra.mrb[0].mxu1 %v1553_v61 }
  0x5e   : > { %1471 = vmatprep.mubr.bf16.mxu1 %v1560_v62 }
  0x63   : > { %781 = vmatmul.mubr.bf16.gmra.mrb[4].mxu0 %v1556_v63 }
  0x64   : > { %788 = vmatprep.mubr.bf16.mxu0 %v1557_v0 }
  0x65   : > { %1472 = vmatmul.mubr.bf16.gmra.mrb[4].mxu1 %v1561_v1 }
  0x66   : > { %1475 = vmatprep.mubr.bf16.mxu1 %v1568_v2 }
  0x6b   : > { %789 = vmatmul.mubr.bf16.gmra.mrb[8].mxu0 %v1559_v3 }
  0x6c   : > { %796 = vmatprep.mubr.bf16.mxu0 %v1562_v4 }
  0x6d   : > { %1476 = vmatmul.mubr.bf16.gmra.mrb[8].mxu1 %v1569_v5 }
  0x6e   : > { %1479 = vmatprep.mubr.bf16.mxu1 %v1576_v6  ;;  %v378_v6 = vld [vmem:[#allocation2 + $0x30] sm:$0xff] }
  0x73   : > { %797 = vmatmul.mubr.bf16.gmra.mrb[12].mxu0 %v1564_v7 }
  0x74   : > { %804 = vmatprep.mubr.bf16.mxu0 %v1565_v8 }
  0x75   : > { %1480 = vmatmul.mubr.bf16.gmra.mrb[12].mxu1 %v1577_v9 }
  0x7b   : > { %805 = vmatmul.mubr.bf16.gmra.mrb[16].mxu0 %v1567_v10 }
  0x7c   : > { %812 = vmatprep.mubr.bf16.mxu0 %v1570_v11 }
  0x83   : > { %813 = vmatmul.mubr.bf16.gmra.mrb[20].mxu0 %v1572_v12  ;;  %v379_v12 = vld [vmem:[#allocation2 + $0x38] sm:$0xff] }
  0x84   : > { %820 = vmatprep.mubr.bf16.mxu0 %v1573_v13 }
  0x8b   : > { %821 = vmatmul.mubr.bf16.gmra.mrb[24].mxu0 %v1575_v14 }
  0x8c   : > { %828 = vmatprep.mubr.bf16.mxu0 %v1578_v15 }
  0x93   : > { %829 = vmatmul.mubr.bf16.gmra.mrb[28].mxu0 %v1580_v16 }
 0x12e   : > { %v1387_v17 = vpop.f32.mrb[0].mxu0 }
 0x12f   : > { %v1388_v18 = vpop.f32.mrb[1].mxu0 }
 0x130   : > { %v1389_v19 = vadd.f32 %v1388_v18, %v1387_v17  ;;  %v1390_v20 = vpop.f32.mrb[2].mxu0  ;;  %v1469_v21 = vpop.f32.mrb[0].mxu1 }
 0x131   : > { %v1391_v22 = vpop.f32.mrb[3].mxu0  ;;  %v871_v24 = vpop.f32.mrb[1].mxu1 }
 0x132   : > { %v1392_v25 = vadd.f32 %v1391_v22, %v1390_v20  ;;  %v872_v26 = vadd.f32 %v1389_v19, %v871_v24  ;;  %v1470_v27 = vpop.f32.mrb[2].mxu1  ;;  %v380_v22 = vld [vmem:[#allocation2 + $0x40] sm:$0xff] }
 0x133   : > { %v874_v29 = vpop.f32.mrb[3].mxu1 }
 0x134   : > { %v934_v30 = vadd.f32 %v872_v26, %v372_v23  ;;  %v875_v31 = vadd.f32 %v1392_v25, %v874_v29  ;;  %v381_v25 = vld [vmem:[#allocation2 + $0x48] sm:$0xff] }
 0x136   : > { %950 = vst [vmem:[#allocation2] sm:$0xff] %v934_v30  ;;  %v935_v32 = vadd.f32 %v875_v31, %v373_v28  ;;  %v1393_v33 = vpop.f32.mrb[4].mxu0 }
 0x137   : > { %v1394_v34 = vpop.f32.mrb[5].mxu0 }
 0x138   : > { %951 = vst [vmem:[#allocation2 + $0x8] sm:$0xff] %v935_v32  ;;  %v1395_v35 = vadd.f32 %v1394_v34, %v1393_v33  ;;  %v1396_v36 = vpop.f32.mrb[6].mxu0  ;;  %v1473_v37 = vpop.f32.mrb[4].mxu1  ;;  %v382_v33 = vld [vmem:[#allocation2 + $0x50] sm:$0xff] }
 0x139   : > { %v1397_v39 = vpop.f32.mrb[7].mxu0  ;;  %v887_v40 = vpop.f32.mrb[5].mxu1 }
 0x13a   : > { %v880_v41 = vadd.f32 %v1469_v21, %v1395_v35  ;;  %v1398_v42 = vadd.f32 %v1397_v39, %v1396_v36  ;;  %v1474_v43 = vpop.f32.mrb[6].mxu1 }
 0x13b   : > { %v890_v45 = vpop.f32.mrb[7].mxu1 }
 0x13c   : > { %v936_v46 = vadd.f32 %v880_v41, %v374_v38  ;;  %v883_v47 = vadd.f32 %v1470_v27, %v1398_v42 }
 0x13e   : > { %952 = vst [vmem:[#allocation2 + $0x10] sm:$0xff] %v936_v46  ;;  %v937_v48 = vadd.f32 %v883_v47, %v375_v44  ;;  %v1399_v49 = vpop.f32.mrb[8].mxu0  ;;  %v384_v46 = vld [vmem:[#allocation2 + $0x60] sm:$0xff] }
 0x13f   : > { %v1400_v50 = vpop.f32.mrb[9].mxu0 }
 0x140   : > { %953 = vst [vmem:[#allocation2 + $0x18] sm:$0xff] %v937_v48  ;;  %v1401_v51 = vadd.f32 %v1400_v50, %v1399_v49  ;;  %v1402_v52 = vpop.f32.mrb[10].mxu0  ;;  %v1477_v53 = vpop.f32.mrb[8].mxu1  ;;  %v385_v49 = vld [vmem:[#allocation2 + $0x68] sm:$0xff] }
 0x141   : > { %v1403_v54 = vpop.f32.mrb[11].mxu0  ;;  %v903_v56 = vpop.f32.mrb[9].mxu1 }
 0x142   : > { %v1404_v57 = vadd.f32 %v1403_v54, %v1402_v52  ;;  %v888_v58 = vadd.f32 %v1401_v51, %v887_v40  ;;  %v1478_v59 = vpop.f32.mrb[10].mxu1 }
 0x143   : > { %v906_v61 = vpop.f32.mrb[11].mxu1 }
 0x144   : > { %v938_v62 = vadd.f32 %v888_v58, %v376_v55  ;;  %v891_v63 = vadd.f32 %v1404_v57, %v890_v45  ;;  %v386_v57 = vld [vmem:[#allocation2 + $0x70] sm:$0xff] }
 0x146   : > { %954 = vst [vmem:[#allocation2 + $0x20] sm:$0xff] %v938_v62  ;;  %v939_v0 = vadd.f32 %v891_v63, %v377_v60  ;;  %v1405_v1 = vpop.f32.mrb[12].mxu0 }
 0x147   : > { %v1406_v2 = vpop.f32.mrb[13].mxu0 }
 0x148   : > { %955 = vst [vmem:[#allocation2 + $0x28] sm:$0xff] %v939_v0  ;;  %v1407_v3 = vadd.f32 %v1406_v2, %v1405_v1  ;;  %v1408_v4 = vpop.f32.mrb[14].mxu0  ;;  %v1481_v5 = vpop.f32.mrb[12].mxu1  ;;  %v970_v1 = vld [vmem:[#allocation2] sm:$0xff] (!%p1286_p11)  ;;  %v971_v2 = vld [vmem:[#allocation2 + $0x8] sm:$0xff] (!%p1286_p11) }
 0x149   : > { %v1409_v7 = vpop.f32.mrb[15].mxu0  ;;  %v919_v8 = vpop.f32.mrb[13].mxu1 }
 0x14a   : > { %v896_v9 = vadd.f32 %v1473_v37, %v1407_v3  ;;  %v1410_v10 = vadd.f32 %v1409_v7, %v1408_v4  ;;  %v1482_v11 = vpop.f32.mrb[14].mxu1  ;;  %v383_v37 = vld [vmem:[#allocation2 + $0x58] sm:$0xff]  ;;  %v972_v3 = vld [vmem:[#allocation2 + $0x10] sm:$0xff] (!%p1286_p11)  ;;  %v986_v4 = vmax.f32 (!%p1286_p11), %v970_v1, 0.0 }
 0x14b   : > { %v922_v13 = vpop.f32.mrb[15].mxu1  ;;  %v973_v7 = vld [vmem:[#allocation2 + $0x18] sm:$0xff] (!%p1286_p11) }
 0x14c   : > { %v940_v14 = vadd.f32 %v896_v9, %v378_v6  ;;  %v899_v15 = vadd.f32 %v1474_v43, %v1410_v10  ;;  %v987_v6 = vmax.f32 (!%p1286_p11), %v971_v2, 0.0 }
 0x14d   : > { %v974_v9 = vld [vmem:[#allocation2 + $0x20] sm:$0xff] (!%p1286_p11) }
 0x14e   : > { %956 = vst [vmem:[#allocation2 + $0x30] sm:$0xff] %v940_v14  ;;  %v941_v16 = vadd.f32 %v899_v15, %v379_v12  ;;  %v1411_v17 = vpop.f32.mrb[16].mxu0  ;;  %v990_v12 = vmax.f32 (!%p1286_p11), %v974_v9, 0.0 }
 0x14f   : > { %v1412_v18 = vpop.f32.mrb[17].mxu0  ;;  %v975_v10 = vld [vmem:[#allocation2 + $0x28] sm:$0xff] (!%p1286_p11) }
 0x150   : > { %957 = vst [vmem:[#allocation2 + $0x38] sm:$0xff] %v941_v16  ;;  %v1413_v19 = vadd.f32 %v1412_v18, %v1411_v17  ;;  %v1414_v20 = vpop.f32.mrb[18].mxu0  ;;  %v1327_v16 = vpack.c.bf16 (!%p1286_p11), %v987_v6, %v986_v4 }
 0x151   : > { %v1415_v21 = vpop.f32.mrb[19].mxu0 }
 0x152   : > { %v1416_v23 = vadd.f32 %v1415_v21, %v1414_v20  ;;  %v904_v24 = vadd.f32 %v1413_v19, %v903_v56  ;;  %1328 = vst [vmem:[%s1858_s3] sm:$0xff] (!%p1286_p11), %v1327_v16  }
 0x154   : > { %v942_v26 = vadd.f32 %v904_v24, %v380_v22  ;;  %v907_v27 = vadd.f32 %v1416_v23, %v906_v61  ;;  %v387_v61 = vld [vmem:[#allocation2 + $0x78] sm:$0xff] }
 0x155   : > { %v976_v14 = vld [vmem:[#allocation2 + $0x30] sm:$0xff] (!%p1286_p11) }
 0x156   : > { %958 = vst [vmem:[#allocation2 + $0x40] sm:$0xff] %v942_v26  ;;  %v943_v28 = vadd.f32 %v907_v27, %v381_v25  ;;  %v1417_v29 = vpop.f32.mrb[20].mxu0  ;;  %v992_v17 = vmax.f32 (!%p1286_p11), %v976_v14, 0.0 }
 0x157   : > { %v1418_v30 = vpop.f32.mrb[21].mxu0 }
 0x158   : > { %959 = vst [vmem:[#allocation2 + $0x48] sm:$0xff] %v943_v28  ;;  %v1419_v31 = vadd.f32 %v1418_v30, %v1417_v29  ;;  %v1420_v32 = vpop.f32.mrb[22].mxu0 }
 0x159   : > { %v1421_v34 = vpop.f32.mrb[23].mxu0 }
 0x15a   : > { %v912_v35 = vadd.f32 %v1477_v53, %v1419_v31  ;;  %v1422_v36 = vadd.f32 %v1421_v34, %v1420_v32 }
 0x15c   : > { %v944_v38 = vadd.f32 %v912_v35, %v382_v33  ;;  %v915_v39 = vadd.f32 %v1478_v59, %v1422_v36 }
 0x15d   : > { %v978_v15 = vld [vmem:[#allocation2 + $0x40] sm:$0xff] (!%p1286_p11) }
 0x15e   : > { %960 = vst [vmem:[#allocation2 + $0x50] sm:$0xff] %v944_v38  ;;  %v945_v40 = vadd.f32 %v915_v39, %v383_v37  ;;  %v1423_v41 = vpop.f32.mrb[24].mxu0  ;;  %v994_v20 = vmax.f32 (!%p1286_p11), %v978_v15, 0.0 }
 0x15f   : > { %v1424_v42 = vpop.f32.mrb[25].mxu0  ;;  %v979_v19 = vld [vmem:[#allocation2 + $0x48] sm:$0xff] (!%p1286_p11) }
 0x160   : > { %961 = vst [vmem:[#allocation2 + $0x58] sm:$0xff] %v945_v40  ;;  %v1425_v43 = vadd.f32 %v1424_v42, %v1423_v41  ;;  %v1426_v44 = vpop.f32.mrb[26].mxu0  ;;  %v995_v25 = vmax.f32 (!%p1286_p11), %v979_v19, 0.0 }
 0x161   : > { %v1427_v45 = vpop.f32.mrb[27].mxu0 }
 0x162   : > { %v1428_v47 = vadd.f32 %v1427_v45, %v1426_v44  ;;  %v920_v48 = vadd.f32 %v1425_v43, %v919_v8  ;;  %v988_v8 = vmax.f32 (!%p1286_p11), %v972_v3, 0.0  ;;  %v1347_v35 = vpack.c.bf16 (!%p1286_p11), %v995_v25, %v994_v20 }
 0x164   : > { %v946_v50 = vadd.f32 %v920_v48, %v384_v46  ;;  %v923_v51 = vadd.f32 %v1428_v47, %v922_v13  ;;  %v991_v13 = vmax.f32 (!%p1286_p11), %v975_v10, 0.0  ;;  %1367 = vst [vmem:[%s1858_s3 + $0x20] sm:$0xff] (!%p1286_p11), %v1347_v35  }
 0x165   : > { %v980_v21 = vld [vmem:[#allocation2 + $0x50] sm:$0xff] (!%p1286_p11) }
 0x166   : > { %962 = vst [vmem:[#allocation2 + $0x60] sm:$0xff] %v946_v50  ;;  %v947_v52 = vadd.f32 %v923_v51, %v385_v49  ;;  %v1429_v53 = vpop.f32.mrb[28].mxu0  ;;  %v1337_v24 = vpack.c.bf16 (!%p1286_p11), %v991_v13, %v990_v12  ;;  %v996_v26 = vmax.f32 (!%p1286_p11), %v980_v21, 0.0 }
 0x167   : > { %v1430_v54 = vpop.f32.mrb[29].mxu0  ;;  %v981_v22 = vld [vmem:[#allocation2 + $0x58] sm:$0xff] (!%p1286_p11) }
 0x168   : > { %963 = vst [vmem:[#allocation2 + $0x68] sm:$0xff] %v947_v52  ;;  %v1431_v55 = vadd.f32 %v1430_v54, %v1429_v53  ;;  %v1432_v56 = vpop.f32.mrb[30].mxu0  ;;  %v997_v31 = vmax.f32 (!%p1286_p11), %v981_v22, 0.0  ;;  %1365 = vst [vmem:[%s1858_s3 + $0x10] sm:$0xff] (!%p1286_p11), %v1337_v24  }
 0x169   : > { %v1433_v58 = vpop.f32.mrb[31].mxu0 }
 0x16a   : > { %v928_v59 = vadd.f32 %v1481_v5, %v1431_v55  ;;  %v1434_v60 = vadd.f32 %v1433_v58, %v1432_v56  ;;  %969 = sbr.rel (%p1286_p11) target bundleno = 381 (0x17d), region = 66  ;;  %v989_v5 = vmax.f32 (!%p1286_p11), %v973_v7, 0.0  ;;  %v1352_v38 = vpack.c.bf16 (!%p1286_p11), %v997_v31, %v996_v26 }
 0x16c   : > { %v948_v62 = vadd.f32 %v928_v59, %v386_v57  ;;  %v931_v63 = vadd.f32 %v1482_v11, %v1434_v60  ;;  %v977_v11 = vld [vmem:[#allocation2 + $0x38] sm:$0xff] (!%p1286_p11)  ;;  %v1332_v23 = vpack.c.bf16 (!%p1286_p11), %v989_v5, %v988_v8  ;;  %1368 = vst [vmem:[%s1858_s3 + $0x28] sm:$0xff] (!%p1286_p11), %v1352_v38  }
 0x16d   : > { %v993_v18 = vmax.f32 (!%p1286_p11), %v977_v11, 0.0  ;;  %v982_v27 = vld [vmem:[#allocation2 + $0x60] sm:$0xff] (!%p1286_p11) }
 0x16e   : > { %964 = vst [vmem:[#allocation2 + $0x70] sm:$0xff] %v948_v62  ;;  %v949_v0 = vadd.f32 %v931_v63, %v387_v61  ;;  %v998_v32 = vmax.f32 (!%p1286_p11), %v982_v27, 0.0  ;;  %1364 = vst [vmem:[%s1858_s3 + $0x8] sm:$0xff] (!%p1286_p11), %v1332_v23  }
 0x16f   : > { %v983_v28 = vld [vmem:[#allocation2 + $0x68] sm:$0xff] (!%p1286_p11)  ;;  %v1342_v30 = vpack.c.bf16 (!%p1286_p11), %v993_v18, %v992_v17 }
 0x170   : > { %965 = vst [vmem:[#allocation2 + $0x78] sm:$0xff] %v949_v0  ;;  %v999_v33 = vmax.f32 (!%p1286_p11), %v983_v28, 0.0 }
 0x171   : > { %1366 = vst [vmem:[%s1858_s3 + $0x18] sm:$0xff] %v1342_v30  }
 0x172   : > { %v1357_v39 = vpack.c.bf16 %v999_v33, %v998_v32 }
 0x174   : > { %1369 = vst [vmem:[%s1858_s3 + $0x30] sm:$0xff] %v1357_v39  }
 0x175   : > { %v984_v29 = vld [vmem:[#allocation2 + $0x70] sm:$0xff] }
 0x176   : > { %v1000_v36 = vmax.f32 %v984_v29, 0.0 }
 0x177   : > { %v985_v34 = vld [vmem:[#allocation2 + $0x78] sm:$0xff] }
 0x178   : > { %v1001_v37 = vmax.f32 %v985_v34, 0.0 }
 0x17a   : > { %v1362_v40 = vpack.c.bf16 %v1001_v37, %v1000_v36 }
 0x17c   : > { %1370 = vst [vmem:[%s1858_s3 + $0x38] sm:$0xff] %v1362_v40  }
 0x17d PF: > { %s13_s16 = sadd.s32 1, %s1619_s16   ;;  %s1859_s12 = smov %s1607_s13 }
 0x17e   : > { %p10_p12 = scmp.ge.s32.totalorder %s13_s16, 5   ;;  %s1860_s13 = smov %s1676_s20 }
 0x17f   : > { %s1861_s14 = smov %s1615_s15  ;;  %s1862_s15 = smov %s1864_s17 }
 0x180   :  { %12 = sbr.rel (!%p10_p12) target bundleno = 3 (0x3), region = 113 }

// kernel: dpn_forward.28
= control target key start
LH: loop header
LB: loop body
LE: loop exit
PB: predicated region body
PF: predicated region fallthrough
CT: control target
= control target key end

     0   :  { %s331_s1 = inlined_call_operand.vmem [shape: bf16[128,128], index: 1, kind: input, shape index: {}]   ;;  %s332_s0 = inlined_call_operand.vmem [shape: bf16[32,128], index: 0, kind: input, shape index: {}]   ;;  %s333_s2 = inlined_call_operand.vmem [shape: f32[1,128], index: 2, kind: input, shape index: {}]   ;;  %s334_s3 = inlined_call_operand.vmem [shape: bf16[32,128], index: 3, kind: output, shape index: {}]  }
   0x1   :  { %v262_v0 = vld [vmem:[%s331_s1] sm:$0xff]   ;;  %v263_v1 = vld [vmem:[%s331_s1 + $0x8] sm:$0xff]   ;;  %v264_v2 = vld [vmem:[%s331_s1 + $0x10] sm:$0xff]  }
   0x2   :  { %242 = vmatprep.subr.bf16.mxu0 %v262_v0  ;;  %v265_v3 = vld [vmem:[%s331_s1 + $0x18] sm:$0xff]   ;;  %v270_v4 = vld [vmem:[%s332_s0] sm:$0xff]   ;;  %v267_v6 = vld [vmem:[%s331_s1 + $0x28] sm:$0xff]  }
   0x3   :  { %243 = vmatpush3.bf16.msra.mxu0 %v262_v0  ;;  %258 = vmatprep.mubr.bf16.mxu0 %v270_v4  ;;  %v266_v5 = vld [vmem:[%s331_s1 + $0x20] sm:$0xff]   ;;  %v268_v7 = vld [vmem:[%s331_s1 + $0x30] sm:$0xff]   ;;  %v269_v8 = vld [vmem:[%s331_s1 + $0x38] sm:$0xff]  }
   0x4   :  { %244 = vmatprep.subr.bf16.mxu0 %v263_v1  ;;  %v271_v9 = vld [vmem:[%s332_s0 + $0x8] sm:$0xff]   ;;  %v202_v10 = vld [vmem:[%s333_s2] ss:$0 sm:$0xff] }
   0x7   :  { %245 = vmatpush3.bf16.msra.mxu0 %v263_v1 }
   0x8   :  { %246 = vmatprep.subr.bf16.mxu0 %v264_v2 }
   0xb   :  { %247 = vmatpush3.bf16.msra.mxu0 %v264_v2 }
   0xc   :  { %248 = vmatprep.subr.bf16.mxu0 %v265_v3 }
   0xf   :  { %249 = vmatpush3.bf16.msra.mxu0 %v265_v3 }
  0x10   :  { %250 = vmatprep.subr.bf16.mxu0 %v266_v5 }
  0x13   :  { %251 = vmatpush3.bf16.msra.mxu0 %v266_v5 }
  0x14   :  { %252 = vmatprep.subr.bf16.mxu0 %v267_v6 }
  0x17   :  { %253 = vmatpush3.bf16.msra.mxu0 %v267_v6 }
  0x18   :  { %254 = vmatprep.subr.bf16.mxu0 %v268_v7 }
  0x1b   :  { %255 = vmatpush3.bf16.msra.mxu0 %v268_v7 }
  0x1c   :  { %256 = vmatprep.subr.bf16.mxu0 %v269_v8 }
  0x1f   :  { %257 = vmatpush3.bf16.msra.mxu0 %v269_v8 }
  0x22   :  { %259 = vmatmul.mubr.bf16.vlgmr.msra.gmra.mrb[0].mxu0 %v271_v9 }
  0xf5   :  { %v260_v11 = vpop.f32.mrb[0].mxu0 }
  0xf6   :  { %v148_v12 = vpop.f32.mrb[1].mxu0  ;;  %v165_v14 = vadd.f32 %v260_v11, %v202_v10 }
  0xf7   :  { %v261_v13 = vpop.f32.mrb[2].mxu0  ;;  %v163_v17 = vadd.f32 %v202_v10, %v148_v12 }
  0xf8   :  { %v166_v15 = vadd.f32 %v261_v13, %v202_v10  ;;  %v151_v16 = vpop.f32.mrb[3].mxu0 }
  0xf9   :  { %v164_v18 = vadd.f32 %v202_v10, %v151_v16 }
  0xfa   :  { %v229_v19 = vpack.c.bf16 %v166_v15, %v165_v14 }
  0xfb   :  { %v224_v20 = vpack.c.bf16 %v164_v18, %v163_v17 }
  0xfc   :  { %231 = vst [vmem:[%s334_s3 + $0x8] sm:$0xff] %v229_v19  }
  0xfd   :  { %225 = vst [vmem:[%s334_s3] sm:$0xff] %v224_v20  }

// kernel: dpn_forward.29
= control target key start
LH: loop header
LB: loop body
LE: loop exit
PB: predicated region body
PF: predicated region fallthrough
CT: control target
= control target key end

     0   :  { %v197_v21 = vlaneseq  ;;  %s419_s1 = inlined_call_operand.vmem [shape: bf16[128,128], index: 1, kind: input, shape index: {}]   ;;  %s420_s0 = inlined_call_operand.vmem [shape: bf16[32,128], index: 0, kind: input, shape index: {}]   ;;  %s421_s2 = inlined_call_operand.vmem [shape: f32[1,128], index: 2, kind: input, shape index: {}]   ;;  %s422_s3 = inlined_call_operand.vmem [shape: bf16[32,128], index: 3, kind: input, shape index: {}]   ;;  %s423_s4 = inlined_call_operand.vmem [shape: bf16[32,128], index: 4, kind: output, shape index: {}]  }
   0x1   :  { %v326_v0 = vld [vmem:[%s419_s1] sm:$0xff]   ;;  %v327_v1 = vld [vmem:[%s419_s1 + $0x8] sm:$0xff]   ;;  %v328_v2 = vld [vmem:[%s419_s1 + $0x10] sm:$0xff]  }
   0x2   :  { %295 = vmatprep.subr.bf16.mxu0 %v326_v0  ;;  %v329_v3 = vld [vmem:[%s419_s1 + $0x18] sm:$0xff]   ;;  %v334_v4 = vld [vmem:[%s420_s0] sm:$0xff]   ;;  %v331_v6 = vld [vmem:[%s419_s1 + $0x28] sm:$0xff]   ;;  %v198_v23 = vand.u32 127, %v197_v21 }
   0x3   :  { %296 = vmatpush3.bf16.msra.mxu0 %v326_v0  ;;  %311 = vmatprep.mubr.bf16.mxu0 %v334_v4  ;;  %v330_v5 = vld [vmem:[%s419_s1 + $0x20] sm:$0xff]   ;;  %v332_v7 = vld [vmem:[%s419_s1 + $0x30] sm:$0xff]   ;;  %v333_v8 = vld [vmem:[%s419_s1 + $0x38] sm:$0xff]   ;;  %s336_s1 = smov 4  }
   0x4   :  { %297 = vmatprep.subr.bf16.mxu0 %v327_v1  ;;  %v335_v9 = vld [vmem:[%s420_s0 + $0x8] sm:$0xff]   ;;  %v246_v10 = vld [vmem:[%s421_s2] ss:$0 sm:$0xff]  ;;  %vm205_vm0 = vcmp.lt.s32.totalorder %v198_v23, 40  ;;  %vm204_vm1 = vcmp.lt.s32.totalorder %v198_v23, 36  ;;  %vm199_vm2 = vcmp.lt.s32.totalorder %v198_v23, 32 }
   0x5   :  { %v266_v22 = vld [vmem:[%s422_s3] sm:$0xff]   ;;  %v283_v24 = vld [vmem:[%s422_s3 + $0x8] sm:$0xff]  }
   0x6   :  { %v267_v25 = vunpack.c.l.bf16 %v266_v22  ;;  %v268_v26 = vunpack.c.h.bf16 %v266_v22  ;;  %v271_v30 = vunpack.c.l.bf16 %v283_v24  ;;  %v272_v31 = vunpack.c.h.bf16 %v283_v24 }
   0x7   :  { %298 = vmatpush3.bf16.msra.mxu0 %v327_v1 }
   0x8   :  { %299 = vmatprep.subr.bf16.mxu0 %v328_v2 }
   0xb   :  { %300 = vmatpush3.bf16.msra.mxu0 %v328_v2 }
   0xc   :  { %301 = vmatprep.subr.bf16.mxu0 %v329_v3 }
   0xf   :  { %302 = vmatpush3.bf16.msra.mxu0 %v329_v3 }
  0x10   :  { %303 = vmatprep.subr.bf16.mxu0 %v330_v5 }
  0x13   :  { %304 = vmatpush3.bf16.msra.mxu0 %v330_v5 }
  0x14   :  { %305 = vmatprep.subr.bf16.mxu0 %v331_v6 }
  0x17   :  { %306 = vmatpush3.bf16.msra.mxu0 %v331_v6 }
  0x18   :  { %307 = vmatprep.subr.bf16.mxu0 %v332_v7 }
  0x1b   :  { %308 = vmatpush3.bf16.msra.mxu0 %v332_v7 }
  0x1c   :  { %309 = vmatprep.subr.bf16.mxu0 %v333_v8 }
  0x1f   :  { %310 = vmatpush3.bf16.msra.mxu0 %v333_v8 }
  0x22   :  { %312 = vmatmul.mubr.bf16.vlgmr.msra.gmra.mrb[0].mxu0 %v335_v9 }
  0xf5   :  { %v313_v11 = vpop.f32.mrb[0].mxu0 }
  0xf6   :  { %v151_v12 = vpop.f32.mrb[1].mxu0  ;;  %v168_v14 = vadd.f32 %v313_v11, %v246_v10 }
  0xf7   :  { %v314_v13 = vpop.f32.mrb[2].mxu0  ;;  %v166_v17 = vadd.f32 %v246_v10, %v151_v12 }
  0xf8   :  { %v169_v15 = vadd.f32 %v314_v13, %v246_v10  ;;  %v154_v16 = vpop.f32.mrb[3].mxu0  ;;  %v202_v45 = vadd.f32 %v271_v30, %v168_v14 }
  0xf9   :  { %v167_v18 = vadd.f32 %v246_v10, %v154_v16  ;;  %v200_v32 = vadd.f32 %v267_v25, %v166_v17 }
  0xfa   :  { %v321_v19 = vpack.i.bf16 %v169_v15, %v168_v14  ;;  %v203_v46 = vadd.f32 %v272_v31, %v169_v15 }
  0xfb   :  { %v316_v20 = vpack.i.bf16 %v167_v18, %v166_v17  ;;  %v201_v33 = vadd.f32 %v268_v26, %v167_v18 }
  0xfd   :  { %317 = vrot.lane.b32.xlu0 %v316_v20, %s336_s1 }
 0x101   :  { %322 = vrot.lane.b32.xlu0 %v321_v19, %s336_s1 }
 0x16f   :  { %v318_v27 = vpop.permute.xlu0 %317 }
 0x170   :  { %v320_v28 = vunpack.i.h.bf16 %v318_v27  ;;  %v319_v29 = vunpack.i.l.bf16 %v318_v27 }
 0x172   :  { %v207_v34 = vsel %vm205_vm0, %v320_v28, 0.0  ;;  %v206_v35 = vsel %vm205_vm0, %v319_v29, 0.0 }
 0x173   :  { %v211_v36 = vsel %vm204_vm1, %v268_v26, %v207_v34  ;;  %v210_v37 = vsel %vm204_vm1, %v267_v25, %v206_v35  ;;  %v323_v38 = vpop.permute.xlu0 %322 }
 0x174   :  { %v214_v39 = vsel %vm199_vm2, %v200_v32, %v210_v37  ;;  %v215_v40 = vsel %vm199_vm2, %v201_v33, %v211_v36  ;;  %v325_v41 = vunpack.i.h.bf16 %v323_v38  ;;  %v324_v42 = vunpack.i.l.bf16 %v323_v38 }
 0x175   :  { %v218_v43 = vmax.f32 %v214_v39, 0.0  ;;  %v219_v44 = vmax.f32 %v215_v40, 0.0 }
 0x176   :  { %v209_v47 = vsel %vm205_vm0, %v325_v41, 0.0  ;;  %v208_v48 = vsel %vm205_vm0, %v324_v42, 0.0 }
 0x177   :  { %v276_v49 = vpack.c.bf16 %v219_v44, %v218_v43  ;;  %v213_v50 = vsel %vm204_vm1, %v272_v31, %v209_v47  ;;  %v212_v51 = vsel %vm204_vm1, %v271_v30, %v208_v48 }
 0x178   :  { %v217_v52 = vsel %vm199_vm2, %v203_v46, %v213_v50  ;;  %v216_v53 = vsel %vm199_vm2, %v202_v45, %v212_v51 }
 0x179   :  { %v221_v54 = vmax.f32 %v217_v52, 0.0  ;;  %v220_v55 = vmax.f32 %v216_v53, 0.0  ;;  %277 = vst [vmem:[%s423_s4] sm:$0xff] %v276_v49  }
 0x17b   :  { %v281_v56 = vpack.c.bf16 %v221_v54, %v220_v55 }
 0x17d   :  { %284 = vst [vmem:[%s423_s4 + $0x8] sm:$0xff] %v281_v56  }

// kernel: dpn_forward.27
= control target key start
LH: loop header
LB: loop body
LE: loop exit
PB: predicated region body
PF: predicated region fallthrough
CT: control target
= control target key end

     0   :  { %s1065_s12 = smov 0   ;;  %s1067_s13 = smov 0   ;;  %s1175_s0 = inlined_call_operand.vmem [shape: bf16[32,1152], index: 0, kind: input, shape index: {}]   ;;  %s1176_s1 = inlined_call_operand.vmem [shape: bf16[1152,128], index: 1, kind: input, shape index: {}]   ;;  %s1177_s2 = inlined_call_operand.vmem [shape: f32[1,128], index: 2, kind: input, shape index: {}]   ;;  %s1178_s3 = inlined_call_operand.vmem [shape: bf16[32,128], index: 3, kind: output, shape index: {}]  }
   0x1   :  { %s1069_s14 = smov 0   ;;  %s1071_s15 = smov 0  }
   0x2   :  { %s1073_s16 = smov 0  }
   0x3 LB: > { %s25_s17 = sadd.s32 1, %s1039_s15  ;;  %p48_p1 = scmp.ne.s32.totalorder %s1031_s13, %s1027_s12  ;;  %s1043_s16 = sphi %s1073_s16, %s13_s16   ;;  %s1039_s15 = sphi %s1071_s15, %s1182_s15   ;;  %s1035_s14 = sphi %s1069_s14, %s1181_s14   ;;  %s1031_s13 = sphi %s1067_s13, %s1180_s13   ;;  %s1027_s12 = sphi %s1065_s12, %s1179_s12  }
   0x4   : > { %p26_p0 = scmp.ge.s32.totalorder %s25_s17, 3  ;;  %p49_p2 = scmp.eq.s32.totalorder %s1043_s16, 0 }
   0x5   : > { %s41_s19 = sadd.s32 1, %s1031_s13  ;;  %p804_p5 = scmp.ge.s32.totalorder %s1043_s16, 3 }
   0x6   : > { %s1184_s17 = smov (%p26_p0, %s25_s17), 0  ;;  %p50_p3 = por %p49_p2, %p48_p1 }
   0x7   : > { %s37_s18 = ssub.s32 %s1039_s15, %s1184_s17  ;;  %162 = sbr.rel (%p804_p5) target bundleno = 23 (0x17), region = 20 }
   0x8   : > { %p39_p4 = scmp.eq.s32.totalorder %s37_s18, 0 }
   0xa   : > { %s1100_s20 = scalar_select %p39_p4, %s1031_s13, %s41_s19  }
   0xe   : > { %165 = sbr.rel (!%p50_p3) target bundleno = 23 (0x17), region = 24  ;;  %s167_s21 = sand.u32 (%p50_p3), 1, %s1031_s13  }
   0xf   : > { %s857_s22 = smul.u32 (%p50_p3), 12, %s1039_s15 }
  0x10   : > { %s931_s23 = smul.u32 (%p50_p3), 48, %s167_s21 }
  0x11   : > { %s175_s26 = scalar_lea.vmem (%p50_p3), %s1175_s0, %s857_s22 }
  0x12   : > { %v190_v0 = vld [vmem:[%s175_s26] sm:$0xff] (%p50_p3)  ;;  %v194_v2 = vld [vmem:[%s175_s26 + $0x48] sm:$0xff] (%p50_p3)  ;;  %s169_s27 = scalar_lea.vmem (%p50_p3), [#allocation3], %s931_s23  ;;  %v810_v6 = vld [vmem:[%s175_s26 + $0x50] sm:$0xf] (%p50_p3) }
  0x13   : > { %v192_v1 = vld [vmem:[%s175_s26 + $0x24] sm:$0xff] (%p50_p3)  ;;  %191 = vst [vmem:[%s169_s27] sm:$0xff] (%p50_p3), %v190_v0  ;;  %195 = vst [vmem:[%s169_s27 + $0x18] sm:$0xff] (%p50_p3), %v194_v2  ;;  %v196_v3 = vld [vmem:[%s175_s26 + $0x6c] sm:$0xff] (%p50_p3) }
  0x14   : > { %193 = vst [vmem:[%s169_s27 + $0xc] sm:$0xff] (%p50_p3), %v192_v1  ;;  %v806_v4 = vld [vmem:[%s175_s26 + $0x8] sm:$0xf] (%p50_p3)  ;;  %v808_v5 = vld [vmem:[%s175_s26 + $0x2c] sm:$0xf] (%p50_p3)  ;;  %197 = vst [vmem:[%s169_s27 + $0x24] sm:$0xff] (%p50_p3), %v196_v3 }
  0x15   : > { %807 = vst [vmem:[%s169_s27 + $0x8] sm:$0xf] %v806_v4  ;;  %809 = vst [vmem:[%s169_s27 + $0x14] sm:$0xf] %v808_v5  ;;  %v812_v7 = vld [vmem:[%s175_s26 + $0x74] sm:$0xf] }
  0x16   : > { %811 = vst [vmem:[%s169_s27 + $0x20] sm:$0xf] %v810_v6  ;;  %813 = vst [vmem:[%s169_s27 + $0x2c] sm:$0xf] %v812_v7 }
  0x17 PF: > { %p814_p6 = scmp.ge.s32.totalorder %s1043_s16, 1  ;;  %p229_p7 = scmp.lt.s32.totalorder %s1043_s16, 4 }
  0x19   : > { %p230_p8 = pnand %p814_p6, %p229_p7 }
  0x1a   : > { %s236_s28 = sand.u32 (!%p230_p8), 1, %s1027_s12   ;;  %s275_s29 = smul.u32 (!%p230_p8), 48, %s1035_s14 }
  0x1b   : > { %233 = sbr.rel (%p230_p8) target bundleno = 316 (0x13c), region = 54  ;;  %p816_p10 = scmp.ne.s32.totalorder (!%p230_p8), %s1035_s14, 0 }
  0x1c   : > { %s932_s30 = smul.u32 (!%p230_p8), 48, %s236_s28  ;;  %p276_p9 = scmp.lt.s32.totalorder (!%p230_p8), %s275_s29, 143 }
  0x1e   : > { %s1117_s8 = scalar_lea.vmem (!%p230_p8), [#allocation3], %s932_s30 }
  0x22   : > { %s1186_s29 = smov (!%p276_p9, %s275_s29), 143  ;;  %300 = sbr.rel (%p816_p10) target bundleno = 41 (0x29), region = 62 }
  0x23   : > { %s815_s4 = sshll.u32 %s1186_s29, 2  ;;  %v817_v8 = vld [vmem:[%s1177_s2] ss:$0 sm:$0xff] (!%p816_p10) }
  0x24   : > { %s1115_s7 = scalar_lea.vmem %s1176_s1, %s815_s4  ;;  %308 = vst [vmem:[#allocation2] sm:$0xff] (!%p816_p10), %v817_v8  ;;  %309 = vst [vmem:[#allocation2 + $0x8] sm:$0xff] (!%p816_p10), %v817_v8 }
  0x25   : > { %310 = vst [vmem:[#allocation2 + $0x10] sm:$0xff] (!%p816_p10), %v817_v8  ;;  %311 = vst [vmem:[#allocation2 + $0x18] sm:$0xff] (!%p816_p10), %v817_v8 }
  0x29 PF: > { %v973_v9 = vld [vmem:[%s1115_s7 + $0x40] sm:$0xff]   ;;  %v976_v12 = vld [vmem:[%s1115_s7 + $0x48] sm:$0xff]   ;;  %v979_v15 = vld [vmem:[%s1115_s7 + $0x50] sm:$0xff]   ;;  %p848_p11 = scmp.ne.s32.totalorder %s1035_s14, 2 }
  0x2a   : > { %v974_v10 = vld [vmem:[%s1115_s7] sm:$0xff]   ;;  %873 = vmatprep.subr.bf16.mxu0 %v973_v9  ;;  %v977_v13 = vld [vmem:[%s1115_s7 + $0x8] sm:$0xff]   ;;  %v980_v16 = vld [vmem:[%s1115_s7 + $0x10] sm:$0xff]  }
  0x2b   : > { %v975_v11 = vld [vmem:[%s1115_s7 + $0x80] sm:$0xff]   ;;  %874 = vmatpush3.bf16.msra.mxu0 %v974_v10  ;;  %v978_v14 = vld [vmem:[%s1115_s7 + $0x88] sm:$0xff]   ;;  %v981_v17 = vld [vmem:[%s1115_s7 + $0x90] sm:$0xff]  }
  0x2c   : > { %911 = vmatprep.subr.bf16.mxu1 %v975_v11  ;;  %875 = vmatprep.subr.bf16.mxu0 %v976_v12  ;;  %v982_v18 = vld [vmem:[%s1115_s7 + $0x58] sm:$0xff]   ;;  %v985_v21 = vld [vmem:[%s1115_s7 + $0x60] sm:$0xff]   ;;  %v988_v24 = vld [vmem:[%s1115_s7 + $0x68] sm:$0xff]  }
  0x2d   : > { %912 = vmatpush3.bf16.msra.mxu1 %v975_v11  ;;  %v983_v19 = vld [vmem:[%s1115_s7 + $0x18] sm:$0xff]   ;;  %v987_v22 = vld [vmem:[%s1115_s7 + $0xa0] sm:$0xff]   ;;  %v990_v25 = vld [vmem:[%s1115_s7 + $0xa8] sm:$0xff]  }
  0x2e   : > { %913 = vmatprep.subr.bf16.mxu1 %v978_v14  ;;  %v984_v20 = vld [vmem:[%s1115_s7 + $0x98] sm:$0xff]   ;;  %v986_v23 = vld [vmem:[%s1115_s7 + $0x20] sm:$0xff]   ;;  %v989_v26 = vld [vmem:[%s1115_s7 + $0x28] sm:$0xff]  }
  0x2f   : > { %876 = vmatpush3.bf16.msra.mxu0 %v977_v13  ;;  %v991_v27 = vld [vmem:[%s1115_s7 + $0x70] sm:$0xff]   ;;  %v994_v30 = vld [vmem:[%s1115_s7 + $0x78] sm:$0xff]   ;;  %v312_v45 = vld [vmem:[#allocation2] sm:$0xff] }
  0x30   : > { %877 = vmatprep.subr.bf16.mxu0 %v979_v15  ;;  %v992_v28 = vld [vmem:[%s1115_s7 + $0x30] sm:$0xff]   ;;  %v996_v31 = vld [vmem:[%s1115_s7 + $0xb8] sm:$0xff]   ;;  %v313_v50 = vld [vmem:[#allocation2 + $0x8] sm:$0xff] }
  0x31   : > { %914 = vmatpush3.bf16.msra.mxu1 %v978_v14  ;;  %v993_v29 = vld [vmem:[%s1115_s7 + $0xb0] sm:$0xff]   ;;  %v995_v34 = vld [vmem:[%s1115_s7 + $0x38] sm:$0xff]  }
  0x32   : > { %915 = vmatprep.subr.bf16.mxu1 %v981_v17  ;;  %v999_v32 = vld [vmem:[%s1117_s8 + $0x4] ss:$12 sps:$4 sm:$0xff]   ;;  %v1000_v33 = vld [vmem:[%s1117_s8 + $0x8] ss:$12 sps:$4 sm:$0xff]   ;;  %v997_v35 = vld [vmem:[%s1117_s8] ss:$12 sps:$4 sm:$0xff]  }
  0x33   : > { %878 = vmatpush3.bf16.msra.mxu0 %v980_v16  ;;  %580 = vmatprep.mubr.bf16.mxu0 %v999_v32  ;;  %v1002_v36 = vld [vmem:[%s1117_s8 + $0x1c] ss:$12 sps:$4 sm:$0xff]   ;;  %v1001_v37 = vld [vmem:[%s1117_s8 + $0x20] ss:$12 sps:$4 sm:$0xff]   ;;  %v1004_v38 = vld [vmem:[%s1117_s8 + $0x18] ss:$12 sps:$4 sm:$0xff]  }
  0x34   : > { %879 = vmatprep.subr.bf16.mxu0 %v982_v18  ;;  %927 = vmatprep.mubr.bf16.mxu1 %v1000_v33  ;;  %v314_v59 = vld [vmem:[#allocation2 + $0x10] sm:$0xff]  ;;  %v315_v63 = vld [vmem:[#allocation2 + $0x18] sm:$0xff] }
  0x35   : > { %916 = vmatpush3.bf16.msra.mxu1 %v981_v17 }
  0x36   : > { %917 = vmatprep.subr.bf16.mxu1 %v984_v20 }
  0x37   : > { %880 = vmatpush3.bf16.msra.mxu0 %v983_v19 }
  0x38   : > { %881 = vmatprep.subr.bf16.mxu0 %v985_v21 }
  0x39   : > { %918 = vmatpush3.bf16.msra.mxu1 %v984_v20 }
  0x3a   : > { %919 = vmatprep.subr.bf16.mxu1 %v987_v22 }
  0x3b   : > { %882 = vmatpush3.bf16.msra.mxu0 %v986_v23 }
  0x3c   : > { %883 = vmatprep.subr.bf16.mxu0 %v988_v24 }
  0x3d   : > { %920 = vmatpush3.bf16.msra.mxu1 %v987_v22 }
  0x3e   : > { %921 = vmatprep.subr.bf16.mxu1 %v990_v25 }
  0x3f   : > { %884 = vmatpush3.bf16.msra.mxu0 %v989_v26 }
  0x40   : > { %885 = vmatprep.subr.bf16.mxu0 %v991_v27 }
  0x41   : > { %922 = vmatpush3.bf16.msra.mxu1 %v990_v25 }
  0x42   : > { %923 = vmatprep.subr.bf16.mxu1 %v993_v29 }
  0x43   : > { %886 = vmatpush3.bf16.msra.mxu0 %v992_v28 }
  0x44   : > { %887 = vmatprep.subr.bf16.mxu0 %v994_v30 }
  0x45   : > { %924 = vmatpush3.bf16.msra.mxu1 %v993_v29 }
  0x46   : > { %925 = vmatprep.subr.bf16.mxu1 %v996_v31 }
  0x47   : > { %888 = vmatpush3.bf16.msra.mxu0 %v995_v34 }
  0x49   : > { %926 = vmatpush3.bf16.msra.mxu1 %v996_v31 }
  0x4a   : > { %581 = vmatmul.mubr.bf16.vlgmr.msra.gmra.mrb[0].mxu0 %v997_v35 }
  0x4b   : > { %588 = vmatprep.mubr.bf16.mxu0 %v1002_v36 }
  0x4c   : > { %928 = vmatmul.mubr.bf16.vlgmr.msra.gmra.mrb[0].mxu1 %v1001_v37 }
  0x52   : > { %589 = vmatmul.mubr.bf16.gmra.mrb[4].mxu0 %v1004_v38 }
 0x11d   : > { %v889_v39 = vpop.f32.mrb[0].mxu0 }
 0x11e   : > { %v890_v40 = vpop.f32.mrb[1].mxu0 }
 0x11f   : > { %v891_v41 = vadd.f32 %v890_v40, %v889_v39  ;;  %v892_v42 = vpop.f32.mrb[2].mxu0  ;;  %v929_v43 = vpop.f32.mrb[0].mxu1 }
 0x120   : > { %v893_v44 = vpop.f32.mrb[3].mxu0  ;;  %v631_v46 = vpop.f32.mrb[1].mxu1 }
 0x121   : > { %v894_v47 = vadd.f32 %v893_v44, %v892_v42  ;;  %v632_v48 = vadd.f32 %v891_v41, %v631_v46  ;;  %v930_v49 = vpop.f32.mrb[2].mxu1 }
 0x122   : > { %v634_v51 = vpop.f32.mrb[3].mxu1 }
 0x123   : > { %v646_v52 = vadd.f32 %v632_v48, %v312_v45  ;;  %v635_v53 = vadd.f32 %v894_v47, %v634_v51 }
 0x125   : > { %650 = vst [vmem:[#allocation2] sm:$0xff] %v646_v52  ;;  %v647_v54 = vadd.f32 %v635_v53, %v313_v50  ;;  %v895_v55 = vpop.f32.mrb[4].mxu0 }
 0x126   : > { %v896_v56 = vpop.f32.mrb[5].mxu0 }
 0x127   : > { %651 = vst [vmem:[#allocation2 + $0x8] sm:$0xff] %v647_v54  ;;  %v897_v57 = vadd.f32 %v896_v56, %v895_v55  ;;  %v898_v58 = vpop.f32.mrb[6].mxu0 }
 0x128   : > { %v899_v60 = vpop.f32.mrb[7].mxu0 }
 0x129   : > { %v640_v61 = vadd.f32 %v929_v43, %v897_v57  ;;  %v900_v62 = vadd.f32 %v899_v60, %v898_v58  ;;  %657 = sbr.rel (%p848_p11) target bundleno = 316 (0x13c), region = 66 }
 0x12b   : > { %v648_v0 = vadd.f32 %v640_v61, %v314_v59  ;;  %v643_v1 = vadd.f32 %v930_v49, %v900_v62 }
 0x12c   : > { %v658_v3 = vld [vmem:[#allocation2] sm:$0xff] (!%p848_p11) }
 0x12d   : > { %652 = vst [vmem:[#allocation2 + $0x10] sm:$0xff] %v648_v0  ;;  %v649_v2 = vadd.f32 %v643_v1, %v315_v63  ;;  %v662_v6 = vmax.f32 (!%p848_p11), %v658_v3, 0.0 }
 0x12e   : > { %v659_v4 = vld [vmem:[#allocation2 + $0x8] sm:$0xff] (!%p848_p11) }
 0x12f   : > { %653 = vst [vmem:[#allocation2 + $0x18] sm:$0xff] %v649_v2  ;;  %v663_v7 = vmax.f32 (!%p848_p11), %v659_v4, 0.0 }
 0x131   : > { %v865_v11 = vpack.c.bf16 %v663_v7, %v662_v6 }
 0x133   : > { %866 = vst [vmem:[%s1178_s3] sm:$0xff] %v865_v11  }
 0x134   : > { %v660_v5 = vld [vmem:[#allocation2 + $0x10] sm:$0xff] }
 0x135   : > { %v664_v9 = vmax.f32 %v660_v5, 0.0 }
 0x136   : > { %v661_v8 = vld [vmem:[#allocation2 + $0x18] sm:$0xff] }
 0x137   : > { %v665_v10 = vmax.f32 %v661_v8, 0.0 }
 0x139   : > { %v870_v12 = vpack.c.bf16 %v665_v10, %v664_v9 }
 0x13b   : > { %872 = vst [vmem:[%s1178_s3 + $0x8] sm:$0xff] %v870_v12  }
 0x13c PF: > { %s13_s16 = sadd.s32 1, %s1043_s16   ;;  %s1179_s12 = smov %s1031_s13 }
 0x13d   : > { %p10_p12 = scmp.ge.s32.totalorder %s13_s16, 5   ;;  %s1180_s13 = smov %s1100_s20 }
 0x13e   : > { %s1181_s14 = smov %s1039_s15  ;;  %s1182_s15 = smov %s1184_s17 }
 0x13f   :  { %12 = sbr.rel (!%p10_p12) target bundleno = 3 (0x3), region = 113 }

// kernel: dpn_forward.30
= control target key start
LH: loop header
LB: loop body
LE: loop exit
PB: predicated region body
PF: predicated region fallthrough
CT: control target
= control target key end

     0   :  { %s335_s1 = inlined_call_operand.vmem [shape: bf16[128,128], index: 1, kind: input, shape index: {}]   ;;  %s336_s0 = inlined_call_operand.vmem [shape: bf16[32,128], index: 0, kind: input, shape index: {}]   ;;  %s337_s2 = inlined_call_operand.vmem [shape: f32[1,128], index: 2, kind: input, shape index: {}]   ;;  %s338_s3 = inlined_call_operand.vmem [shape: bf16[32,128], index: 3, kind: output, shape index: {}]  }
   0x1   :  { %v266_v0 = vld [vmem:[%s335_s1] sm:$0xff]   ;;  %v267_v1 = vld [vmem:[%s335_s1 + $0x8] sm:$0xff]   ;;  %v268_v2 = vld [vmem:[%s335_s1 + $0x10] sm:$0xff]  }
   0x2   :  { %246 = vmatprep.subr.bf16.mxu0 %v266_v0  ;;  %v269_v3 = vld [vmem:[%s335_s1 + $0x18] sm:$0xff]   ;;  %v274_v4 = vld [vmem:[%s336_s0] sm:$0xff]   ;;  %v271_v6 = vld [vmem:[%s335_s1 + $0x28] sm:$0xff]  }
   0x3   :  { %247 = vmatpush3.bf16.msra.mxu0 %v266_v0  ;;  %262 = vmatprep.mubr.bf16.mxu0 %v274_v4  ;;  %v270_v5 = vld [vmem:[%s335_s1 + $0x20] sm:$0xff]   ;;  %v272_v7 = vld [vmem:[%s335_s1 + $0x30] sm:$0xff]   ;;  %v273_v8 = vld [vmem:[%s335_s1 + $0x38] sm:$0xff]  }
   0x4   :  { %248 = vmatprep.subr.bf16.mxu0 %v267_v1  ;;  %v275_v9 = vld [vmem:[%s336_s0 + $0x8] sm:$0xff]   ;;  %v206_v10 = vld [vmem:[%s337_s2] ss:$0 sm:$0xff] }
   0x7   :  { %249 = vmatpush3.bf16.msra.mxu0 %v267_v1 }
   0x8   :  { %250 = vmatprep.subr.bf16.mxu0 %v268_v2 }
   0xb   :  { %251 = vmatpush3.bf16.msra.mxu0 %v268_v2 }
   0xc   :  { %252 = vmatprep.subr.bf16.mxu0 %v269_v3 }
   0xf   :  { %253 = vmatpush3.bf16.msra.mxu0 %v269_v3 }
  0x10   :  { %254 = vmatprep.subr.bf16.mxu0 %v270_v5 }
  0x13   :  { %255 = vmatpush3.bf16.msra.mxu0 %v270_v5 }
  0x14   :  { %256 = vmatprep.subr.bf16.mxu0 %v271_v6 }
  0x17   :  { %257 = vmatpush3.bf16.msra.mxu0 %v271_v6 }
  0x18   :  { %258 = vmatprep.subr.bf16.mxu0 %v272_v7 }
  0x1b   :  { %259 = vmatpush3.bf16.msra.mxu0 %v272_v7 }
  0x1c   :  { %260 = vmatprep.subr.bf16.mxu0 %v273_v8 }
  0x1f   :  { %261 = vmatpush3.bf16.msra.mxu0 %v273_v8 }
  0x22   :  { %263 = vmatmul.mubr.bf16.vlgmr.msra.gmra.mrb[0].mxu0 %v275_v9 }
  0xf5   :  { %v264_v11 = vpop.f32.mrb[0].mxu0 }
  0xf6   :  { %v165_v12 = vadd.f32 %v264_v11, %v206_v10  ;;  %v148_v13 = vpop.f32.mrb[1].mxu0 }
  0xf7   :  { %v163_v14 = vadd.f32 %v206_v10, %v148_v13  ;;  %v265_v15 = vpop.f32.mrb[2].mxu0 }
  0xf8   :  { %v166_v16 = vadd.f32 %v265_v15, %v206_v10  ;;  %v151_v17 = vpop.f32.mrb[3].mxu0  ;;  %v180_v19 = vmax.f32 %v165_v12, 0.0 }
  0xf9   :  { %v164_v18 = vadd.f32 %v206_v10, %v151_v17  ;;  %v178_v21 = vmax.f32 %v163_v14, 0.0 }
  0xfa   :  { %v181_v20 = vmax.f32 %v166_v16, 0.0 }
  0xfb   :  { %v179_v22 = vmax.f32 %v164_v18, 0.0 }
  0xfc   :  { %v233_v23 = vpack.c.bf16 %v181_v20, %v180_v19 }
  0xfd   :  { %v228_v24 = vpack.c.bf16 %v179_v22, %v178_v21 }
  0xfe   :  { %235 = vst [vmem:[%s338_s3 + $0x8] sm:$0xff] %v233_v23  }
  0xff   :  { %229 = vst [vmem:[%s338_s3] sm:$0xff] %v228_v24  }

// kernel: dpn_forward.32
= control target key start
LH: loop header
LB: loop body
LE: loop exit
PB: predicated region body
PF: predicated region fallthrough
CT: control target
= control target key end

     0   :  { %v197_v21 = vlaneseq  ;;  %s419_s1 = inlined_call_operand.vmem [shape: bf16[128,128], index: 1, kind: input, shape index: {}]   ;;  %s420_s0 = inlined_call_operand.vmem [shape: bf16[32,128], index: 0, kind: input, shape index: {}]   ;;  %s421_s2 = inlined_call_operand.vmem [shape: f32[1,128], index: 2, kind: input, shape index: {}]   ;;  %s422_s3 = inlined_call_operand.vmem [shape: bf16[32,128], index: 3, kind: input, shape index: {}]   ;;  %s423_s4 = inlined_call_operand.vmem [shape: bf16[32,128], index: 4, kind: output, shape index: {}]  }
   0x1   :  { %v326_v0 = vld [vmem:[%s419_s1] sm:$0xff]   ;;  %v327_v1 = vld [vmem:[%s419_s1 + $0x8] sm:$0xff]   ;;  %v328_v2 = vld [vmem:[%s419_s1 + $0x10] sm:$0xff]  }
   0x2   :  { %295 = vmatprep.subr.bf16.mxu0 %v326_v0  ;;  %v329_v3 = vld [vmem:[%s419_s1 + $0x18] sm:$0xff]   ;;  %v334_v4 = vld [vmem:[%s420_s0] sm:$0xff]   ;;  %v331_v6 = vld [vmem:[%s419_s1 + $0x28] sm:$0xff]   ;;  %v198_v23 = vand.u32 127, %v197_v21 }
   0x3   :  { %296 = vmatpush3.bf16.msra.mxu0 %v326_v0  ;;  %311 = vmatprep.mubr.bf16.mxu0 %v334_v4  ;;  %v330_v5 = vld [vmem:[%s419_s1 + $0x20] sm:$0xff]   ;;  %v332_v7 = vld [vmem:[%s419_s1 + $0x30] sm:$0xff]   ;;  %v333_v8 = vld [vmem:[%s419_s1 + $0x38] sm:$0xff]   ;;  %s336_s1 = smov 8  }
   0x4   :  { %297 = vmatprep.subr.bf16.mxu0 %v327_v1  ;;  %v335_v9 = vld [vmem:[%s420_s0 + $0x8] sm:$0xff]   ;;  %v246_v10 = vld [vmem:[%s421_s2] ss:$0 sm:$0xff]  ;;  %vm205_vm0 = vcmp.lt.s32.totalorder %v198_v23, 44  ;;  %vm204_vm1 = vcmp.lt.s32.totalorder %v198_v23, 40  ;;  %vm199_vm2 = vcmp.lt.s32.totalorder %v198_v23, 32 }
   0x5   :  { %v266_v22 = vld [vmem:[%s422_s3] sm:$0xff]   ;;  %v283_v24 = vld [vmem:[%s422_s3 + $0x8] sm:$0xff]  }
   0x6   :  { %v267_v25 = vunpack.c.l.bf16 %v266_v22  ;;  %v268_v26 = vunpack.c.h.bf16 %v266_v22  ;;  %v271_v30 = vunpack.c.l.bf16 %v283_v24  ;;  %v272_v31 = vunpack.c.h.bf16 %v283_v24 }
   0x7   :  { %298 = vmatpush3.bf16.msra.mxu0 %v327_v1 }
   0x8   :  { %299 = vmatprep.subr.bf16.mxu0 %v328_v2 }
   0xb   :  { %300 = vmatpush3.bf16.msra.mxu0 %v328_v2 }
   0xc   :  { %301 = vmatprep.subr.bf16.mxu0 %v329_v3 }
   0xf   :  { %302 = vmatpush3.bf16.msra.mxu0 %v329_v3 }
  0x10   :  { %303 = vmatprep.subr.bf16.mxu0 %v330_v5 }
  0x13   :  { %304 = vmatpush3.bf16.msra.mxu0 %v330_v5 }
  0x14   :  { %305 = vmatprep.subr.bf16.mxu0 %v331_v6 }
  0x17   :  { %306 = vmatpush3.bf16.msra.mxu0 %v331_v6 }
  0x18   :  { %307 = vmatprep.subr.bf16.mxu0 %v332_v7 }
  0x1b   :  { %308 = vmatpush3.bf16.msra.mxu0 %v332_v7 }
  0x1c   :  { %309 = vmatprep.subr.bf16.mxu0 %v333_v8 }
  0x1f   :  { %310 = vmatpush3.bf16.msra.mxu0 %v333_v8 }
  0x22   :  { %312 = vmatmul.mubr.bf16.vlgmr.msra.gmra.mrb[0].mxu0 %v335_v9 }
  0xf5   :  { %v313_v11 = vpop.f32.mrb[0].mxu0 }
  0xf6   :  { %v151_v12 = vpop.f32.mrb[1].mxu0  ;;  %v168_v14 = vadd.f32 %v313_v11, %v246_v10 }
  0xf7   :  { %v314_v13 = vpop.f32.mrb[2].mxu0  ;;  %v166_v17 = vadd.f32 %v246_v10, %v151_v12 }
  0xf8   :  { %v169_v15 = vadd.f32 %v314_v13, %v246_v10  ;;  %v154_v16 = vpop.f32.mrb[3].mxu0  ;;  %v202_v45 = vadd.f32 %v271_v30, %v168_v14 }
  0xf9   :  { %v167_v18 = vadd.f32 %v246_v10, %v154_v16  ;;  %v200_v32 = vadd.f32 %v267_v25, %v166_v17 }
  0xfa   :  { %v321_v19 = vpack.i.bf16 %v169_v15, %v168_v14  ;;  %v203_v46 = vadd.f32 %v272_v31, %v169_v15 }
  0xfb   :  { %v316_v20 = vpack.i.bf16 %v167_v18, %v166_v17  ;;  %v201_v33 = vadd.f32 %v268_v26, %v167_v18 }
  0xfd   :  { %317 = vrot.lane.b32.xlu0 %v316_v20, %s336_s1 }
 0x101   :  { %322 = vrot.lane.b32.xlu0 %v321_v19, %s336_s1 }
 0x16f   :  { %v318_v27 = vpop.permute.xlu0 %317 }
 0x170   :  { %v320_v28 = vunpack.i.h.bf16 %v318_v27  ;;  %v319_v29 = vunpack.i.l.bf16 %v318_v27 }
 0x172   :  { %v207_v34 = vsel %vm205_vm0, %v320_v28, 0.0  ;;  %v206_v35 = vsel %vm205_vm0, %v319_v29, 0.0 }
 0x173   :  { %v211_v36 = vsel %vm204_vm1, %v268_v26, %v207_v34  ;;  %v210_v37 = vsel %vm204_vm1, %v267_v25, %v206_v35  ;;  %v323_v38 = vpop.permute.xlu0 %322 }
 0x174   :  { %v214_v39 = vsel %vm199_vm2, %v200_v32, %v210_v37  ;;  %v215_v40 = vsel %vm199_vm2, %v201_v33, %v211_v36  ;;  %v325_v41 = vunpack.i.h.bf16 %v323_v38  ;;  %v324_v42 = vunpack.i.l.bf16 %v323_v38 }
 0x175   :  { %v218_v43 = vmax.f32 %v214_v39, 0.0  ;;  %v219_v44 = vmax.f32 %v215_v40, 0.0 }
 0x176   :  { %v209_v47 = vsel %vm205_vm0, %v325_v41, 0.0  ;;  %v208_v48 = vsel %vm205_vm0, %v324_v42, 0.0 }
 0x177   :  { %v276_v49 = vpack.c.bf16 %v219_v44, %v218_v43  ;;  %v213_v50 = vsel %vm204_vm1, %v272_v31, %v209_v47  ;;  %v212_v51 = vsel %vm204_vm1, %v271_v30, %v208_v48 }
 0x178   :  { %v217_v52 = vsel %vm199_vm2, %v203_v46, %v213_v50  ;;  %v216_v53 = vsel %vm199_vm2, %v202_v45, %v212_v51 }
 0x179   :  { %v221_v54 = vmax.f32 %v217_v52, 0.0  ;;  %v220_v55 = vmax.f32 %v216_v53, 0.0  ;;  %277 = vst [vmem:[%s423_s4] sm:$0xff] %v276_v49  }
 0x17b   :  { %v281_v56 = vpack.c.bf16 %v221_v54, %v220_v55 }
 0x17d   :  { %284 = vst [vmem:[%s423_s4 + $0x8] sm:$0xff] %v281_v56  }

// kernel: dpn_forward.35
= control target key start
LH: loop header
LB: loop body
LE: loop exit
PB: predicated region body
PF: predicated region fallthrough
CT: control target
= control target key end

     0   :  { %v225_v0 = vmov 0.0   ;;  %vm226_vm0 = vmmov 0   ;;  %s280_s1 = inlined_call_operand.vmem [shape: bf16[128,128], index: 1, kind: input, shape index: {}]   ;;  %s281_s0 = inlined_call_operand.vmem [shape: bf16[16,128], index: 0, kind: input, shape index: {}]   ;;  %s282_s2 = inlined_call_operand.vmem [shape: f32[1,128], index: 2, kind: input, shape index: {}]   ;;  %s283_s3 = inlined_call_operand.vmem [shape: bf16[16,128], index: 3, kind: output, shape index: {}]  }
   0x1   :  { %194 = vmatprep.subr.bf16.mxu0 %v225_v0  ;;  %v216_v1 = vld [vmem:[%s280_s1] sm:$0xff]   ;;  %210 = vmatprep.mubr.msk.bf16.mxu0 %vm226_vm0, %v225_v0  ;;  %v217_v2 = vld [vmem:[%s280_s1 + $0x8] sm:$0xff]   ;;  %v218_v3 = vld [vmem:[%s280_s1 + $0x10] sm:$0xff]  }
   0x2   :  { %195 = vmatpush3.bf16.msra.mxu0 %v216_v1  ;;  %v219_v4 = vld [vmem:[%s280_s1 + $0x18] sm:$0xff]   ;;  %v220_v5 = vld [vmem:[%s280_s1 + $0x20] sm:$0xff]   ;;  %v221_v6 = vld [vmem:[%s280_s1 + $0x28] sm:$0xff]  }
   0x3   :  { %196 = vmatprep.subr.bf16.mxu0 %v225_v0  ;;  %v222_v7 = vld [vmem:[%s280_s1 + $0x30] sm:$0xff]   ;;  %v223_v8 = vld [vmem:[%s280_s1 + $0x38] sm:$0xff]   ;;  %v224_v9 = vld [vmem:[%s281_s0] sm:$0xff]  }
   0x4   :  { %v166_v10 = vld [vmem:[%s282_s2] ss:$0 sm:$0xff] }
   0x6   :  { %197 = vmatpush3.bf16.msra.mxu0 %v217_v2 }
   0x7   :  { %198 = vmatprep.subr.bf16.mxu0 %v225_v0 }
   0xa   :  { %199 = vmatpush3.bf16.msra.mxu0 %v218_v3 }
   0xb   :  { %200 = vmatprep.subr.bf16.mxu0 %v225_v0 }
   0xe   :  { %201 = vmatpush3.bf16.msra.mxu0 %v219_v4 }
   0xf   :  { %202 = vmatprep.subr.bf16.mxu0 %v225_v0 }
  0x12   :  { %203 = vmatpush3.bf16.msra.mxu0 %v220_v5 }
  0x13   :  { %204 = vmatprep.subr.bf16.mxu0 %v225_v0 }
  0x16   :  { %205 = vmatpush3.bf16.msra.mxu0 %v221_v6 }
  0x17   :  { %206 = vmatprep.subr.bf16.mxu0 %v225_v0 }
  0x1a   :  { %207 = vmatpush3.bf16.msra.mxu0 %v222_v7 }
  0x1b   :  { %208 = vmatprep.subr.bf16.mxu0 %v225_v0 }
  0x1e   :  { %209 = vmatpush3.bf16.msra.mxu0 %v223_v8 }
  0x21   :  { %211 = vmatmul.mubr.bf16.vlgmr.msra.gmra.mrb[0].mxu0 %v224_v9 }
  0xf4   :  { %v136_v11 = vpop.f32.mrb[0].mxu0 }
  0xf5   :  { %v212_v12 = vpop.f32.mrb[1].mxu0  ;;  %v143_v14 = vadd.f32 %v166_v10, %v136_v11 }
  0xf6   :  { %v139_v13 = vpop.f32.mrb[2].mxu0 }
  0xf7   :  { %v144_v15 = vadd.f32 %v166_v10, %v139_v13  ;;  %v213_v16 = vpop.f32.mrb[3].mxu0 }
  0xf9   :  { %v183_v17 = vpack.c.bf16 %v144_v15, %v143_v14 }
  0xfb   :  { %184 = vst [vmem:[%s283_s3] sm:$0xff] %v183_v17  }

// kernel: dpn_forward.34
= control target key start
LH: loop header
LB: loop body
LE: loop exit
PB: predicated region body
PF: predicated region fallthrough
CT: control target
= control target key end

     0   :  { %s975_s12 = smov 0   ;;  %s977_s13 = smov 0   ;;  %s1079_s0 = inlined_call_operand.vmem [shape: bf16[16,1152], index: 0, kind: input, shape index: {}]   ;;  %s1080_s1 = inlined_call_operand.vmem [shape: bf16[1152,128], index: 1, kind: input, shape index: {}]   ;;  %s1081_s2 = inlined_call_operand.vmem [shape: f32[1,128], index: 2, kind: input, shape index: {}]   ;;  %s1082_s3 = inlined_call_operand.vmem [shape: bf16[16,128], index: 3, kind: output, shape index: {}]  }
   0x1   :  { %s979_s14 = smov 0   ;;  %s981_s15 = smov 0  }
   0x2   :  { %s983_s16 = smov 0  }
   0x3 LB: > { %s25_s17 = sadd.s32 1, %s947_s15  ;;  %p48_p1 = scmp.ne.s32.totalorder %s939_s13, %s935_s12  ;;  %s951_s16 = sphi %s983_s16, %s13_s16   ;;  %s947_s15 = sphi %s981_s15, %s1086_s15   ;;  %s943_s14 = sphi %s979_s14, %s1085_s14   ;;  %s939_s13 = sphi %s977_s13, %s1084_s13   ;;  %s935_s12 = sphi %s975_s12, %s1083_s12  }
   0x4   : > { %p26_p0 = scmp.ge.s32.totalorder %s25_s17, 3  ;;  %p49_p2 = scmp.eq.s32.totalorder %s951_s16, 0 }
   0x5   : > { %s41_s19 = sadd.s32 1, %s939_s13  ;;  %p738_p5 = scmp.ge.s32.totalorder %s951_s16, 3 }
   0x6   : > { %s1088_s17 = smov (%p26_p0, %s25_s17), 0  ;;  %p50_p3 = por %p49_p2, %p48_p1 }
   0x7   : > { %s37_s18 = ssub.s32 %s947_s15, %s1088_s17  ;;  %162 = sbr.rel (%p738_p5) target bundleno = 21 (0x15), region = 20 }
   0x8   : > { %p39_p4 = scmp.eq.s32.totalorder %s37_s18, 0 }
   0xa   : > { %s1010_s20 = scalar_select %p39_p4, %s939_s13, %s41_s19  }
   0xe   : > { %165 = sbr.rel (!%p50_p3) target bundleno = 21 (0x15), region = 24  ;;  %s167_s21 = sand.u32 (%p50_p3), 1, %s939_s13  }
   0xf   : > { %s782_s22 = smul.u32 (%p50_p3), 12, %s947_s15 }
  0x10   : > { %s841_s23 = smul.u32 (%p50_p3), 24, %s167_s21 }
  0x11   : > { %s175_s26 = scalar_lea.vmem (%p50_p3), %s1079_s0, %s782_s22 }
  0x12   : > { %v190_v0 = vld [vmem:[%s175_s26] sm:$0xff] (%p50_p3)  ;;  %v740_v2 = vld [vmem:[%s175_s26 + $0x8] sm:$0xf] (%p50_p3)  ;;  %s169_s27 = scalar_lea.vmem (%p50_p3), [#allocation3], %s841_s23  ;;  %v742_v3 = vld [vmem:[%s175_s26 + $0x2c] sm:$0xf] (%p50_p3) }
  0x13   : > { %v192_v1 = vld [vmem:[%s175_s26 + $0x24] sm:$0xff] (%p50_p3)  ;;  %191 = vst [vmem:[%s169_s27] sm:$0xff] (%p50_p3), %v190_v0  ;;  %741 = vst [vmem:[%s169_s27 + $0x8] sm:$0xf] (%p50_p3), %v740_v2 }
  0x14   : > { %193 = vst [vmem:[%s169_s27 + $0xc] sm:$0xff] (%p50_p3), %v192_v1  ;;  %743 = vst [vmem:[%s169_s27 + $0x14] sm:$0xf] (%p50_p3), %v742_v3 }
  0x15 PF: > { %p744_p6 = scmp.ge.s32.totalorder %s951_s16, 1  ;;  %p221_p7 = scmp.lt.s32.totalorder %s951_s16, 4 }
  0x17   : > { %p222_p8 = pnand %p744_p6, %p221_p7 }
  0x18   : > { %s228_s28 = sand.u32 (!%p222_p8), 1, %s935_s12   ;;  %s267_s29 = smul.u32 (!%p222_p8), 48, %s943_s14 }
  0x19   : > { %225 = sbr.rel (%p222_p8) target bundleno = 306 (0x132), region = 54  ;;  %p746_p10 = scmp.ne.s32.totalorder (!%p222_p8), %s943_s14, 0 }
  0x1a   : > { %s842_s30 = smul.u32 (!%p222_p8), 24, %s228_s28  ;;  %p268_p9 = scmp.lt.s32.totalorder (!%p222_p8), %s267_s29, 143 }
  0x1c   : > { %s1027_s8 = scalar_lea.vmem (!%p222_p8), [#allocation3], %s842_s30 }
  0x20   : > { %s1090_s29 = smov (!%p268_p9, %s267_s29), 143  ;;  %292 = sbr.rel (%p746_p10) target bundleno = 39 (0x27), region = 62 }
  0x21   : > { %s745_s4 = sshll.u32 %s1090_s29, 2  ;;  %v747_v4 = vld [vmem:[%s1081_s2] ss:$0 sm:$0xff] (!%p746_p10) }
  0x22   : > { %s1025_s7 = scalar_lea.vmem %s1080_s1, %s745_s4  ;;  %300 = vst [vmem:[#allocation2] sm:$0xff] (!%p746_p10), %v747_v4  ;;  %301 = vst [vmem:[#allocation2 + $0x8] sm:$0xff] (!%p746_p10), %v747_v4 }
  0x27 PF: > { %v885_v5 = vld [vmem:[%s1025_s7 + $0x40] sm:$0xff]   ;;  %v953_v6 = vmov 0.0   ;;  %vm954_vm0 = vmmov 0   ;;  %v888_v9 = vld [vmem:[%s1025_s7 + $0x48] sm:$0xff]   ;;  %v891_v12 = vld [vmem:[%s1025_s7 + $0x50] sm:$0xff]   ;;  %p775_p11 = scmp.ne.s32.totalorder %s943_s14, 2 }
  0x28   : > { %821 = vmatprep.subr.bf16.mxu1 %v953_v6  ;;  %v886_v7 = vld [vmem:[%s1025_s7] sm:$0xff]   ;;  %790 = vmatprep.subr.bf16.mxu0 %v885_v5  ;;  %v889_v10 = vld [vmem:[%s1025_s7 + $0x8] sm:$0xff]   ;;  %v892_v13 = vld [vmem:[%s1025_s7 + $0x10] sm:$0xff]  }
  0x29   : > { %v887_v8 = vld [vmem:[%s1025_s7 + $0x80] sm:$0xff]   ;;  %837 = vmatprep.mubr.msk.bf16.mxu1 %vm954_vm0, %v953_v6  ;;  %791 = vmatpush3.bf16.msra.mxu0 %v886_v7  ;;  %v890_v11 = vld [vmem:[%s1025_s7 + $0x88] sm:$0xff]   ;;  %v893_v14 = vld [vmem:[%s1025_s7 + $0x90] sm:$0xff]  }
  0x2a   : > { %822 = vmatpush3.bf16.msra.mxu1 %v887_v8  ;;  %792 = vmatprep.subr.bf16.mxu0 %v888_v9  ;;  %v894_v15 = vld [vmem:[%s1025_s7 + $0x58] sm:$0xff]   ;;  %v897_v18 = vld [vmem:[%s1025_s7 + $0x60] sm:$0xff]   ;;  %v900_v21 = vld [vmem:[%s1025_s7 + $0x68] sm:$0xff]  }
  0x2b   : > { %823 = vmatprep.subr.bf16.mxu1 %v953_v6  ;;  %v895_v16 = vld [vmem:[%s1025_s7 + $0x18] sm:$0xff]   ;;  %v898_v19 = vld [vmem:[%s1025_s7 + $0x20] sm:$0xff]   ;;  %v901_v22 = vld [vmem:[%s1025_s7 + $0x28] sm:$0xff]  }
  0x2c   : > { %v896_v17 = vld [vmem:[%s1025_s7 + $0x98] sm:$0xff]   ;;  %v899_v20 = vld [vmem:[%s1025_s7 + $0xa0] sm:$0xff]   ;;  %v902_v23 = vld [vmem:[%s1025_s7 + $0xa8] sm:$0xff]  }
  0x2d   : > { %793 = vmatpush3.bf16.msra.mxu0 %v889_v10  ;;  %v903_v24 = vld [vmem:[%s1025_s7 + $0x70] sm:$0xff]   ;;  %v906_v27 = vld [vmem:[%s1025_s7 + $0x78] sm:$0xff]   ;;  %v302_v39 = vld [vmem:[#allocation2] sm:$0xff] }
  0x2e   : > { %824 = vmatpush3.bf16.msra.mxu1 %v890_v11  ;;  %794 = vmatprep.subr.bf16.mxu0 %v891_v12  ;;  %v904_v25 = vld [vmem:[%s1025_s7 + $0x30] sm:$0xff]   ;;  %v907_v29 = vld [vmem:[%s1025_s7 + $0x38] sm:$0xff]   ;;  %v303_v45 = vld [vmem:[#allocation2 + $0x8] sm:$0xff] }
  0x2f   : > { %825 = vmatprep.subr.bf16.mxu1 %v953_v6  ;;  %v905_v26 = vld [vmem:[%s1025_s7 + $0xb0] sm:$0xff]   ;;  %v908_v30 = vld [vmem:[%s1025_s7 + $0xb8] sm:$0xff]  }
  0x30   : > { %v911_v28 = vld [vmem:[%s1027_s8 + $0x4] ss:$12 sps:$4 sm:$0xff]   ;;  %v909_v31 = vld [vmem:[%s1027_s8] ss:$12 sps:$4 sm:$0xff]   ;;  %v912_v32 = vld [vmem:[%s1027_s8 + $0x8] ss:$12 sps:$4 sm:$0xff]  }
  0x31   : > { %795 = vmatpush3.bf16.msra.mxu0 %v892_v13  ;;  %548 = vmatprep.mubr.bf16.mxu0 %v911_v28 }
  0x32   : > { %826 = vmatpush3.bf16.msra.mxu1 %v893_v14  ;;  %796 = vmatprep.subr.bf16.mxu0 %v894_v15 }
  0x33   : > { %827 = vmatprep.subr.bf16.mxu1 %v953_v6 }
  0x35   : > { %797 = vmatpush3.bf16.msra.mxu0 %v895_v16 }
  0x36   : > { %828 = vmatpush3.bf16.msra.mxu1 %v896_v17  ;;  %798 = vmatprep.subr.bf16.mxu0 %v897_v18 }
  0x37   : > { %829 = vmatprep.subr.bf16.mxu1 %v953_v6 }
  0x39   : > { %799 = vmatpush3.bf16.msra.mxu0 %v898_v19 }
  0x3a   : > { %830 = vmatpush3.bf16.msra.mxu1 %v899_v20  ;;  %800 = vmatprep.subr.bf16.mxu0 %v900_v21 }
  0x3b   : > { %831 = vmatprep.subr.bf16.mxu1 %v953_v6 }
  0x3d   : > { %801 = vmatpush3.bf16.msra.mxu0 %v901_v22 }
  0x3e   : > { %832 = vmatpush3.bf16.msra.mxu1 %v902_v23  ;;  %802 = vmatprep.subr.bf16.mxu0 %v903_v24 }
  0x3f   : > { %833 = vmatprep.subr.bf16.mxu1 %v953_v6 }
  0x41   : > { %803 = vmatpush3.bf16.msra.mxu0 %v904_v25 }
  0x42   : > { %834 = vmatpush3.bf16.msra.mxu1 %v905_v26  ;;  %804 = vmatprep.subr.bf16.mxu0 %v906_v27 }
  0x43   : > { %835 = vmatprep.subr.bf16.mxu1 %v953_v6 }
  0x45   : > { %805 = vmatpush3.bf16.msra.mxu0 %v907_v29 }
  0x46   : > { %836 = vmatpush3.bf16.msra.mxu1 %v908_v30 }
  0x48   : > { %549 = vmatmul.mubr.bf16.vlgmr.msra.gmra.mrb[0].mxu0 %v909_v31 }
  0x49   : > { %838 = vmatmul.mubr.bf16.vlgmr.msra.gmra.mrb[0].mxu1 %v912_v32 }
 0x11b   : > { %v806_v33 = vpop.f32.mrb[0].mxu0 }
 0x11c   : > { %v591_v34 = vpop.f32.mrb[0].mxu1  ;;  %v807_v35 = vpop.f32.mrb[1].mxu0 }
 0x11d   : > { %v808_v36 = vadd.f32 %v807_v35, %v806_v33  ;;  %v839_v37 = vpop.f32.mrb[1].mxu1  ;;  %v809_v38 = vpop.f32.mrb[2].mxu0 }
 0x11e   : > { %v594_v40 = vpop.f32.mrb[2].mxu1  ;;  %v810_v41 = vpop.f32.mrb[3].mxu0 }
 0x11f   : > { %v592_v42 = vadd.f32 %v808_v36, %v591_v34  ;;  %v811_v43 = vadd.f32 %v810_v41, %v809_v38  ;;  %v840_v44 = vpop.f32.mrb[3].mxu1  ;;  %605 = sbr.rel (%p775_p11) target bundleno = 306 (0x132), region = 66 }
 0x121   : > { %v598_v46 = vadd.f32 %v592_v42, %v302_v39  ;;  %v595_v47 = vadd.f32 %v811_v43, %v594_v40 }
 0x123   : > { %600 = vst [vmem:[#allocation2] sm:$0xff] %v598_v46  ;;  %v599_v48 = vadd.f32 %v595_v47, %v303_v45 }
 0x125   : > { %601 = vst [vmem:[#allocation2 + $0x8] sm:$0xff] %v599_v48 }
 0x12a   : > { %v606_v49 = vld [vmem:[#allocation2] sm:$0xff] }
 0x12b   : > { %v608_v51 = vmax.f32 %v606_v49, 0.0 }
 0x12c   : > { %v607_v50 = vld [vmem:[#allocation2 + $0x8] sm:$0xff] }
 0x12d   : > { %v609_v52 = vmax.f32 %v607_v50, 0.0 }
 0x12f   : > { %v788_v53 = vpack.c.bf16 %v609_v52, %v608_v51 }
 0x131   : > { %789 = vst [vmem:[%s1082_s3] sm:$0xff] %v788_v53  }
 0x132 PF: > { %s13_s16 = sadd.s32 1, %s951_s16   ;;  %s1083_s12 = smov %s939_s13 }
 0x133   : > { %p10_p12 = scmp.ge.s32.totalorder %s13_s16, 5   ;;  %s1084_s13 = smov %s1010_s20 }
 0x134   : > { %s1085_s14 = smov %s947_s15  ;;  %s1086_s15 = smov %s1088_s17 }
 0x135   :  { %12 = sbr.rel (!%p10_p12) target bundleno = 3 (0x3), region = 113 }

// kernel: dpn_forward.36
= control target key start
LH: loop header
LB: loop body
LE: loop exit
PB: predicated region body
PF: predicated region fallthrough
CT: control target
= control target key end

     0   :  { %v261_v0 = vmov 0.0   ;;  %vm262_vm0 = vmmov 0   ;;  %s263_s9 = smov 4   ;;  %v163_v18 = vlaneseq  ;;  %s325_s1 = inlined_call_operand.vmem [shape: bf16[128,128], index: 1, kind: input, shape index: {}]   ;;  %s326_s0 = inlined_call_operand.vmem [shape: bf16[16,128], index: 0, kind: input, shape index: {}]   ;;  %s327_s2 = inlined_call_operand.vmem [shape: f32[1,128], index: 2, kind: input, shape index: {}]   ;;  %s328_s3 = inlined_call_operand.vmem [shape: bf16[16,128], index: 3, kind: input, shape index: {}]   ;;  %s329_s4 = inlined_call_operand.vmem [shape: bf16[16,128], index: 4, kind: output, shape index: {}]  }
   0x1   :  { %224 = vmatprep.subr.bf16.mxu0 %v261_v0  ;;  %v252_v1 = vld [vmem:[%s325_s1] sm:$0xff]   ;;  %240 = vmatprep.mubr.msk.bf16.mxu0 %vm262_vm0, %v261_v0  ;;  %v253_v2 = vld [vmem:[%s325_s1 + $0x8] sm:$0xff]   ;;  %v254_v3 = vld [vmem:[%s325_s1 + $0x10] sm:$0xff]  }
   0x2   :  { %225 = vmatpush3.bf16.msra.mxu0 %v252_v1  ;;  %v255_v4 = vld [vmem:[%s325_s1 + $0x18] sm:$0xff]   ;;  %v256_v5 = vld [vmem:[%s325_s1 + $0x20] sm:$0xff]   ;;  %v257_v6 = vld [vmem:[%s325_s1 + $0x28] sm:$0xff]   ;;  %v164_v20 = vand.u32 127, %v163_v18 }
   0x3   :  { %226 = vmatprep.subr.bf16.mxu0 %v261_v0  ;;  %v258_v7 = vld [vmem:[%s325_s1 + $0x30] sm:$0xff]   ;;  %v259_v8 = vld [vmem:[%s325_s1 + $0x38] sm:$0xff]   ;;  %v260_v9 = vld [vmem:[%s326_s0] sm:$0xff]  }
   0x4   :  { %v192_v10 = vld [vmem:[%s327_s2] ss:$0 sm:$0xff]  ;;  %vm169_vm1 = vcmp.lt.s32.totalorder %v164_v20, 40  ;;  %vm168_vm2 = vcmp.lt.s32.totalorder %v164_v20, 36  ;;  %vm165_vm3 = vcmp.lt.s32.totalorder %v164_v20, 32 }
   0x5   :  { %v207_v19 = vld [vmem:[%s328_s3] sm:$0xff]  }
   0x6   :  { %227 = vmatpush3.bf16.msra.mxu0 %v253_v2  ;;  %v208_v21 = vunpack.c.l.bf16 %v207_v19  ;;  %v209_v22 = vunpack.c.h.bf16 %v207_v19 }
   0x7   :  { %228 = vmatprep.subr.bf16.mxu0 %v261_v0 }
   0xa   :  { %229 = vmatpush3.bf16.msra.mxu0 %v254_v3 }
   0xb   :  { %230 = vmatprep.subr.bf16.mxu0 %v261_v0 }
   0xe   :  { %231 = vmatpush3.bf16.msra.mxu0 %v255_v4 }
   0xf   :  { %232 = vmatprep.subr.bf16.mxu0 %v261_v0 }
  0x12   :  { %233 = vmatpush3.bf16.msra.mxu0 %v256_v5 }
  0x13   :  { %234 = vmatprep.subr.bf16.mxu0 %v261_v0 }
  0x16   :  { %235 = vmatpush3.bf16.msra.mxu0 %v257_v6 }
  0x17   :  { %236 = vmatprep.subr.bf16.mxu0 %v261_v0 }
  0x1a   :  { %237 = vmatpush3.bf16.msra.mxu0 %v258_v7 }
  0x1b   :  { %238 = vmatprep.subr.bf16.mxu0 %v261_v0 }
  0x1e   :  { %239 = vmatpush3.bf16.msra.mxu0 %v259_v8 }
  0x21   :  { %241 = vmatmul.mubr.bf16.vlgmr.msra.gmra.mrb[0].mxu0 %v260_v9 }
  0xf4   :  { %v139_v11 = vpop.f32.mrb[0].mxu0 }
  0xf5   :  { %v242_v12 = vpop.f32.mrb[1].mxu0  ;;  %v146_v14 = vadd.f32 %v192_v10, %v139_v11 }
  0xf6   :  { %v142_v13 = vpop.f32.mrb[2].mxu0 }
  0xf7   :  { %v147_v15 = vadd.f32 %v192_v10, %v142_v13  ;;  %v243_v16 = vpop.f32.mrb[3].mxu0  ;;  %v166_v26 = vadd.f32 %v208_v21, %v146_v14 }
  0xf9   :  { %v247_v17 = vpack.i.bf16 %v147_v15, %v146_v14  ;;  %v167_v27 = vadd.f32 %v209_v22, %v147_v15 }
  0xfb   :  { %248 = vrot.lane.b32.xlu0 %v247_v17, %s263_s9 }
 0x16d   :  { %v249_v23 = vpop.permute.xlu0 %248 }
 0x16e   :  { %v251_v24 = vunpack.i.h.bf16 %v249_v23  ;;  %v250_v25 = vunpack.i.l.bf16 %v249_v23 }
 0x170   :  { %v171_v28 = vsel %vm169_vm1, %v251_v24, 0.0  ;;  %v170_v29 = vsel %vm169_vm1, %v250_v25, 0.0 }
 0x171   :  { %v173_v30 = vsel %vm168_vm2, %v209_v22, %v171_v28  ;;  %v172_v31 = vsel %vm168_vm2, %v208_v21, %v170_v29 }
 0x172   :  { %v174_v32 = vsel %vm165_vm3, %v166_v26, %v172_v31  ;;  %v175_v33 = vsel %vm165_vm3, %v167_v27, %v173_v30 }
 0x173   :  { %v176_v34 = vmax.f32 %v174_v32, 0.0  ;;  %v177_v35 = vmax.f32 %v175_v33, 0.0 }
 0x175   :  { %v213_v36 = vpack.c.bf16 %v177_v35, %v176_v34 }
 0x177   :  { %214 = vst [vmem:[%s329_s4] sm:$0xff] %v213_v36  }

// kernel: dpn_forward.37
= control target key start
LH: loop header
LB: loop body
LE: loop exit
PB: predicated region body
PF: predicated region fallthrough
CT: control target
= control target key end

     0   :  { %v227_v0 = vmov 0.0   ;;  %vm228_vm0 = vmmov 0   ;;  %s282_s1 = inlined_call_operand.vmem [shape: bf16[128,128], index: 1, kind: input, shape index: {}]   ;;  %s283_s0 = inlined_call_operand.vmem [shape: bf16[16,128], index: 0, kind: input, shape index: {}]   ;;  %s284_s2 = inlined_call_operand.vmem [shape: f32[1,128], index: 2, kind: input, shape index: {}]   ;;  %s285_s3 = inlined_call_operand.vmem [shape: bf16[16,128], index: 3, kind: output, shape index: {}]  }
   0x1   :  { %196 = vmatprep.subr.bf16.mxu0 %v227_v0  ;;  %v218_v1 = vld [vmem:[%s282_s1] sm:$0xff]   ;;  %212 = vmatprep.mubr.msk.bf16.mxu0 %vm228_vm0, %v227_v0  ;;  %v219_v2 = vld [vmem:[%s282_s1 + $0x8] sm:$0xff]   ;;  %v220_v3 = vld [vmem:[%s282_s1 + $0x10] sm:$0xff]  }
   0x2   :  { %197 = vmatpush3.bf16.msra.mxu0 %v218_v1  ;;  %v221_v4 = vld [vmem:[%s282_s1 + $0x18] sm:$0xff]   ;;  %v222_v5 = vld [vmem:[%s282_s1 + $0x20] sm:$0xff]   ;;  %v223_v6 = vld [vmem:[%s282_s1 + $0x28] sm:$0xff]  }
   0x3   :  { %198 = vmatprep.subr.bf16.mxu0 %v227_v0  ;;  %v224_v7 = vld [vmem:[%s282_s1 + $0x30] sm:$0xff]   ;;  %v225_v8 = vld [vmem:[%s282_s1 + $0x38] sm:$0xff]   ;;  %v226_v9 = vld [vmem:[%s283_s0] sm:$0xff]  }
   0x4   :  { %v168_v10 = vld [vmem:[%s284_s2] ss:$0 sm:$0xff] }
   0x6   :  { %199 = vmatpush3.bf16.msra.mxu0 %v219_v2 }
   0x7   :  { %200 = vmatprep.subr.bf16.mxu0 %v227_v0 }
   0xa   :  { %201 = vmatpush3.bf16.msra.mxu0 %v220_v3 }
   0xb   :  { %202 = vmatprep.subr.bf16.mxu0 %v227_v0 }
   0xe   :  { %203 = vmatpush3.bf16.msra.mxu0 %v221_v4 }
   0xf   :  { %204 = vmatprep.subr.bf16.mxu0 %v227_v0 }
  0x12   :  { %205 = vmatpush3.bf16.msra.mxu0 %v222_v5 }
  0x13   :  { %206 = vmatprep.subr.bf16.mxu0 %v227_v0 }
  0x16   :  { %207 = vmatpush3.bf16.msra.mxu0 %v223_v6 }
  0x17   :  { %208 = vmatprep.subr.bf16.mxu0 %v227_v0 }
  0x1a   :  { %209 = vmatpush3.bf16.msra.mxu0 %v224_v7 }
  0x1b   :  { %210 = vmatprep.subr.bf16.mxu0 %v227_v0 }
  0x1e   :  { %211 = vmatpush3.bf16.msra.mxu0 %v225_v8 }
  0x21   :  { %213 = vmatmul.mubr.bf16.vlgmr.msra.gmra.mrb[0].mxu0 %v226_v9 }
  0xf4   :  { %v136_v11 = vpop.f32.mrb[0].mxu0 }
  0xf5   :  { %v143_v12 = vadd.f32 %v168_v10, %v136_v11  ;;  %v214_v13 = vpop.f32.mrb[1].mxu0 }
  0xf6   :  { %v139_v14 = vpop.f32.mrb[2].mxu0 }
  0xf7   :  { %v144_v15 = vadd.f32 %v168_v10, %v139_v14  ;;  %v215_v16 = vpop.f32.mrb[3].mxu0  ;;  %v152_v17 = vmax.f32 %v143_v12, 0.0 }
  0xf9   :  { %v153_v18 = vmax.f32 %v144_v15, 0.0 }
  0xfb   :  { %v185_v19 = vpack.c.bf16 %v153_v18, %v152_v17 }
  0xfd   :  { %186 = vst [vmem:[%s285_s3] sm:$0xff] %v185_v19  }

// kernel: dpn_forward.41
= control target key start
LH: loop header
LB: loop body
LE: loop exit
PB: predicated region body
PF: predicated region fallthrough
CT: control target
= control target key end

     0   :  { %v208_v0 = vmov 0.0   ;;  %vm209_vm0 = vmmov 0   ;;  %s266_s1 = inlined_call_operand.vmem [shape: bf16[128,128], index: 1, kind: input, shape index: {}]   ;;  %s267_s0 = inlined_call_operand.vmem [shape: bf16[16,128], index: 0, kind: input, shape index: {}]   ;;  %s268_s2 = inlined_call_operand.vmem [shape: f32[1,128], index: 2, kind: input, shape index: {}]   ;;  %s269_s3 = inlined_call_operand.vmem [shape: f32[16,128], index: 3, kind: output, shape index: {}]  }
   0x1   :  { %177 = vmatprep.subr.bf16.mxu0 %v208_v0  ;;  %v199_v1 = vld [vmem:[%s266_s1] sm:$0xff]   ;;  %193 = vmatprep.mubr.msk.bf16.mxu0 %vm209_vm0, %v208_v0  ;;  %v200_v2 = vld [vmem:[%s266_s1 + $0x8] sm:$0xff]   ;;  %v201_v3 = vld [vmem:[%s266_s1 + $0x10] sm:$0xff]  }
   0x2   :  { %178 = vmatpush3.bf16.msra.mxu0 %v199_v1  ;;  %v202_v4 = vld [vmem:[%s266_s1 + $0x18] sm:$0xff]   ;;  %v203_v5 = vld [vmem:[%s266_s1 + $0x20] sm:$0xff]   ;;  %v204_v6 = vld [vmem:[%s266_s1 + $0x28] sm:$0xff]  }
   0x3   :  { %179 = vmatprep.subr.bf16.mxu0 %v208_v0  ;;  %v205_v7 = vld [vmem:[%s266_s1 + $0x30] sm:$0xff]   ;;  %v206_v8 = vld [vmem:[%s266_s1 + $0x38] sm:$0xff]   ;;  %v207_v9 = vld [vmem:[%s267_s0] sm:$0xff]  }
   0x4   :  { %v158_v10 = vld [vmem:[%s268_s2] ss:$0 sm:$0xff] }
   0x6   :  { %180 = vmatpush3.bf16.msra.mxu0 %v200_v2 }
   0x7   :  { %181 = vmatprep.subr.bf16.mxu0 %v208_v0 }
   0xa   :  { %182 = vmatpush3.bf16.msra.mxu0 %v201_v3 }
   0xb   :  { %183 = vmatprep.subr.bf16.mxu0 %v208_v0 }
   0xe   :  { %184 = vmatpush3.bf16.msra.mxu0 %v202_v4 }
   0xf   :  { %185 = vmatprep.subr.bf16.mxu0 %v208_v0 }
  0x12   :  { %186 = vmatpush3.bf16.msra.mxu0 %v203_v5 }
  0x13   :  { %187 = vmatprep.subr.bf16.mxu0 %v208_v0 }
  0x16   :  { %188 = vmatpush3.bf16.msra.mxu0 %v204_v6 }
  0x17   :  { %189 = vmatprep.subr.bf16.mxu0 %v208_v0 }
  0x1a   :  { %190 = vmatpush3.bf16.msra.mxu0 %v205_v7 }
  0x1b   :  { %191 = vmatprep.subr.bf16.mxu0 %v208_v0 }
  0x1e   :  { %192 = vmatpush3.bf16.msra.mxu0 %v206_v8 }
  0x21   :  { %194 = vmatmul.mubr.bf16.vlgmr.msra.gmra.mrb[0].mxu0 %v207_v9 }
  0xf4   :  { %v136_v11 = vpop.f32.mrb[0].mxu0 }
  0xf5   :  { %v143_v12 = vadd.f32 %v158_v10, %v136_v11  ;;  %v195_v13 = vpop.f32.mrb[1].mxu0 }
  0xf6   :  { %v139_v14 = vpop.f32.mrb[2].mxu0 }
  0xf7   :  { %152 = vst [vmem:[%s269_s3] sm:$0xff] %v143_v12  ;;  %v144_v15 = vadd.f32 %v158_v10, %v139_v14  ;;  %v196_v16 = vpop.f32.mrb[3].mxu0 }
  0xf9   :  { %153 = vst [vmem:[%s269_s3 + $0x8] sm:$0xff] %v144_v15 }

// kernel: dpn_forward.40
= control target key start
LH: loop header
LB: loop body
LE: loop exit
PB: predicated region body
PF: predicated region fallthrough
CT: control target
= control target key end

     0   :  { %v261_v0 = vmov 0.0   ;;  %vm262_vm0 = vmmov 0   ;;  %s263_s9 = smov 8   ;;  %v163_v18 = vlaneseq  ;;  %s325_s1 = inlined_call_operand.vmem [shape: bf16[128,128], index: 1, kind: input, shape index: {}]   ;;  %s326_s0 = inlined_call_operand.vmem [shape: bf16[16,128], index: 0, kind: input, shape index: {}]   ;;  %s327_s2 = inlined_call_operand.vmem [shape: f32[1,128], index: 2, kind: input, shape index: {}]   ;;  %s328_s3 = inlined_call_operand.vmem [shape: bf16[16,128], index: 3, kind: input, shape index: {}]   ;;  %s329_s4 = inlined_call_operand.vmem [shape: bf16[16,128], index: 4, kind: output, shape index: {}]  }
   0x1   :  { %224 = vmatprep.subr.bf16.mxu0 %v261_v0  ;;  %v252_v1 = vld [vmem:[%s325_s1] sm:$0xff]   ;;  %240 = vmatprep.mubr.msk.bf16.mxu0 %vm262_vm0, %v261_v0  ;;  %v253_v2 = vld [vmem:[%s325_s1 + $0x8] sm:$0xff]   ;;  %v254_v3 = vld [vmem:[%s325_s1 + $0x10] sm:$0xff]  }
   0x2   :  { %225 = vmatpush3.bf16.msra.mxu0 %v252_v1  ;;  %v255_v4 = vld [vmem:[%s325_s1 + $0x18] sm:$0xff]   ;;  %v256_v5 = vld [vmem:[%s325_s1 + $0x20] sm:$0xff]   ;;  %v257_v6 = vld [vmem:[%s325_s1 + $0x28] sm:$0xff]   ;;  %v164_v20 = vand.u32 127, %v163_v18 }
   0x3   :  { %226 = vmatprep.subr.bf16.mxu0 %v261_v0  ;;  %v258_v7 = vld [vmem:[%s325_s1 + $0x30] sm:$0xff]   ;;  %v259_v8 = vld [vmem:[%s325_s1 + $0x38] sm:$0xff]   ;;  %v260_v9 = vld [vmem:[%s326_s0] sm:$0xff]  }
   0x4   :  { %v192_v10 = vld [vmem:[%s327_s2] ss:$0 sm:$0xff]  ;;  %vm169_vm1 = vcmp.lt.s32.totalorder %v164_v20, 48  ;;  %vm168_vm2 = vcmp.lt.s32.totalorder %v164_v20, 40  ;;  %vm165_vm3 = vcmp.lt.s32.totalorder %v164_v20, 32 }
   0x5   :  { %v207_v19 = vld [vmem:[%s328_s3] sm:$0xff]  }
   0x6   :  { %227 = vmatpush3.bf16.msra.mxu0 %v253_v2  ;;  %v208_v21 = vunpack.c.l.bf16 %v207_v19  ;;  %v209_v22 = vunpack.c.h.bf16 %v207_v19 }
   0x7   :  { %228 = vmatprep.subr.bf16.mxu0 %v261_v0 }
   0xa   :  { %229 = vmatpush3.bf16.msra.mxu0 %v254_v3 }
   0xb   :  { %230 = vmatprep.subr.bf16.mxu0 %v261_v0 }
   0xe   :  { %231 = vmatpush3.bf16.msra.mxu0 %v255_v4 }
   0xf   :  { %232 = vmatprep.subr.bf16.mxu0 %v261_v0 }
  0x12   :  { %233 = vmatpush3.bf16.msra.mxu0 %v256_v5 }
  0x13   :  { %234 = vmatprep.subr.bf16.mxu0 %v261_v0 }
  0x16   :  { %235 = vmatpush3.bf16.msra.mxu0 %v257_v6 }
  0x17   :  { %236 = vmatprep.subr.bf16.mxu0 %v261_v0 }
  0x1a   :  { %237 = vmatpush3.bf16.msra.mxu0 %v258_v7 }
  0x1b   :  { %238 = vmatprep.subr.bf16.mxu0 %v261_v0 }
  0x1e   :  { %239 = vmatpush3.bf16.msra.mxu0 %v259_v8 }
  0x21   :  { %241 = vmatmul.mubr.bf16.vlgmr.msra.gmra.mrb[0].mxu0 %v260_v9 }
  0xf4   :  { %v139_v11 = vpop.f32.mrb[0].mxu0 }
  0xf5   :  { %v242_v12 = vpop.f32.mrb[1].mxu0  ;;  %v146_v14 = vadd.f32 %v192_v10, %v139_v11 }
  0xf6   :  { %v142_v13 = vpop.f32.mrb[2].mxu0 }
  0xf7   :  { %v147_v15 = vadd.f32 %v192_v10, %v142_v13  ;;  %v243_v16 = vpop.f32.mrb[3].mxu0  ;;  %v166_v26 = vadd.f32 %v208_v21, %v146_v14 }
  0xf9   :  { %v247_v17 = vpack.i.bf16 %v147_v15, %v146_v14  ;;  %v167_v27 = vadd.f32 %v209_v22, %v147_v15 }
  0xfb   :  { %248 = vrot.lane.b32.xlu0 %v247_v17, %s263_s9 }
 0x16d   :  { %v249_v23 = vpop.permute.xlu0 %248 }
 0x16e   :  { %v251_v24 = vunpack.i.h.bf16 %v249_v23  ;;  %v250_v25 = vunpack.i.l.bf16 %v249_v23 }
 0x170   :  { %v171_v28 = vsel %vm169_vm1, %v251_v24, 0.0  ;;  %v170_v29 = vsel %vm169_vm1, %v250_v25, 0.0 }
 0x171   :  { %v173_v30 = vsel %vm168_vm2, %v209_v22, %v171_v28  ;;  %v172_v31 = vsel %vm168_vm2, %v208_v21, %v170_v29 }
 0x172   :  { %v174_v32 = vsel %vm165_vm3, %v166_v26, %v172_v31  ;;  %v175_v33 = vsel %vm165_vm3, %v167_v27, %v173_v30 }
 0x173   :  { %v176_v34 = vmax.f32 %v174_v32, 0.0  ;;  %v177_v35 = vmax.f32 %v175_v33, 0.0 }
 0x175   :  { %v213_v36 = vpack.c.bf16 %v177_v35, %v176_v34 }
 0x177   :  { %214 = vst [vmem:[%s329_s4] sm:$0xff] %v213_v36  }

</bundles_post_ra>
